<compile_context>
chip_gen: v6e
topology: v6e:2x2x1
jax: 0.10.0
libtpu: 0.0.40
codegen_flags: <defaults>
</compile_context>

<pallas_src>
import functools

import jax
import jax.numpy as jnp
import numpy as np
from jax import lax
from jax.experimental import pallas as pl
from jax.experimental.pallas import tpu as pltpu

C_HID = 10            # encoder hidden channels (nl = 0 branch of filter_network)
_TARGET_LANES = 512   # lane-dense slabs: aim for ~4x128 lanes per grid step


# --------------------------------- the kernel --------------------------------
def _filter_kernel(x_ref, w1_ref, b1_ref, w2_ref, b2_ref, o_ref, *, im_h, im_w):
    # x_ref: (1, n_rows, n_cols) slab of packed images (b_sub x b_lane images of
    # size im_h x im_w).  Flattened f32 parameters in SMEM: w1_ref (90,),
    # b1_ref (10,), w2_ref (90,) [channel-folded + spatially pre-flipped],
    # b2_ref (1,).
    n_rows = x_ref.shape[1]
    n_cols = x_ref.shape[2]
    x = x_ref[0]

    # ---- hoisted constants: within-image boundary + 2x2 parity masks --------
    ri = lax.broadcasted_iota(jnp.int32, (n_rows, n_cols), 0)
    ci = lax.broadcasted_iota(jnp.int32, (n_rows, n_cols), 1)
    rim = ri % im_h
    cim = ci % im_w
    row_top = rim == 0
    row_bot = rim == im_h - 1
    col_lft = cim == 0
    col_rgt = cim == im_w - 1
    row_even = (ri % 2) == 0
    col_even = (ci % 2) == 0

    # Shifted views with zero fill at image boundaries.  pltpu.roll is a
    # circular rotation (jnp.roll semantics, non-negative shift): shift by 1
    # fetches the previous row/col, shift by n-1 fetches the next one.
    def sh_up(a):    # a[i-1, j]
        return jnp.where(row_top, 0.0, pltpu.roll(a, 1, 0))

    def sh_dn(a):    # a[i+1, j]
        return jnp.where(row_bot, 0.0, pltpu.roll(a, n_rows - 1, 0))

    def sh_lf(a):    # a[i, j-1]
        return jnp.where(col_lft, 0.0, pltpu.roll(a, 1, 1))

    def sh_rt(a):    # a[i, j+1]
        return jnp.where(col_rgt, 0.0, pltpu.roll(a, n_cols - 1, 1))

    # ---- hoisted 9 shifted input views (shared by all 10 encoder channels) --
    xu, xd = sh_up(x), sh_dn(x)
    xs = (sh_lf(xu), xu, sh_rt(xu),      # ky = 0  (dy = -1)
          sh_lf(x),  x,  sh_rt(x),       # ky = 1  (dy =  0)
          sh_lf(xd), xd, sh_rt(xd))      # ky = 2  (dy = +1)

    def blockmax_up(a):
        # MaxPool2d(2) followed by nearest Upsample(x2), fused:
        # out[i, j] = max over the 2x2 block containing (i, j).
        # im_h/im_w even => 2x2 blocks never straddle packed-image boundaries.
        pr = jnp.where(row_even, pltpu.roll(a, n_rows - 1, 0), pltpu.roll(a, 1, 0))
        b = jnp.maximum(a, pr)
        pc = jnp.where(col_even, pltpu.roll(b, n_cols - 1, 1), pltpu.roll(b, 1, 1))
        return jnp.maximum(b, pc)

    zero = jnp.zeros((n_rows, n_cols), jnp.float32)

    def channel_body(c, carry):
        r0, r1, r2 = carry
        wb = c * 9
        # encoder: Conv2d(1 -> 10, 3x3, pad 1) + tanh, then fused pool/upsample
        acc = w1_ref[wb] * xs[0]
        for t in range(1, 9):
            acc = acc + w1_ref[wb + t] * xs[t]
        g = blockmax_up(jnp.tanh(acc + b1_ref[c]))

        # decoder (streamed, row shifts deferred): ConvTranspose2d(20 -> 1, 3x3,
        # pad 1) with the duplicated-channel weights folded (10 channels) and
        # spatially pre-flipped in the wrapper -> plain 3x3 correlation.
        gl, gr = sh_lf(g), sh_rt(g)
        r0 = r0 + (w2_ref[wb + 0] * gl + w2_ref[wb + 1] * g + w2_ref[wb + 2] * gr)
        r1 = r1 + (w2_ref[wb + 3] * gl + w2_ref[wb + 4] * g + w2_ref[wb + 5] * gr)
        r2 = r2 + (w2_ref[wb + 6] * gl + w2_ref[wb + 7] * g + w2_ref[wb + 8] * gr)
        return r0, r1, r2

    r0, r1, r2 = lax.fori_loop(0, C_HID, channel_body, (zero, zero, zero),
                               unroll=True)

    # Row shifts applied once to the channel sums (sh_up / sh_dn are linear).
    out = sh_up(r0) + r1 + sh_dn(r2)
    o_ref[0] = jnp.tanh(out + b2_ref[0])


# --------------------------------- wrapper ------------------------------------
@functools.lru_cache(maxsize=1)
def _vmem_capacity_bytes():
    # Per-TensorCore VMEM: 128 MiB on v5e/v6e, 64 MiB on v7x.  Fall back to the
    # smallest (v7x) if the query is unavailable so we never over-commit.
    cap = 64 * 1024 * 1024
    try:
        get_info = getattr(pltpu, "get_tpu_info", None)
        if get_info is not None:
            cap = int(getattr(get_info(), "vmem_capacity_bytes", cap))
    except Exception:
        pass
    return cap


def _choose_packing(N, H, W, slab_byte_cap, min_steps, b_sub=None, b_lane=None):
    # imgs_cap keeps at least `min_steps` grid steps so the "parallel" batch
    # axis has work for both v7x TensorCores.
    imgs_cap = max(1, -(-N // min_steps))
    if b_lane is None:
        lane_cap = imgs_cap if b_sub is None else max(1, -(-imgs_cap // b_sub))
        b_lane = min(max(1, _TARGET_LANES // W), lane_cap)
    if b_sub is None:
        row_group_bytes = H * b_lane * W * 4     # bytes added per extra sublane image
        b_sub = min(max(1, -(-imgs_cap // b_lane)),
                    max(1, slab_byte_cap // row_group_bytes))
    return b_sub, b_lane


@functools.partial(jax.jit, static_argnames=("b_sub", "b_lane"))
def filter_network_forward(x, w1, b1, w2, b2, b_sub=None, b_lane=None):
    """Forward pass of filter_network (nl=0).  x: (N, 1, H, W) NCHW float."""
    N, C_in, H, W = x.shape
    assert C_in == 1, "filter_network (nl=0) expects a single input channel"
    assert H % 2 == 0 and W % 2 == 0, "MaxPool2d(2)+Upsample(x2) fusion needs even H, W"

    # ---- per-generation VMEM budget and slab cap (static under jit) ---------
    vmem_cap = _vmem_capacity_bytes()
    vmem_limit = int(min(vmem_cap * 3 // 4, 100 * 1024 * 1024))
    # ~25-30 slab-sized f32 temporaries live in the body + in/out double buffers.
    slab_cap = max(128 * 1024, vmem_limit // 32)

    # >= 2 grid steps when possible (v7x has 2 TensorCores); costs only one
    # extra ~0.35 us pipeline step on single-TC v5e/v6e.
    min_steps = 2 if N >= 2 else 1
    b_sub, b_lane = _choose_packing(N, H, W, slab_cap, min_steps, b_sub, b_lane)

    imgs_per_block = b_sub * b_lane
    nb = -(-N // imgs_per_block)                        # grid steps
    n_pad = nb * imgs_per_block
    n_rows, n_cols = b_sub * H, b_lane * W

    # ---- pack the batch into lane/sublane-dense slabs ------------------------
    # TODO(synk): for large batches a consumer could keep this packed layout --
    # the pad+transpose here and the inverse below are extra XLA-side HBM copies.
    x2 = x.reshape(N, H, W).astype(jnp.float32)
    if n_pad != N:
        x2 = jnp.pad(x2, ((0, n_pad - N), (0, 0), (0, 0)))
    xp = (x2.reshape(nb, b_sub, b_lane, H, W)
             .transpose(0, 1, 3, 2, 4)
             .reshape(nb, n_rows, n_cols))

    # ---- fold + pre-flip decoder weights (cat((y, y)) channel duplication) ---
    w1f = w1.reshape(-1).astype(jnp.float32)                        # (90,)
    w2_eff = (w2[:C_HID, 0] + w2[C_HID:, 0]).astype(jnp.float32)    # (10, 3, 3)
    w2f = w2_eff[:, ::-1, ::-1].reshape(-1)                         # convT == flipped conv

    kernel = functools.partial(_filter_kernel, im_h=H, im_w=W)
    yp = pl.pallas_call(
        kernel,
        out_shape=jax.ShapeDtypeStruct((nb, n_rows, n_cols), jnp.float32),
        grid=(nb,),
        in_specs=[
            pl.BlockSpec((1, n_rows, n_cols), lambda i: (i, 0, 0)),
            pl.BlockSpec(memory_space=pltpu.MemorySpace.SMEM),
            pl.BlockSpec(memory_space=pltpu.MemorySpace.SMEM),
            pl.BlockSpec(memory_space=pltpu.MemorySpace.SMEM),
            pl.BlockSpec(memory_space=pltpu.MemorySpace.SMEM),
        ],
        out_specs=pl.BlockSpec((1, n_rows, n_cols), lambda i: (i, 0, 0)),
        compiler_params=pltpu.CompilerParams(
            dimension_semantics=("parallel",),
            vmem_limit_bytes=vmem_limit),
    )(xp, w1f, b1.astype(jnp.float32), w2f, b2.astype(jnp.float32))

    # ---- unpack back to NCHW --------------------------------------------------
    y = (yp.reshape(nb, b_sub, H, b_lane, W)
            .transpose(0, 1, 3, 2, 4)
            .reshape(n_pad, H, W)[:N])
    return y.reshape(N, 1, H, W)


# ------------------------ pure-JAX reference (for check) ----------------------
def ref_forward(x, w1, b1, w2, b2):
    y = lax.conv_general_dilated(
        x, w1, window_strides=(1, 1), padding=((1, 1), (1, 1)),
        dimension_numbers=("NCHW", "OIHW", "NCHW"))
    y = jnp.tanh(y + b1[None, :, None, None])
    p = lax.reduce_window(y, -jnp.inf, lax.max,
                          window_dimensions=(1, 1, 2, 2),
                          window_strides=(1, 1, 2, 2), padding="VALID")
    cat = jnp.concatenate([p, p], axis=1)                       # torch.cat dim=1
    up = jnp.repeat(jnp.repeat(cat, 2, axis=2), 2, axis=3)      # nearest x2
    wt = jnp.transpose(w2, (1, 0, 2, 3))[:, :, ::-1, ::-1]      # convT == flipped conv
    out = lax.conv_general_dilated(
        up, wt, window_strides=(1, 1), padding=((1, 1), (1, 1)),
        dimension_numbers=("NCHW", "OIHW", "NCHW"))
    return jnp.tanh(out + b2[None, :, None, None])


if __name__ == "__main__":
    key = jax.random.PRNGKey(0)
    k_x, k_w1, k_b1, k_w2, k_b2 = jax.random.split(key, 5)
    H = W = 16
    # deterministic synthetic parameters (shapes from the module __init__)
    w1 = jax.random.normal(k_w1, (10, 1, 3, 3), jnp.float32) * 0.2   # Conv2d(1,10,3,1,1)
    b1 = jax.random.normal(k_b1, (10,), jnp.float32) * 0.1
    w2 = jax.random.normal(k_w2, (20, 1, 3, 3), jnp.float32) * 0.2   # ConvTranspose2d(20,1,3,1,1)
    b2 = jax.random.normal(k_b2, (1,), jnp.float32) * 0.1

    # Check 1: small batch (heuristic packing; 2 grid steps so both v7x TCs work).
    x = jax.random.normal(k_x, (2, 1, H, W), jnp.float32)
    out = jax.block_until_ready(filter_network_forward(x, w1, b1, w2, b2))
    ref = ref_forward(x, w1, b1, w2, b2)
    np.testing.assert_allclose(np.asarray(out), np.asarray(ref), rtol=1e-4, atol=2e-5)

    # Check 2: larger batch exercising sublane packing, explicit b_sub override
    # and a multi-step "parallel" grid.
    x2 = jax.random.normal(k_x, (20, 1, H, W), jnp.float32)
    out2 = jax.block_until_ready(filter_network_forward(x2, w1, b1, w2, b2, b_sub=2))
    ref2 = ref_forward(x2, w1, b1, w2, b2)
    np.testing.assert_allclose(np.asarray(out2), np.asarray(ref2), rtol=1e-4, atol=2e-5)

    print("KERNEL_OK")
</pallas_src>

<mosaic_0001>
module attributes {stable_mosaic.version = 11 : i64} {
  func.func @_filter_kernel(%arg0: i32, %arg1: memref<1x16x16xf32, #tpu.memory_space<vmem>>, %arg2: memref<90xf32, #tpu.memory_space<smem>>, %arg3: memref<10xf32, #tpu.memory_space<smem>>, %arg4: memref<90xf32, #tpu.memory_space<smem>>, %arg5: memref<1xf32, #tpu.memory_space<smem>>, %arg6: memref<1x16x16xf32, #tpu.memory_space<vmem>>) attributes {dimension_semantics = [#tpu.dimension_semantics<parallel>], iteration_bounds = array<i64: 2>, scalar_prefetch = 0 : i64, scratch_operands = 0 : i64, tpu.core_type = #tpu.core_type<tc>, window_params = [{transform_indices = @transform_0, window_bounds = array<i64: 1, 16, 16>}, {transform_indices = @transform_1, window_bounds = array<i64: 90>}, {transform_indices = @transform_2, window_bounds = array<i64: 10>}, {transform_indices = @transform_3, window_bounds = array<i64: 90>}, {transform_indices = @transform_4, window_bounds = array<i64: 1>}, {transform_indices = @transform_5, window_bounds = array<i64: 1, 16, 16>}]} {
    %c0 = arith.constant 0 : index
    %c0_0 = arith.constant 0 : index
    %c0_1 = arith.constant 0 : index
    %0 = vector.load %arg1[%c0, %c0_0, %c0_1] : memref<1x16x16xf32, #tpu.memory_space<vmem>>, vector<1x16x16xf32>
    %1 = vector.shape_cast %0 : vector<1x16x16xf32> to vector<16x16xf32>
    %2 = tpu.iota {dimensions = array<i32: 0>} : vector<16x16xi32>
    %3 = tpu.iota {dimensions = array<i32: 1>} : vector<16x16xi32>
    %c16_i32 = arith.constant 16 : i32
    %c0_i32 = arith.constant 0 : i32
    %4 = arith.cmpi eq, %c16_i32, %c0_i32 : i32
    %c1_i32 = arith.constant 1 : i32
    %5 = arith.select %4, %c1_i32, %c16_i32 : i32
    %6 = vector.broadcast %5 : i32 to vector<16x16xi32>
    %7 = arith.remsi %2, %6 : vector<16x16xi32>
    %c0_i32_2 = arith.constant 0 : i32
    %8 = vector.broadcast %c0_i32_2 : i32 to vector<16x16xi32>
    %9 = arith.cmpi ne, %7, %8 : vector<16x16xi32>
    %c0_i32_3 = arith.constant 0 : i32
    %10 = vector.broadcast %c0_i32_3 : i32 to vector<16x16xi32>
    %11 = arith.cmpi slt, %7, %10 : vector<16x16xi32>
    %c0_i32_4 = arith.constant 0 : i32
    %12 = arith.cmpi slt, %5, %c0_i32_4 : i32
    %13 = vector.broadcast %12 : i1 to vector<16x16xi1>
    %14 = vector.broadcast %13 : vector<16x16xi1> to vector<16x16xi1>
    %15 = arith.xori %11, %14 : vector<16x16xi1>
    %16 = arith.andi %15, %9 : vector<16x16xi1>
    %17 = vector.broadcast %5 : i32 to vector<16x16xi32>
    %18 = arith.addi %7, %17 : vector<16x16xi32>
    %19 = arith.select %16, %18, %7 : vector<16x16xi1>, vector<16x16xi32>
    %c16_i32_5 = arith.constant 16 : i32
    %c0_i32_6 = arith.constant 0 : i32
    %20 = arith.cmpi eq, %c16_i32_5, %c0_i32_6 : i32
    %c1_i32_7 = arith.constant 1 : i32
    %21 = arith.select %20, %c1_i32_7, %c16_i32_5 : i32
    %22 = vector.broadcast %21 : i32 to vector<16x16xi32>
    %23 = arith.remsi %3, %22 : vector<16x16xi32>
    %c0_i32_8 = arith.constant 0 : i32
    %24 = vector.broadcast %c0_i32_8 : i32 to vector<16x16xi32>
    %25 = arith.cmpi ne, %23, %24 : vector<16x16xi32>
    %c0_i32_9 = arith.constant 0 : i32
    %26 = vector.broadcast %c0_i32_9 : i32 to vector<16x16xi32>
    %27 = arith.cmpi slt, %23, %26 : vector<16x16xi32>
    %c0_i32_10 = arith.constant 0 : i32
    %28 = arith.cmpi slt, %21, %c0_i32_10 : i32
    %29 = vector.broadcast %28 : i1 to vector<16x16xi1>
    %30 = vector.broadcast %29 : vector<16x16xi1> to vector<16x16xi1>
    %31 = arith.xori %27, %30 : vector<16x16xi1>
    %32 = arith.andi %31, %25 : vector<16x16xi1>
    %33 = vector.broadcast %21 : i32 to vector<16x16xi32>
    %34 = arith.addi %23, %33 : vector<16x16xi32>
    %35 = arith.select %32, %34, %23 : vector<16x16xi1>, vector<16x16xi32>
    %c0_i32_11 = arith.constant 0 : i32
    %36 = vector.broadcast %c0_i32_11 : i32 to vector<16x16xi32>
    %37 = arith.cmpi eq, %19, %36 : vector<16x16xi32>
    %c15_i32 = arith.constant 15 : i32
    %38 = vector.broadcast %c15_i32 : i32 to vector<16x16xi32>
    %39 = arith.cmpi eq, %19, %38 : vector<16x16xi32>
    %c0_i32_12 = arith.constant 0 : i32
    %40 = vector.broadcast %c0_i32_12 : i32 to vector<16x16xi32>
    %41 = arith.cmpi eq, %35, %40 : vector<16x16xi32>
    %c15_i32_13 = arith.constant 15 : i32
    %42 = vector.broadcast %c15_i32_13 : i32 to vector<16x16xi32>
    %43 = arith.cmpi eq, %35, %42 : vector<16x16xi32>
    %c2_i32 = arith.constant 2 : i32
    %c0_i32_14 = arith.constant 0 : i32
    %44 = arith.cmpi eq, %c2_i32, %c0_i32_14 : i32
    %c1_i32_15 = arith.constant 1 : i32
    %45 = arith.select %44, %c1_i32_15, %c2_i32 : i32
    %46 = vector.broadcast %45 : i32 to vector<16x16xi32>
    %47 = arith.remsi %2, %46 : vector<16x16xi32>
    %c0_i32_16 = arith.constant 0 : i32
    %48 = vector.broadcast %c0_i32_16 : i32 to vector<16x16xi32>
    %49 = arith.cmpi ne, %47, %48 : vector<16x16xi32>
    %c0_i32_17 = arith.constant 0 : i32
    %50 = vector.broadcast %c0_i32_17 : i32 to vector<16x16xi32>
    %51 = arith.cmpi slt, %47, %50 : vector<16x16xi32>
    %c0_i32_18 = arith.constant 0 : i32
    %52 = arith.cmpi slt, %45, %c0_i32_18 : i32
    %53 = vector.broadcast %52 : i1 to vector<16x16xi1>
    %54 = vector.broadcast %53 : vector<16x16xi1> to vector<16x16xi1>
    %55 = arith.xori %51, %54 : vector<16x16xi1>
    %56 = arith.andi %55, %49 : vector<16x16xi1>
    %57 = vector.broadcast %45 : i32 to vector<16x16xi32>
    %58 = arith.addi %47, %57 : vector<16x16xi32>
    %59 = arith.select %56, %58, %47 : vector<16x16xi1>, vector<16x16xi32>
    %c0_i32_19 = arith.constant 0 : i32
    %60 = vector.broadcast %c0_i32_19 : i32 to vector<16x16xi32>
    %61 = arith.cmpi eq, %59, %60 : vector<16x16xi32>
    %c2_i32_20 = arith.constant 2 : i32
    %c0_i32_21 = arith.constant 0 : i32
    %62 = arith.cmpi eq, %c2_i32_20, %c0_i32_21 : i32
    %c1_i32_22 = arith.constant 1 : i32
    %63 = arith.select %62, %c1_i32_22, %c2_i32_20 : i32
    %64 = vector.broadcast %63 : i32 to vector<16x16xi32>
    %65 = arith.remsi %3, %64 : vector<16x16xi32>
    %c0_i32_23 = arith.constant 0 : i32
    %66 = vector.broadcast %c0_i32_23 : i32 to vector<16x16xi32>
    %67 = arith.cmpi ne, %65, %66 : vector<16x16xi32>
    %c0_i32_24 = arith.constant 0 : i32
    %68 = vector.broadcast %c0_i32_24 : i32 to vector<16x16xi32>
    %69 = arith.cmpi slt, %65, %68 : vector<16x16xi32>
    %c0_i32_25 = arith.constant 0 : i32
    %70 = arith.cmpi slt, %63, %c0_i32_25 : i32
    %71 = vector.broadcast %70 : i1 to vector<16x16xi1>
    %72 = vector.broadcast %71 : vector<16x16xi1> to vector<16x16xi1>
    %73 = arith.xori %69, %72 : vector<16x16xi1>
    %74 = arith.andi %73, %67 : vector<16x16xi1>
    %75 = vector.broadcast %63 : i32 to vector<16x16xi32>
    %76 = arith.addi %65, %75 : vector<16x16xi32>
    %77 = arith.select %74, %76, %65 : vector<16x16xi1>, vector<16x16xi32>
    %c0_i32_26 = arith.constant 0 : i32
    %78 = vector.broadcast %c0_i32_26 : i32 to vector<16x16xi32>
    %79 = arith.cmpi eq, %77, %78 : vector<16x16xi32>
    %c1_i32_27 = arith.constant 1 : i32
    %80 = tpu.dynamic_rotate %1 by %c1_i32_27 dim 0 : vector<16x16xf32>, i32 -> vector<16x16xf32>
    %cst = arith.constant 0.000000e+00 : f32
    %81 = vector.broadcast %cst : f32 to vector<16x16xf32>
    %82 = arith.select %37, %81, %80 : vector<16x16xi1>, vector<16x16xf32>
    %c15_i32_28 = arith.constant 15 : i32
    %83 = tpu.dynamic_rotate %1 by %c15_i32_28 dim 0 : vector<16x16xf32>, i32 -> vector<16x16xf32>
    %cst_29 = arith.constant 0.000000e+00 : f32
    %84 = vector.broadcast %cst_29 : f32 to vector<16x16xf32>
    %85 = arith.select %39, %84, %83 : vector<16x16xi1>, vector<16x16xf32>
    %c1_i32_30 = arith.constant 1 : i32
    %86 = tpu.dynamic_rotate %82 by %c1_i32_30 dim 1 : vector<16x16xf32>, i32 -> vector<16x16xf32>
    %cst_31 = arith.constant 0.000000e+00 : f32
    %87 = vector.broadcast %cst_31 : f32 to vector<16x16xf32>
    %88 = arith.select %41, %87, %86 : vector<16x16xi1>, vector<16x16xf32>
    %c15_i32_32 = arith.constant 15 : i32
    %89 = tpu.dynamic_rotate %82 by %c15_i32_32 dim 1 : vector<16x16xf32>, i32 -> vector<16x16xf32>
    %cst_33 = arith.constant 0.000000e+00 : f32
    %90 = vector.broadcast %cst_33 : f32 to vector<16x16xf32>
    %91 = arith.select %43, %90, %89 : vector<16x16xi1>, vector<16x16xf32>
    %c1_i32_34 = arith.constant 1 : i32
    %92 = tpu.dynamic_rotate %1 by %c1_i32_34 dim 1 : vector<16x16xf32>, i32 -> vector<16x16xf32>
    %cst_35 = arith.constant 0.000000e+00 : f32
    %93 = vector.broadcast %cst_35 : f32 to vector<16x16xf32>
    %94 = arith.select %41, %93, %92 : vector<16x16xi1>, vector<16x16xf32>
    %c15_i32_36 = arith.constant 15 : i32
    %95 = tpu.dynamic_rotate %1 by %c15_i32_36 dim 1 : vector<16x16xf32>, i32 -> vector<16x16xf32>
    %cst_37 = arith.constant 0.000000e+00 : f32
    %96 = vector.broadcast %cst_37 : f32 to vector<16x16xf32>
    %97 = arith.select %43, %96, %95 : vector<16x16xi1>, vector<16x16xf32>
    %c1_i32_38 = arith.constant 1 : i32
    %98 = tpu.dynamic_rotate %85 by %c1_i32_38 dim 1 : vector<16x16xf32>, i32 -> vector<16x16xf32>
    %cst_39 = arith.constant 0.000000e+00 : f32
    %99 = vector.broadcast %cst_39 : f32 to vector<16x16xf32>
    %100 = arith.select %41, %99, %98 : vector<16x16xi1>, vector<16x16xf32>
    %c15_i32_40 = arith.constant 15 : i32
    %101 = tpu.dynamic_rotate %85 by %c15_i32_40 dim 1 : vector<16x16xf32>, i32 -> vector<16x16xf32>
    %cst_41 = arith.constant 0.000000e+00 : f32
    %102 = vector.broadcast %cst_41 : f32 to vector<16x16xf32>
    %103 = arith.select %43, %102, %101 : vector<16x16xi1>, vector<16x16xf32>
    %cst_42 = arith.constant 0.000000e+00 : f32
    %104 = vector.broadcast %cst_42 : f32 to vector<16x16xf32>
    %c0_i32_43 = arith.constant 0 : i32
    %c9_i32 = arith.constant 9 : i32
    %105 = arith.muli %c0_i32_43, %c9_i32 : i32
    %106 = arith.index_cast %105 : i32 to index
    %107 = memref.load %arg2[%106] : memref<90xf32, #tpu.memory_space<smem>>
    %108 = vector.broadcast %107 : f32 to vector<16x16xf32>
    %109 = arith.mulf %108, %88 : vector<16x16xf32>
    %c1_i32_44 = arith.constant 1 : i32
    %110 = arith.addi %105, %c1_i32_44 : i32
    %111 = arith.index_cast %110 : i32 to index
    %112 = memref.load %arg2[%111] : memref<90xf32, #tpu.memory_space<smem>>
    %113 = vector.broadcast %112 : f32 to vector<16x16xf32>
    %114 = arith.mulf %113, %82 : vector<16x16xf32>
    %115 = arith.addf %109, %114 : vector<16x16xf32>
    %c2_i32_45 = arith.constant 2 : i32
    %116 = arith.addi %105, %c2_i32_45 : i32
    %117 = arith.index_cast %116 : i32 to index
    %118 = memref.load %arg2[%117] : memref<90xf32, #tpu.memory_space<smem>>
    %119 = vector.broadcast %118 : f32 to vector<16x16xf32>
    %120 = arith.mulf %119, %91 : vector<16x16xf32>
    %121 = arith.addf %115, %120 : vector<16x16xf32>
    %c3_i32 = arith.constant 3 : i32
    %122 = arith.addi %105, %c3_i32 : i32
    %123 = arith.index_cast %122 : i32 to index
    %124 = memref.load %arg2[%123] : memref<90xf32, #tpu.memory_space<smem>>
    %125 = vector.broadcast %124 : f32 to vector<16x16xf32>
    %126 = arith.mulf %125, %94 : vector<16x16xf32>
    %127 = arith.addf %121, %126 : vector<16x16xf32>
    %c4_i32 = arith.constant 4 : i32
    %128 = arith.addi %105, %c4_i32 : i32
    %129 = arith.index_cast %128 : i32 to index
    %130 = memref.load %arg2[%129] : memref<90xf32, #tpu.memory_space<smem>>
    %131 = vector.broadcast %130 : f32 to vector<16x16xf32>
    %132 = arith.mulf %131, %1 : vector<16x16xf32>
    %133 = arith.addf %127, %132 : vector<16x16xf32>
    %c5_i32 = arith.constant 5 : i32
    %134 = arith.addi %105, %c5_i32 : i32
    %135 = arith.index_cast %134 : i32 to index
    %136 = memref.load %arg2[%135] : memref<90xf32, #tpu.memory_space<smem>>
    %137 = vector.broadcast %136 : f32 to vector<16x16xf32>
    %138 = arith.mulf %137, %97 : vector<16x16xf32>
    %139 = arith.addf %133, %138 : vector<16x16xf32>
    %c6_i32 = arith.constant 6 : i32
    %140 = arith.addi %105, %c6_i32 : i32
    %141 = arith.index_cast %140 : i32 to index
    %142 = memref.load %arg2[%141] : memref<90xf32, #tpu.memory_space<smem>>
    %143 = vector.broadcast %142 : f32 to vector<16x16xf32>
    %144 = arith.mulf %143, %100 : vector<16x16xf32>
    %145 = arith.addf %139, %144 : vector<16x16xf32>
    %c7_i32 = arith.constant 7 : i32
    %146 = arith.addi %105, %c7_i32 : i32
    %147 = arith.index_cast %146 : i32 to index
    %148 = memref.load %arg2[%147] : memref<90xf32, #tpu.memory_space<smem>>
    %149 = vector.broadcast %148 : f32 to vector<16x16xf32>
    %150 = arith.mulf %149, %85 : vector<16x16xf32>
    %151 = arith.addf %145, %150 : vector<16x16xf32>
    %c8_i32 = arith.constant 8 : i32
    %152 = arith.addi %105, %c8_i32 : i32
    %153 = arith.index_cast %152 : i32 to index
    %154 = memref.load %arg2[%153] : memref<90xf32, #tpu.memory_space<smem>>
    %155 = vector.broadcast %154 : f32 to vector<16x16xf32>
    %156 = arith.mulf %155, %103 : vector<16x16xf32>
    %157 = arith.addf %151, %156 : vector<16x16xf32>
    %158 = arith.index_cast %c0_i32_43 : i32 to index
    %159 = memref.load %arg3[%158] : memref<10xf32, #tpu.memory_space<smem>>
    %160 = vector.broadcast %159 : f32 to vector<16x16xf32>
    %161 = arith.addf %157, %160 : vector<16x16xf32>
    %162 = math.tanh %161 : vector<16x16xf32>
    %c15_i32_46 = arith.constant 15 : i32
    %163 = tpu.dynamic_rotate %162 by %c15_i32_46 dim 0 : vector<16x16xf32>, i32 -> vector<16x16xf32>
    %c1_i32_47 = arith.constant 1 : i32
    %164 = tpu.dynamic_rotate %162 by %c1_i32_47 dim 0 : vector<16x16xf32>, i32 -> vector<16x16xf32>
    %165 = arith.select %61, %163, %164 : vector<16x16xi1>, vector<16x16xf32>
    %166 = arith.maximumf %162, %165 : vector<16x16xf32>
    %c15_i32_48 = arith.constant 15 : i32
    %167 = tpu.dynamic_rotate %166 by %c15_i32_48 dim 1 : vector<16x16xf32>, i32 -> vector<16x16xf32>
    %c1_i32_49 = arith.constant 1 : i32
    %168 = tpu.dynamic_rotate %166 by %c1_i32_49 dim 1 : vector<16x16xf32>, i32 -> vector<16x16xf32>
    %169 = arith.select %79, %167, %168 : vector<16x16xi1>, vector<16x16xf32>
    %170 = arith.maximumf %166, %169 : vector<16x16xf32>
    %c1_i32_50 = arith.constant 1 : i32
    %171 = tpu.dynamic_rotate %170 by %c1_i32_50 dim 1 : vector<16x16xf32>, i32 -> vector<16x16xf32>
    %cst_51 = arith.constant 0.000000e+00 : f32
    %172 = vector.broadcast %cst_51 : f32 to vector<16x16xf32>
    %173 = arith.select %41, %172, %171 : vector<16x16xi1>, vector<16x16xf32>
    %c15_i32_52 = arith.constant 15 : i32
    %174 = tpu.dynamic_rotate %170 by %c15_i32_52 dim 1 : vector<16x16xf32>, i32 -> vector<16x16xf32>
    %cst_53 = arith.constant 0.000000e+00 : f32
    %175 = vector.broadcast %cst_53 : f32 to vector<16x16xf32>
    %176 = arith.select %43, %175, %174 : vector<16x16xi1>, vector<16x16xf32>
    %c0_i32_54 = arith.constant 0 : i32
    %177 = arith.addi %105, %c0_i32_54 : i32
    %178 = arith.index_cast %177 : i32 to index
    %179 = memref.load %arg4[%178] : memref<90xf32, #tpu.memory_space<smem>>
    %180 = vector.broadcast %179 : f32 to vector<16x16xf32>
    %181 = arith.mulf %180, %173 : vector<16x16xf32>
    %c1_i32_55 = arith.constant 1 : i32
    %182 = arith.addi %105, %c1_i32_55 : i32
    %183 = arith.index_cast %182 : i32 to index
    %184 = memref.load %arg4[%183] : memref<90xf32, #tpu.memory_space<smem>>
    %185 = vector.broadcast %184 : f32 to vector<16x16xf32>
    %186 = arith.mulf %185, %170 : vector<16x16xf32>
    %187 = arith.addf %181, %186 : vector<16x16xf32>
    %c2_i32_56 = arith.constant 2 : i32
    %188 = arith.addi %105, %c2_i32_56 : i32
    %189 = arith.index_cast %188 : i32 to index
    %190 = memref.load %arg4[%189] : memref<90xf32, #tpu.memory_space<smem>>
    %191 = vector.broadcast %190 : f32 to vector<16x16xf32>
    %192 = arith.mulf %191, %176 : vector<16x16xf32>
    %193 = arith.addf %187, %192 : vector<16x16xf32>
    %194 = arith.addf %104, %193 : vector<16x16xf32>
    %c3_i32_57 = arith.constant 3 : i32
    %195 = arith.addi %105, %c3_i32_57 : i32
    %196 = arith.index_cast %195 : i32 to index
    %197 = memref.load %arg4[%196] : memref<90xf32, #tpu.memory_space<smem>>
    %198 = vector.broadcast %197 : f32 to vector<16x16xf32>
    %199 = arith.mulf %198, %173 : vector<16x16xf32>
    %c4_i32_58 = arith.constant 4 : i32
    %200 = arith.addi %105, %c4_i32_58 : i32
    %201 = arith.index_cast %200 : i32 to index
    %202 = memref.load %arg4[%201] : memref<90xf32, #tpu.memory_space<smem>>
    %203 = vector.broadcast %202 : f32 to vector<16x16xf32>
    %204 = arith.mulf %203, %170 : vector<16x16xf32>
    %205 = arith.addf %199, %204 : vector<16x16xf32>
    %c5_i32_59 = arith.constant 5 : i32
    %206 = arith.addi %105, %c5_i32_59 : i32
    %207 = arith.index_cast %206 : i32 to index
    %208 = memref.load %arg4[%207] : memref<90xf32, #tpu.memory_space<smem>>
    %209 = vector.broadcast %208 : f32 to vector<16x16xf32>
    %210 = arith.mulf %209, %176 : vector<16x16xf32>
    %211 = arith.addf %205, %210 : vector<16x16xf32>
    %212 = arith.addf %104, %211 : vector<16x16xf32>
    %c6_i32_60 = arith.constant 6 : i32
    %213 = arith.addi %105, %c6_i32_60 : i32
    %214 = arith.index_cast %213 : i32 to index
    %215 = memref.load %arg4[%214] : memref<90xf32, #tpu.memory_space<smem>>
    %216 = vector.broadcast %215 : f32 to vector<16x16xf32>
    %217 = arith.mulf %216, %173 : vector<16x16xf32>
    %c7_i32_61 = arith.constant 7 : i32
    %218 = arith.addi %105, %c7_i32_61 : i32
    %219 = arith.index_cast %218 : i32 to index
    %220 = memref.load %arg4[%219] : memref<90xf32, #tpu.memory_space<smem>>
    %221 = vector.broadcast %220 : f32 to vector<16x16xf32>
    %222 = arith.mulf %221, %170 : vector<16x16xf32>
    %223 = arith.addf %217, %222 : vector<16x16xf32>
    %c8_i32_62 = arith.constant 8 : i32
    %224 = arith.addi %105, %c8_i32_62 : i32
    %225 = arith.index_cast %224 : i32 to index
    %226 = memref.load %arg4[%225] : memref<90xf32, #tpu.memory_space<smem>>
    %227 = vector.broadcast %226 : f32 to vector<16x16xf32>
    %228 = arith.mulf %227, %176 : vector<16x16xf32>
    %229 = arith.addf %223, %228 : vector<16x16xf32>
    %230 = arith.addf %104, %229 : vector<16x16xf32>
    %c1_i32_63 = arith.constant 1 : i32
    %c9_i32_64 = arith.constant 9 : i32
    %231 = arith.muli %c1_i32_63, %c9_i32_64 : i32
    %232 = arith.index_cast %231 : i32 to index
    %233 = memref.load %arg2[%232] : memref<90xf32, #tpu.memory_space<smem>>
    %234 = vector.broadcast %233 : f32 to vector<16x16xf32>
    %235 = arith.mulf %234, %88 : vector<16x16xf32>
    %c1_i32_65 = arith.constant 1 : i32
    %236 = arith.addi %231, %c1_i32_65 : i32
    %237 = arith.index_cast %236 : i32 to index
    %238 = memref.load %arg2[%237] : memref<90xf32, #tpu.memory_space<smem>>
    %239 = vector.broadcast %238 : f32 to vector<16x16xf32>
    %240 = arith.mulf %239, %82 : vector<16x16xf32>
    %241 = arith.addf %235, %240 : vector<16x16xf32>
    %c2_i32_66 = arith.constant 2 : i32
    %242 = arith.addi %231, %c2_i32_66 : i32
    %243 = arith.index_cast %242 : i32 to index
    %244 = memref.load %arg2[%243] : memref<90xf32, #tpu.memory_space<smem>>
    %245 = vector.broadcast %244 : f32 to vector<16x16xf32>
    %246 = arith.mulf %245, %91 : vector<16x16xf32>
    %247 = arith.addf %241, %246 : vector<16x16xf32>
    %c3_i32_67 = arith.constant 3 : i32
    %248 = arith.addi %231, %c3_i32_67 : i32
    %249 = arith.index_cast %248 : i32 to index
    %250 = memref.load %arg2[%249] : memref<90xf32, #tpu.memory_space<smem>>
    %251 = vector.broadcast %250 : f32 to vector<16x16xf32>
    %252 = arith.mulf %251, %94 : vector<16x16xf32>
    %253 = arith.addf %247, %252 : vector<16x16xf32>
    %c4_i32_68 = arith.constant 4 : i32
    %254 = arith.addi %231, %c4_i32_68 : i32
    %255 = arith.index_cast %254 : i32 to index
    %256 = memref.load %arg2[%255] : memref<90xf32, #tpu.memory_space<smem>>
    %257 = vector.broadcast %256 : f32 to vector<16x16xf32>
    %258 = arith.mulf %257, %1 : vector<16x16xf32>
    %259 = arith.addf %253, %258 : vector<16x16xf32>
    %c5_i32_69 = arith.constant 5 : i32
    %260 = arith.addi %231, %c5_i32_69 : i32
    %261 = arith.index_cast %260 : i32 to index
    %262 = memref.load %arg2[%261] : memref<90xf32, #tpu.memory_space<smem>>
    %263 = vector.broadcast %262 : f32 to vector<16x16xf32>
    %264 = arith.mulf %263, %97 : vector<16x16xf32>
    %265 = arith.addf %259, %264 : vector<16x16xf32>
    %c6_i32_70 = arith.constant 6 : i32
    %266 = arith.addi %231, %c6_i32_70 : i32
    %267 = arith.index_cast %266 : i32 to index
    %268 = memref.load %arg2[%267] : memref<90xf32, #tpu.memory_space<smem>>
    %269 = vector.broadcast %268 : f32 to vector<16x16xf32>
    %270 = arith.mulf %269, %100 : vector<16x16xf32>
    %271 = arith.addf %265, %270 : vector<16x16xf32>
    %c7_i32_71 = arith.constant 7 : i32
    %272 = arith.addi %231, %c7_i32_71 : i32
    %273 = arith.index_cast %272 : i32 to index
    %274 = memref.load %arg2[%273] : memref<90xf32, #tpu.memory_space<smem>>
    %275 = vector.broadcast %274 : f32 to vector<16x16xf32>
    %276 = arith.mulf %275, %85 : vector<16x16xf32>
    %277 = arith.addf %271, %276 : vector<16x16xf32>
    %c8_i32_72 = arith.constant 8 : i32
    %278 = arith.addi %231, %c8_i32_72 : i32
    %279 = arith.index_cast %278 : i32 to index
    %280 = memref.load %arg2[%279] : memref<90xf32, #tpu.memory_space<smem>>
    %281 = vector.broadcast %280 : f32 to vector<16x16xf32>
    %282 = arith.mulf %281, %103 : vector<16x16xf32>
    %283 = arith.addf %277, %282 : vector<16x16xf32>
    %284 = arith.index_cast %c1_i32_63 : i32 to index
    %285 = memref.load %arg3[%284] : memref<10xf32, #tpu.memory_space<smem>>
    %286 = vector.broadcast %285 : f32 to vector<16x16xf32>
    %287 = arith.addf %283, %286 : vector<16x16xf32>
    %288 = math.tanh %287 : vector<16x16xf32>
    %c15_i32_73 = arith.constant 15 : i32
    %289 = tpu.dynamic_rotate %288 by %c15_i32_73 dim 0 : vector<16x16xf32>, i32 -> vector<16x16xf32>
    %c1_i32_74 = arith.constant 1 : i32
    %290 = tpu.dynamic_rotate %288 by %c1_i32_74 dim 0 : vector<16x16xf32>, i32 -> vector<16x16xf32>
    %291 = arith.select %61, %289, %290 : vector<16x16xi1>, vector<16x16xf32>
    %292 = arith.maximumf %288, %291 : vector<16x16xf32>
    %c15_i32_75 = arith.constant 15 : i32
    %293 = tpu.dynamic_rotate %292 by %c15_i32_75 dim 1 : vector<16x16xf32>, i32 -> vector<16x16xf32>
    %c1_i32_76 = arith.constant 1 : i32
    %294 = tpu.dynamic_rotate %292 by %c1_i32_76 dim 1 : vector<16x16xf32>, i32 -> vector<16x16xf32>
    %295 = arith.select %79, %293, %294 : vector<16x16xi1>, vector<16x16xf32>
    %296 = arith.maximumf %292, %295 : vector<16x16xf32>
    %c1_i32_77 = arith.constant 1 : i32
    %297 = tpu.dynamic_rotate %296 by %c1_i32_77 dim 1 : vector<16x16xf32>, i32 -> vector<16x16xf32>
    %cst_78 = arith.constant 0.000000e+00 : f32
    %298 = vector.broadcast %cst_78 : f32 to vector<16x16xf32>
    %299 = arith.select %41, %298, %297 : vector<16x16xi1>, vector<16x16xf32>
    %c15_i32_79 = arith.constant 15 : i32
    %300 = tpu.dynamic_rotate %296 by %c15_i32_79 dim 1 : vector<16x16xf32>, i32 -> vector<16x16xf32>
    %cst_80 = arith.constant 0.000000e+00 : f32
    %301 = vector.broadcast %cst_80 : f32 to vector<16x16xf32>
    %302 = arith.select %43, %301, %300 : vector<16x16xi1>, vector<16x16xf32>
    %c0_i32_81 = arith.constant 0 : i32
    %303 = arith.addi %231, %c0_i32_81 : i32
    %304 = arith.index_cast %303 : i32 to index
    %305 = memref.load %arg4[%304] : memref<90xf32, #tpu.memory_space<smem>>
    %306 = vector.broadcast %305 : f32 to vector<16x16xf32>
    %307 = arith.mulf %306, %299 : vector<16x16xf32>
    %c1_i32_82 = arith.constant 1 : i32
    %308 = arith.addi %231, %c1_i32_82 : i32
    %309 = arith.index_cast %308 : i32 to index
    %310 = memref.load %arg4[%309] : memref<90xf32, #tpu.memory_space<smem>>
    %311 = vector.broadcast %310 : f32 to vector<16x16xf32>
    %312 = arith.mulf %311, %296 : vector<16x16xf32>
    %313 = arith.addf %307, %312 : vector<16x16xf32>
    %c2_i32_83 = arith.constant 2 : i32
    %314 = arith.addi %231, %c2_i32_83 : i32
    %315 = arith.index_cast %314 : i32 to index
    %316 = memref.load %arg4[%315] : memref<90xf32, #tpu.memory_space<smem>>
    %317 = vector.broadcast %316 : f32 to vector<16x16xf32>
    %318 = arith.mulf %317, %302 : vector<16x16xf32>
    %319 = arith.addf %313, %318 : vector<16x16xf32>
    %320 = arith.addf %194, %319 : vector<16x16xf32>
    %c3_i32_84 = arith.constant 3 : i32
    %321 = arith.addi %231, %c3_i32_84 : i32
    %322 = arith.index_cast %321 : i32 to index
    %323 = memref.load %arg4[%322] : memref<90xf32, #tpu.memory_space<smem>>
    %324 = vector.broadcast %323 : f32 to vector<16x16xf32>
    %325 = arith.mulf %324, %299 : vector<16x16xf32>
    %c4_i32_85 = arith.constant 4 : i32
    %326 = arith.addi %231, %c4_i32_85 : i32
    %327 = arith.index_cast %326 : i32 to index
    %328 = memref.load %arg4[%327] : memref<90xf32, #tpu.memory_space<smem>>
    %329 = vector.broadcast %328 : f32 to vector<16x16xf32>
    %330 = arith.mulf %329, %296 : vector<16x16xf32>
    %331 = arith.addf %325, %330 : vector<16x16xf32>
    %c5_i32_86 = arith.constant 5 : i32
    %332 = arith.addi %231, %c5_i32_86 : i32
    %333 = arith.index_cast %332 : i32 to index
    %334 = memref.load %arg4[%333] : memref<90xf32, #tpu.memory_space<smem>>
    %335 = vector.broadcast %334 : f32 to vector<16x16xf32>
    %336 = arith.mulf %335, %302 : vector<16x16xf32>
    %337 = arith.addf %331, %336 : vector<16x16xf32>
    %338 = arith.addf %212, %337 : vector<16x16xf32>
    %c6_i32_87 = arith.constant 6 : i32
    %339 = arith.addi %231, %c6_i32_87 : i32
    %340 = arith.index_cast %339 : i32 to index
    %341 = memref.load %arg4[%340] : memref<90xf32, #tpu.memory_space<smem>>
    %342 = vector.broadcast %341 : f32 to vector<16x16xf32>
    %343 = arith.mulf %342, %299 : vector<16x16xf32>
    %c7_i32_88 = arith.constant 7 : i32
    %344 = arith.addi %231, %c7_i32_88 : i32
    %345 = arith.index_cast %344 : i32 to index
    %346 = memref.load %arg4[%345] : memref<90xf32, #tpu.memory_space<smem>>
    %347 = vector.broadcast %346 : f32 to vector<16x16xf32>
    %348 = arith.mulf %347, %296 : vector<16x16xf32>
    %349 = arith.addf %343, %348 : vector<16x16xf32>
    %c8_i32_89 = arith.constant 8 : i32
    %350 = arith.addi %231, %c8_i32_89 : i32
    %351 = arith.index_cast %350 : i32 to index
    %352 = memref.load %arg4[%351] : memref<90xf32, #tpu.memory_space<smem>>
    %353 = vector.broadcast %352 : f32 to vector<16x16xf32>
    %354 = arith.mulf %353, %302 : vector<16x16xf32>
    %355 = arith.addf %349, %354 : vector<16x16xf32>
    %356 = arith.addf %230, %355 : vector<16x16xf32>
    %c2_i32_90 = arith.constant 2 : i32
    %c9_i32_91 = arith.constant 9 : i32
    %357 = arith.muli %c2_i32_90, %c9_i32_91 : i32
    %358 = arith.index_cast %357 : i32 to index
    %359 = memref.load %arg2[%358] : memref<90xf32, #tpu.memory_space<smem>>
    %360 = vector.broadcast %359 : f32 to vector<16x16xf32>
    %361 = arith.mulf %360, %88 : vector<16x16xf32>
    %c1_i32_92 = arith.constant 1 : i32
    %362 = arith.addi %357, %c1_i32_92 : i32
    %363 = arith.index_cast %362 : i32 to index
    %364 = memref.load %arg2[%363] : memref<90xf32, #tpu.memory_space<smem>>
    %365 = vector.broadcast %364 : f32 to vector<16x16xf32>
    %366 = arith.mulf %365, %82 : vector<16x16xf32>
    %367 = arith.addf %361, %366 : vector<16x16xf32>
    %c2_i32_93 = arith.constant 2 : i32
    %368 = arith.addi %357, %c2_i32_93 : i32
    %369 = arith.index_cast %368 : i32 to index
    %370 = memref.load %arg2[%369] : memref<90xf32, #tpu.memory_space<smem>>
    %371 = vector.broadcast %370 : f32 to vector<16x16xf32>
    %372 = arith.mulf %371, %91 : vector<16x16xf32>
    %373 = arith.addf %367, %372 : vector<16x16xf32>
    %c3_i32_94 = arith.constant 3 : i32
    %374 = arith.addi %357, %c3_i32_94 : i32
    %375 = arith.index_cast %374 : i32 to index
    %376 = memref.load %arg2[%375] : memref<90xf32, #tpu.memory_space<smem>>
    %377 = vector.broadcast %376 : f32 to vector<16x16xf32>
    %378 = arith.mulf %377, %94 : vector<16x16xf32>
    %379 = arith.addf %373, %378 : vector<16x16xf32>
    %c4_i32_95 = arith.constant 4 : i32
    %380 = arith.addi %357, %c4_i32_95 : i32
    %381 = arith.index_cast %380 : i32 to index
    %382 = memref.load %arg2[%381] : memref<90xf32, #tpu.memory_space<smem>>
    %383 = vector.broadcast %382 : f32 to vector<16x16xf32>
    %384 = arith.mulf %383, %1 : vector<16x16xf32>
    %385 = arith.addf %379, %384 : vector<16x16xf32>
    %c5_i32_96 = arith.constant 5 : i32
    %386 = arith.addi %357, %c5_i32_96 : i32
    %387 = arith.index_cast %386 : i32 to index
    %388 = memref.load %arg2[%387] : memref<90xf32, #tpu.memory_space<smem>>
    %389 = vector.broadcast %388 : f32 to vector<16x16xf32>
    %390 = arith.mulf %389, %97 : vector<16x16xf32>
    %391 = arith.addf %385, %390 : vector<16x16xf32>
    %c6_i32_97 = arith.constant 6 : i32
    %392 = arith.addi %357, %c6_i32_97 : i32
    %393 = arith.index_cast %392 : i32 to index
    %394 = memref.load %arg2[%393] : memref<90xf32, #tpu.memory_space<smem>>
    %395 = vector.broadcast %394 : f32 to vector<16x16xf32>
    %396 = arith.mulf %395, %100 : vector<16x16xf32>
    %397 = arith.addf %391, %396 : vector<16x16xf32>
    %c7_i32_98 = arith.constant 7 : i32
    %398 = arith.addi %357, %c7_i32_98 : i32
    %399 = arith.index_cast %398 : i32 to index
    %400 = memref.load %arg2[%399] : memref<90xf32, #tpu.memory_space<smem>>
    %401 = vector.broadcast %400 : f32 to vector<16x16xf32>
    %402 = arith.mulf %401, %85 : vector<16x16xf32>
    %403 = arith.addf %397, %402 : vector<16x16xf32>
    %c8_i32_99 = arith.constant 8 : i32
    %404 = arith.addi %357, %c8_i32_99 : i32
    %405 = arith.index_cast %404 : i32 to index
    %406 = memref.load %arg2[%405] : memref<90xf32, #tpu.memory_space<smem>>
    %407 = vector.broadcast %406 : f32 to vector<16x16xf32>
    %408 = arith.mulf %407, %103 : vector<16x16xf32>
    %409 = arith.addf %403, %408 : vector<16x16xf32>
    %410 = arith.index_cast %c2_i32_90 : i32 to index
    %411 = memref.load %arg3[%410] : memref<10xf32, #tpu.memory_space<smem>>
    %412 = vector.broadcast %411 : f32 to vector<16x16xf32>
    %413 = arith.addf %409, %412 : vector<16x16xf32>
    %414 = math.tanh %413 : vector<16x16xf32>
    %c15_i32_100 = arith.constant 15 : i32
    %415 = tpu.dynamic_rotate %414 by %c15_i32_100 dim 0 : vector<16x16xf32>, i32 -> vector<16x16xf32>
    %c1_i32_101 = arith.constant 1 : i32
    %416 = tpu.dynamic_rotate %414 by %c1_i32_101 dim 0 : vector<16x16xf32>, i32 -> vector<16x16xf32>
    %417 = arith.select %61, %415, %416 : vector<16x16xi1>, vector<16x16xf32>
    %418 = arith.maximumf %414, %417 : vector<16x16xf32>
    %c15_i32_102 = arith.constant 15 : i32
    %419 = tpu.dynamic_rotate %418 by %c15_i32_102 dim 1 : vector<16x16xf32>, i32 -> vector<16x16xf32>
    %c1_i32_103 = arith.constant 1 : i32
    %420 = tpu.dynamic_rotate %418 by %c1_i32_103 dim 1 : vector<16x16xf32>, i32 -> vector<16x16xf32>
    %421 = arith.select %79, %419, %420 : vector<16x16xi1>, vector<16x16xf32>
    %422 = arith.maximumf %418, %421 : vector<16x16xf32>
    %c1_i32_104 = arith.constant 1 : i32
    %423 = tpu.dynamic_rotate %422 by %c1_i32_104 dim 1 : vector<16x16xf32>, i32 -> vector<16x16xf32>
    %cst_105 = arith.constant 0.000000e+00 : f32
    %424 = vector.broadcast %cst_105 : f32 to vector<16x16xf32>
    %425 = arith.select %41, %424, %423 : vector<16x16xi1>, vector<16x16xf32>
    %c15_i32_106 = arith.constant 15 : i32
    %426 = tpu.dynamic_rotate %422 by %c15_i32_106 dim 1 : vector<16x16xf32>, i32 -> vector<16x16xf32>
    %cst_107 = arith.constant 0.000000e+00 : f32
    %427 = vector.broadcast %cst_107 : f32 to vector<16x16xf32>
    %428 = arith.select %43, %427, %426 : vector<16x16xi1>, vector<16x16xf32>
    %c0_i32_108 = arith.constant 0 : i32
    %429 = arith.addi %357, %c0_i32_108 : i32
    %430 = arith.index_cast %429 : i32 to index
    %431 = memref.load %arg4[%430] : memref<90xf32, #tpu.memory_space<smem>>
    %432 = vector.broadcast %431 : f32 to vector<16x16xf32>
    %433 = arith.mulf %432, %425 : vector<16x16xf32>
    %c1_i32_109 = arith.constant 1 : i32
    %434 = arith.addi %357, %c1_i32_109 : i32
    %435 = arith.index_cast %434 : i32 to index
    %436 = memref.load %arg4[%435] : memref<90xf32, #tpu.memory_space<smem>>
    %437 = vector.broadcast %436 : f32 to vector<16x16xf32>
    %438 = arith.mulf %437, %422 : vector<16x16xf32>
    %439 = arith.addf %433, %438 : vector<16x16xf32>
    %c2_i32_110 = arith.constant 2 : i32
    %440 = arith.addi %357, %c2_i32_110 : i32
    %441 = arith.index_cast %440 : i32 to index
    %442 = memref.load %arg4[%441] : memref<90xf32, #tpu.memory_space<smem>>
    %443 = vector.broadcast %442 : f32 to vector<16x16xf32>
    %444 = arith.mulf %443, %428 : vector<16x16xf32>
    %445 = arith.addf %439, %444 : vector<16x16xf32>
    %446 = arith.addf %320, %445 : vector<16x16xf32>
    %c3_i32_111 = arith.constant 3 : i32
    %447 = arith.addi %357, %c3_i32_111 : i32
    %448 = arith.index_cast %447 : i32 to index
    %449 = memref.load %arg4[%448] : memref<90xf32, #tpu.memory_space<smem>>
    %450 = vector.broadcast %449 : f32 to vector<16x16xf32>
    %451 = arith.mulf %450, %425 : vector<16x16xf32>
    %c4_i32_112 = arith.constant 4 : i32
    %452 = arith.addi %357, %c4_i32_112 : i32
    %453 = arith.index_cast %452 : i32 to index
    %454 = memref.load %arg4[%453] : memref<90xf32, #tpu.memory_space<smem>>
    %455 = vector.broadcast %454 : f32 to vector<16x16xf32>
    %456 = arith.mulf %455, %422 : vector<16x16xf32>
    %457 = arith.addf %451, %456 : vector<16x16xf32>
    %c5_i32_113 = arith.constant 5 : i32
    %458 = arith.addi %357, %c5_i32_113 : i32
    %459 = arith.index_cast %458 : i32 to index
    %460 = memref.load %arg4[%459] : memref<90xf32, #tpu.memory_space<smem>>
    %461 = vector.broadcast %460 : f32 to vector<16x16xf32>
    %462 = arith.mulf %461, %428 : vector<16x16xf32>
    %463 = arith.addf %457, %462 : vector<16x16xf32>
    %464 = arith.addf %338, %463 : vector<16x16xf32>
    %c6_i32_114 = arith.constant 6 : i32
    %465 = arith.addi %357, %c6_i32_114 : i32
    %466 = arith.index_cast %465 : i32 to index
    %467 = memref.load %arg4[%466] : memref<90xf32, #tpu.memory_space<smem>>
    %468 = vector.broadcast %467 : f32 to vector<16x16xf32>
    %469 = arith.mulf %468, %425 : vector<16x16xf32>
    %c7_i32_115 = arith.constant 7 : i32
    %470 = arith.addi %357, %c7_i32_115 : i32
    %471 = arith.index_cast %470 : i32 to index
    %472 = memref.load %arg4[%471] : memref<90xf32, #tpu.memory_space<smem>>
    %473 = vector.broadcast %472 : f32 to vector<16x16xf32>
    %474 = arith.mulf %473, %422 : vector<16x16xf32>
    %475 = arith.addf %469, %474 : vector<16x16xf32>
    %c8_i32_116 = arith.constant 8 : i32
    %476 = arith.addi %357, %c8_i32_116 : i32
    %477 = arith.index_cast %476 : i32 to index
    %478 = memref.load %arg4[%477] : memref<90xf32, #tpu.memory_space<smem>>
    %479 = vector.broadcast %478 : f32 to vector<16x16xf32>
    %480 = arith.mulf %479, %428 : vector<16x16xf32>
    %481 = arith.addf %475, %480 : vector<16x16xf32>
    %482 = arith.addf %356, %481 : vector<16x16xf32>
    %c3_i32_117 = arith.constant 3 : i32
    %c9_i32_118 = arith.constant 9 : i32
    %483 = arith.muli %c3_i32_117, %c9_i32_118 : i32
    %484 = arith.index_cast %483 : i32 to index
    %485 = memref.load %arg2[%484] : memref<90xf32, #tpu.memory_space<smem>>
    %486 = vector.broadcast %485 : f32 to vector<16x16xf32>
    %487 = arith.mulf %486, %88 : vector<16x16xf32>
    %c1_i32_119 = arith.constant 1 : i32
    %488 = arith.addi %483, %c1_i32_119 : i32
    %489 = arith.index_cast %488 : i32 to index
    %490 = memref.load %arg2[%489] : memref<90xf32, #tpu.memory_space<smem>>
    %491 = vector.broadcast %490 : f32 to vector<16x16xf32>
    %492 = arith.mulf %491, %82 : vector<16x16xf32>
    %493 = arith.addf %487, %492 : vector<16x16xf32>
    %c2_i32_120 = arith.constant 2 : i32
    %494 = arith.addi %483, %c2_i32_120 : i32
    %495 = arith.index_cast %494 : i32 to index
    %496 = memref.load %arg2[%495] : memref<90xf32, #tpu.memory_space<smem>>
    %497 = vector.broadcast %496 : f32 to vector<16x16xf32>
    %498 = arith.mulf %497, %91 : vector<16x16xf32>
    %499 = arith.addf %493, %498 : vector<16x16xf32>
    %c3_i32_121 = arith.constant 3 : i32
    %500 = arith.addi %483, %c3_i32_121 : i32
    %501 = arith.index_cast %500 : i32 to index
    %502 = memref.load %arg2[%501] : memref<90xf32, #tpu.memory_space<smem>>
    %503 = vector.broadcast %502 : f32 to vector<16x16xf32>
    %504 = arith.mulf %503, %94 : vector<16x16xf32>
    %505 = arith.addf %499, %504 : vector<16x16xf32>
    %c4_i32_122 = arith.constant 4 : i32
    %506 = arith.addi %483, %c4_i32_122 : i32
    %507 = arith.index_cast %506 : i32 to index
    %508 = memref.load %arg2[%507] : memref<90xf32, #tpu.memory_space<smem>>
    %509 = vector.broadcast %508 : f32 to vector<16x16xf32>
    %510 = arith.mulf %509, %1 : vector<16x16xf32>
    %511 = arith.addf %505, %510 : vector<16x16xf32>
    %c5_i32_123 = arith.constant 5 : i32
    %512 = arith.addi %483, %c5_i32_123 : i32
    %513 = arith.index_cast %512 : i32 to index
    %514 = memref.load %arg2[%513] : memref<90xf32, #tpu.memory_space<smem>>
    %515 = vector.broadcast %514 : f32 to vector<16x16xf32>
    %516 = arith.mulf %515, %97 : vector<16x16xf32>
    %517 = arith.addf %511, %516 : vector<16x16xf32>
    %c6_i32_124 = arith.constant 6 : i32
    %518 = arith.addi %483, %c6_i32_124 : i32
    %519 = arith.index_cast %518 : i32 to index
    %520 = memref.load %arg2[%519] : memref<90xf32, #tpu.memory_space<smem>>
    %521 = vector.broadcast %520 : f32 to vector<16x16xf32>
    %522 = arith.mulf %521, %100 : vector<16x16xf32>
    %523 = arith.addf %517, %522 : vector<16x16xf32>
    %c7_i32_125 = arith.constant 7 : i32
    %524 = arith.addi %483, %c7_i32_125 : i32
    %525 = arith.index_cast %524 : i32 to index
    %526 = memref.load %arg2[%525] : memref<90xf32, #tpu.memory_space<smem>>
    %527 = vector.broadcast %526 : f32 to vector<16x16xf32>
    %528 = arith.mulf %527, %85 : vector<16x16xf32>
    %529 = arith.addf %523, %528 : vector<16x16xf32>
    %c8_i32_126 = arith.constant 8 : i32
    %530 = arith.addi %483, %c8_i32_126 : i32
    %531 = arith.index_cast %530 : i32 to index
    %532 = memref.load %arg2[%531] : memref<90xf32, #tpu.memory_space<smem>>
    %533 = vector.broadcast %532 : f32 to vector<16x16xf32>
    %534 = arith.mulf %533, %103 : vector<16x16xf32>
    %535 = arith.addf %529, %534 : vector<16x16xf32>
    %536 = arith.index_cast %c3_i32_117 : i32 to index
    %537 = memref.load %arg3[%536] : memref<10xf32, #tpu.memory_space<smem>>
    %538 = vector.broadcast %537 : f32 to vector<16x16xf32>
    %539 = arith.addf %535, %538 : vector<16x16xf32>
    %540 = math.tanh %539 : vector<16x16xf32>
    %c15_i32_127 = arith.constant 15 : i32
    %541 = tpu.dynamic_rotate %540 by %c15_i32_127 dim 0 : vector<16x16xf32>, i32 -> vector<16x16xf32>
    %c1_i32_128 = arith.constant 1 : i32
    %542 = tpu.dynamic_rotate %540 by %c1_i32_128 dim 0 : vector<16x16xf32>, i32 -> vector<16x16xf32>
    %543 = arith.select %61, %541, %542 : vector<16x16xi1>, vector<16x16xf32>
    %544 = arith.maximumf %540, %543 : vector<16x16xf32>
    %c15_i32_129 = arith.constant 15 : i32
    %545 = tpu.dynamic_rotate %544 by %c15_i32_129 dim 1 : vector<16x16xf32>, i32 -> vector<16x16xf32>
    %c1_i32_130 = arith.constant 1 : i32
    %546 = tpu.dynamic_rotate %544 by %c1_i32_130 dim 1 : vector<16x16xf32>, i32 -> vector<16x16xf32>
    %547 = arith.select %79, %545, %546 : vector<16x16xi1>, vector<16x16xf32>
    %548 = arith.maximumf %544, %547 : vector<16x16xf32>
    %c1_i32_131 = arith.constant 1 : i32
    %549 = tpu.dynamic_rotate %548 by %c1_i32_131 dim 1 : vector<16x16xf32>, i32 -> vector<16x16xf32>
    %cst_132 = arith.constant 0.000000e+00 : f32
    %550 = vector.broadcast %cst_132 : f32 to vector<16x16xf32>
    %551 = arith.select %41, %550, %549 : vector<16x16xi1>, vector<16x16xf32>
    %c15_i32_133 = arith.constant 15 : i32
    %552 = tpu.dynamic_rotate %548 by %c15_i32_133 dim 1 : vector<16x16xf32>, i32 -> vector<16x16xf32>
    %cst_134 = arith.constant 0.000000e+00 : f32
    %553 = vector.broadcast %cst_134 : f32 to vector<16x16xf32>
    %554 = arith.select %43, %553, %552 : vector<16x16xi1>, vector<16x16xf32>
    %c0_i32_135 = arith.constant 0 : i32
    %555 = arith.addi %483, %c0_i32_135 : i32
    %556 = arith.index_cast %555 : i32 to index
    %557 = memref.load %arg4[%556] : memref<90xf32, #tpu.memory_space<smem>>
    %558 = vector.broadcast %557 : f32 to vector<16x16xf32>
    %559 = arith.mulf %558, %551 : vector<16x16xf32>
    %c1_i32_136 = arith.constant 1 : i32
    %560 = arith.addi %483, %c1_i32_136 : i32
    %561 = arith.index_cast %560 : i32 to index
    %562 = memref.load %arg4[%561] : memref<90xf32, #tpu.memory_space<smem>>
    %563 = vector.broadcast %562 : f32 to vector<16x16xf32>
    %564 = arith.mulf %563, %548 : vector<16x16xf32>
    %565 = arith.addf %559, %564 : vector<16x16xf32>
    %c2_i32_137 = arith.constant 2 : i32
    %566 = arith.addi %483, %c2_i32_137 : i32
    %567 = arith.index_cast %566 : i32 to index
    %568 = memref.load %arg4[%567] : memref<90xf32, #tpu.memory_space<smem>>
    %569 = vector.broadcast %568 : f32 to vector<16x16xf32>
    %570 = arith.mulf %569, %554 : vector<16x16xf32>
    %571 = arith.addf %565, %570 : vector<16x16xf32>
    %572 = arith.addf %446, %571 : vector<16x16xf32>
    %c3_i32_138 = arith.constant 3 : i32
    %573 = arith.addi %483, %c3_i32_138 : i32
    %574 = arith.index_cast %573 : i32 to index
    %575 = memref.load %arg4[%574] : memref<90xf32, #tpu.memory_space<smem>>
    %576 = vector.broadcast %575 : f32 to vector<16x16xf32>
    %577 = arith.mulf %576, %551 : vector<16x16xf32>
    %c4_i32_139 = arith.constant 4 : i32
    %578 = arith.addi %483, %c4_i32_139 : i32
    %579 = arith.index_cast %578 : i32 to index
    %580 = memref.load %arg4[%579] : memref<90xf32, #tpu.memory_space<smem>>
    %581 = vector.broadcast %580 : f32 to vector<16x16xf32>
    %582 = arith.mulf %581, %548 : vector<16x16xf32>
    %583 = arith.addf %577, %582 : vector<16x16xf32>
    %c5_i32_140 = arith.constant 5 : i32
    %584 = arith.addi %483, %c5_i32_140 : i32
    %585 = arith.index_cast %584 : i32 to index
    %586 = memref.load %arg4[%585] : memref<90xf32, #tpu.memory_space<smem>>
    %587 = vector.broadcast %586 : f32 to vector<16x16xf32>
    %588 = arith.mulf %587, %554 : vector<16x16xf32>
    %589 = arith.addf %583, %588 : vector<16x16xf32>
    %590 = arith.addf %464, %589 : vector<16x16xf32>
    %c6_i32_141 = arith.constant 6 : i32
    %591 = arith.addi %483, %c6_i32_141 : i32
    %592 = arith.index_cast %591 : i32 to index
    %593 = memref.load %arg4[%592] : memref<90xf32, #tpu.memory_space<smem>>
    %594 = vector.broadcast %593 : f32 to vector<16x16xf32>
    %595 = arith.mulf %594, %551 : vector<16x16xf32>
    %c7_i32_142 = arith.constant 7 : i32
    %596 = arith.addi %483, %c7_i32_142 : i32
    %597 = arith.index_cast %596 : i32 to index
    %598 = memref.load %arg4[%597] : memref<90xf32, #tpu.memory_space<smem>>
    %599 = vector.broadcast %598 : f32 to vector<16x16xf32>
    %600 = arith.mulf %599, %548 : vector<16x16xf32>
    %601 = arith.addf %595, %600 : vector<16x16xf32>
    %c8_i32_143 = arith.constant 8 : i32
    %602 = arith.addi %483, %c8_i32_143 : i32
    %603 = arith.index_cast %602 : i32 to index
    %604 = memref.load %arg4[%603] : memref<90xf32, #tpu.memory_space<smem>>
    %605 = vector.broadcast %604 : f32 to vector<16x16xf32>
    %606 = arith.mulf %605, %554 : vector<16x16xf32>
    %607 = arith.addf %601, %606 : vector<16x16xf32>
    %608 = arith.addf %482, %607 : vector<16x16xf32>
    %c4_i32_144 = arith.constant 4 : i32
    %c9_i32_145 = arith.constant 9 : i32
    %609 = arith.muli %c4_i32_144, %c9_i32_145 : i32
    %610 = arith.index_cast %609 : i32 to index
    %611 = memref.load %arg2[%610] : memref<90xf32, #tpu.memory_space<smem>>
    %612 = vector.broadcast %611 : f32 to vector<16x16xf32>
    %613 = arith.mulf %612, %88 : vector<16x16xf32>
    %c1_i32_146 = arith.constant 1 : i32
    %614 = arith.addi %609, %c1_i32_146 : i32
    %615 = arith.index_cast %614 : i32 to index
    %616 = memref.load %arg2[%615] : memref<90xf32, #tpu.memory_space<smem>>
    %617 = vector.broadcast %616 : f32 to vector<16x16xf32>
    %618 = arith.mulf %617, %82 : vector<16x16xf32>
    %619 = arith.addf %613, %618 : vector<16x16xf32>
    %c2_i32_147 = arith.constant 2 : i32
    %620 = arith.addi %609, %c2_i32_147 : i32
    %621 = arith.index_cast %620 : i32 to index
    %622 = memref.load %arg2[%621] : memref<90xf32, #tpu.memory_space<smem>>
    %623 = vector.broadcast %622 : f32 to vector<16x16xf32>
    %624 = arith.mulf %623, %91 : vector<16x16xf32>
    %625 = arith.addf %619, %624 : vector<16x16xf32>
    %c3_i32_148 = arith.constant 3 : i32
    %626 = arith.addi %609, %c3_i32_148 : i32
    %627 = arith.index_cast %626 : i32 to index
    %628 = memref.load %arg2[%627] : memref<90xf32, #tpu.memory_space<smem>>
    %629 = vector.broadcast %628 : f32 to vector<16x16xf32>
    %630 = arith.mulf %629, %94 : vector<16x16xf32>
    %631 = arith.addf %625, %630 : vector<16x16xf32>
    %c4_i32_149 = arith.constant 4 : i32
    %632 = arith.addi %609, %c4_i32_149 : i32
    %633 = arith.index_cast %632 : i32 to index
    %634 = memref.load %arg2[%633] : memref<90xf32, #tpu.memory_space<smem>>
    %635 = vector.broadcast %634 : f32 to vector<16x16xf32>
    %636 = arith.mulf %635, %1 : vector<16x16xf32>
    %637 = arith.addf %631, %636 : vector<16x16xf32>
    %c5_i32_150 = arith.constant 5 : i32
    %638 = arith.addi %609, %c5_i32_150 : i32
    %639 = arith.index_cast %638 : i32 to index
    %640 = memref.load %arg2[%639] : memref<90xf32, #tpu.memory_space<smem>>
    %641 = vector.broadcast %640 : f32 to vector<16x16xf32>
    %642 = arith.mulf %641, %97 : vector<16x16xf32>
    %643 = arith.addf %637, %642 : vector<16x16xf32>
    %c6_i32_151 = arith.constant 6 : i32
    %644 = arith.addi %609, %c6_i32_151 : i32
    %645 = arith.index_cast %644 : i32 to index
    %646 = memref.load %arg2[%645] : memref<90xf32, #tpu.memory_space<smem>>
    %647 = vector.broadcast %646 : f32 to vector<16x16xf32>
    %648 = arith.mulf %647, %100 : vector<16x16xf32>
    %649 = arith.addf %643, %648 : vector<16x16xf32>
    %c7_i32_152 = arith.constant 7 : i32
    %650 = arith.addi %609, %c7_i32_152 : i32
    %651 = arith.index_cast %650 : i32 to index
    %652 = memref.load %arg2[%651] : memref<90xf32, #tpu.memory_space<smem>>
    %653 = vector.broadcast %652 : f32 to vector<16x16xf32>
    %654 = arith.mulf %653, %85 : vector<16x16xf32>
    %655 = arith.addf %649, %654 : vector<16x16xf32>
    %c8_i32_153 = arith.constant 8 : i32
    %656 = arith.addi %609, %c8_i32_153 : i32
    %657 = arith.index_cast %656 : i32 to index
    %658 = memref.load %arg2[%657] : memref<90xf32, #tpu.memory_space<smem>>
    %659 = vector.broadcast %658 : f32 to vector<16x16xf32>
    %660 = arith.mulf %659, %103 : vector<16x16xf32>
    %661 = arith.addf %655, %660 : vector<16x16xf32>
    %662 = arith.index_cast %c4_i32_144 : i32 to index
    %663 = memref.load %arg3[%662] : memref<10xf32, #tpu.memory_space<smem>>
    %664 = vector.broadcast %663 : f32 to vector<16x16xf32>
    %665 = arith.addf %661, %664 : vector<16x16xf32>
    %666 = math.tanh %665 : vector<16x16xf32>
    %c15_i32_154 = arith.constant 15 : i32
    %667 = tpu.dynamic_rotate %666 by %c15_i32_154 dim 0 : vector<16x16xf32>, i32 -> vector<16x16xf32>
    %c1_i32_155 = arith.constant 1 : i32
    %668 = tpu.dynamic_rotate %666 by %c1_i32_155 dim 0 : vector<16x16xf32>, i32 -> vector<16x16xf32>
    %669 = arith.select %61, %667, %668 : vector<16x16xi1>, vector<16x16xf32>
    %670 = arith.maximumf %666, %669 : vector<16x16xf32>
    %c15_i32_156 = arith.constant 15 : i32
    %671 = tpu.dynamic_rotate %670 by %c15_i32_156 dim 1 : vector<16x16xf32>, i32 -> vector<16x16xf32>
    %c1_i32_157 = arith.constant 1 : i32
    %672 = tpu.dynamic_rotate %670 by %c1_i32_157 dim 1 : vector<16x16xf32>, i32 -> vector<16x16xf32>
    %673 = arith.select %79, %671, %672 : vector<16x16xi1>, vector<16x16xf32>
    %674 = arith.maximumf %670, %673 : vector<16x16xf32>
    %c1_i32_158 = arith.constant 1 : i32
    %675 = tpu.dynamic_rotate %674 by %c1_i32_158 dim 1 : vector<16x16xf32>, i32 -> vector<16x16xf32>
    %cst_159 = arith.constant 0.000000e+00 : f32
    %676 = vector.broadcast %cst_159 : f32 to vector<16x16xf32>
    %677 = arith.select %41, %676, %675 : vector<16x16xi1>, vector<16x16xf32>
    %c15_i32_160 = arith.constant 15 : i32
    %678 = tpu.dynamic_rotate %674 by %c15_i32_160 dim 1 : vector<16x16xf32>, i32 -> vector<16x16xf32>
    %cst_161 = arith.constant 0.000000e+00 : f32
    %679 = vector.broadcast %cst_161 : f32 to vector<16x16xf32>
    %680 = arith.select %43, %679, %678 : vector<16x16xi1>, vector<16x16xf32>
    %c0_i32_162 = arith.constant 0 : i32
    %681 = arith.addi %609, %c0_i32_162 : i32
    %682 = arith.index_cast %681 : i32 to index
    %683 = memref.load %arg4[%682] : memref<90xf32, #tpu.memory_space<smem>>
    %684 = vector.broadcast %683 : f32 to vector<16x16xf32>
    %685 = arith.mulf %684, %677 : vector<16x16xf32>
    %c1_i32_163 = arith.constant 1 : i32
    %686 = arith.addi %609, %c1_i32_163 : i32
    %687 = arith.index_cast %686 : i32 to index
    %688 = memref.load %arg4[%687] : memref<90xf32, #tpu.memory_space<smem>>
    %689 = vector.broadcast %688 : f32 to vector<16x16xf32>
    %690 = arith.mulf %689, %674 : vector<16x16xf32>
    %691 = arith.addf %685, %690 : vector<16x16xf32>
    %c2_i32_164 = arith.constant 2 : i32
    %692 = arith.addi %609, %c2_i32_164 : i32
    %693 = arith.index_cast %692 : i32 to index
    %694 = memref.load %arg4[%693] : memref<90xf32, #tpu.memory_space<smem>>
    %695 = vector.broadcast %694 : f32 to vector<16x16xf32>
    %696 = arith.mulf %695, %680 : vector<16x16xf32>
    %697 = arith.addf %691, %696 : vector<16x16xf32>
    %698 = arith.addf %572, %697 : vector<16x16xf32>
    %c3_i32_165 = arith.constant 3 : i32
    %699 = arith.addi %609, %c3_i32_165 : i32
    %700 = arith.index_cast %699 : i32 to index
    %701 = memref.load %arg4[%700] : memref<90xf32, #tpu.memory_space<smem>>
    %702 = vector.broadcast %701 : f32 to vector<16x16xf32>
    %703 = arith.mulf %702, %677 : vector<16x16xf32>
    %c4_i32_166 = arith.constant 4 : i32
    %704 = arith.addi %609, %c4_i32_166 : i32
    %705 = arith.index_cast %704 : i32 to index
    %706 = memref.load %arg4[%705] : memref<90xf32, #tpu.memory_space<smem>>
    %707 = vector.broadcast %706 : f32 to vector<16x16xf32>
    %708 = arith.mulf %707, %674 : vector<16x16xf32>
    %709 = arith.addf %703, %708 : vector<16x16xf32>
    %c5_i32_167 = arith.constant 5 : i32
    %710 = arith.addi %609, %c5_i32_167 : i32
    %711 = arith.index_cast %710 : i32 to index
    %712 = memref.load %arg4[%711] : memref<90xf32, #tpu.memory_space<smem>>
    %713 = vector.broadcast %712 : f32 to vector<16x16xf32>
    %714 = arith.mulf %713, %680 : vector<16x16xf32>
    %715 = arith.addf %709, %714 : vector<16x16xf32>
    %716 = arith.addf %590, %715 : vector<16x16xf32>
    %c6_i32_168 = arith.constant 6 : i32
    %717 = arith.addi %609, %c6_i32_168 : i32
    %718 = arith.index_cast %717 : i32 to index
    %719 = memref.load %arg4[%718] : memref<90xf32, #tpu.memory_space<smem>>
    %720 = vector.broadcast %719 : f32 to vector<16x16xf32>
    %721 = arith.mulf %720, %677 : vector<16x16xf32>
    %c7_i32_169 = arith.constant 7 : i32
    %722 = arith.addi %609, %c7_i32_169 : i32
    %723 = arith.index_cast %722 : i32 to index
    %724 = memref.load %arg4[%723] : memref<90xf32, #tpu.memory_space<smem>>
    %725 = vector.broadcast %724 : f32 to vector<16x16xf32>
    %726 = arith.mulf %725, %674 : vector<16x16xf32>
    %727 = arith.addf %721, %726 : vector<16x16xf32>
    %c8_i32_170 = arith.constant 8 : i32
    %728 = arith.addi %609, %c8_i32_170 : i32
    %729 = arith.index_cast %728 : i32 to index
    %730 = memref.load %arg4[%729] : memref<90xf32, #tpu.memory_space<smem>>
    %731 = vector.broadcast %730 : f32 to vector<16x16xf32>
    %732 = arith.mulf %731, %680 : vector<16x16xf32>
    %733 = arith.addf %727, %732 : vector<16x16xf32>
    %734 = arith.addf %608, %733 : vector<16x16xf32>
    %c5_i32_171 = arith.constant 5 : i32
    %c9_i32_172 = arith.constant 9 : i32
    %735 = arith.muli %c5_i32_171, %c9_i32_172 : i32
    %736 = arith.index_cast %735 : i32 to index
    %737 = memref.load %arg2[%736] : memref<90xf32, #tpu.memory_space<smem>>
    %738 = vector.broadcast %737 : f32 to vector<16x16xf32>
    %739 = arith.mulf %738, %88 : vector<16x16xf32>
    %c1_i32_173 = arith.constant 1 : i32
    %740 = arith.addi %735, %c1_i32_173 : i32
    %741 = arith.index_cast %740 : i32 to index
    %742 = memref.load %arg2[%741] : memref<90xf32, #tpu.memory_space<smem>>
    %743 = vector.broadcast %742 : f32 to vector<16x16xf32>
    %744 = arith.mulf %743, %82 : vector<16x16xf32>
    %745 = arith.addf %739, %744 : vector<16x16xf32>
    %c2_i32_174 = arith.constant 2 : i32
    %746 = arith.addi %735, %c2_i32_174 : i32
    %747 = arith.index_cast %746 : i32 to index
    %748 = memref.load %arg2[%747] : memref<90xf32, #tpu.memory_space<smem>>
    %749 = vector.broadcast %748 : f32 to vector<16x16xf32>
    %750 = arith.mulf %749, %91 : vector<16x16xf32>
    %751 = arith.addf %745, %750 : vector<16x16xf32>
    %c3_i32_175 = arith.constant 3 : i32
    %752 = arith.addi %735, %c3_i32_175 : i32
    %753 = arith.index_cast %752 : i32 to index
    %754 = memref.load %arg2[%753] : memref<90xf32, #tpu.memory_space<smem>>
    %755 = vector.broadcast %754 : f32 to vector<16x16xf32>
    %756 = arith.mulf %755, %94 : vector<16x16xf32>
    %757 = arith.addf %751, %756 : vector<16x16xf32>
    %c4_i32_176 = arith.constant 4 : i32
    %758 = arith.addi %735, %c4_i32_176 : i32
    %759 = arith.index_cast %758 : i32 to index
    %760 = memref.load %arg2[%759] : memref<90xf32, #tpu.memory_space<smem>>
    %761 = vector.broadcast %760 : f32 to vector<16x16xf32>
    %762 = arith.mulf %761, %1 : vector<16x16xf32>
    %763 = arith.addf %757, %762 : vector<16x16xf32>
    %c5_i32_177 = arith.constant 5 : i32
    %764 = arith.addi %735, %c5_i32_177 : i32
    %765 = arith.index_cast %764 : i32 to index
    %766 = memref.load %arg2[%765] : memref<90xf32, #tpu.memory_space<smem>>
    %767 = vector.broadcast %766 : f32 to vector<16x16xf32>
    %768 = arith.mulf %767, %97 : vector<16x16xf32>
    %769 = arith.addf %763, %768 : vector<16x16xf32>
    %c6_i32_178 = arith.constant 6 : i32
    %770 = arith.addi %735, %c6_i32_178 : i32
    %771 = arith.index_cast %770 : i32 to index
    %772 = memref.load %arg2[%771] : memref<90xf32, #tpu.memory_space<smem>>
    %773 = vector.broadcast %772 : f32 to vector<16x16xf32>
    %774 = arith.mulf %773, %100 : vector<16x16xf32>
    %775 = arith.addf %769, %774 : vector<16x16xf32>
    %c7_i32_179 = arith.constant 7 : i32
    %776 = arith.addi %735, %c7_i32_179 : i32
    %777 = arith.index_cast %776 : i32 to index
    %778 = memref.load %arg2[%777] : memref<90xf32, #tpu.memory_space<smem>>
    %779 = vector.broadcast %778 : f32 to vector<16x16xf32>
    %780 = arith.mulf %779, %85 : vector<16x16xf32>
    %781 = arith.addf %775, %780 : vector<16x16xf32>
    %c8_i32_180 = arith.constant 8 : i32
    %782 = arith.addi %735, %c8_i32_180 : i32
    %783 = arith.index_cast %782 : i32 to index
    %784 = memref.load %arg2[%783] : memref<90xf32, #tpu.memory_space<smem>>
    %785 = vector.broadcast %784 : f32 to vector<16x16xf32>
    %786 = arith.mulf %785, %103 : vector<16x16xf32>
    %787 = arith.addf %781, %786 : vector<16x16xf32>
    %788 = arith.index_cast %c5_i32_171 : i32 to index
    %789 = memref.load %arg3[%788] : memref<10xf32, #tpu.memory_space<smem>>
    %790 = vector.broadcast %789 : f32 to vector<16x16xf32>
    %791 = arith.addf %787, %790 : vector<16x16xf32>
    %792 = math.tanh %791 : vector<16x16xf32>
    %c15_i32_181 = arith.constant 15 : i32
    %793 = tpu.dynamic_rotate %792 by %c15_i32_181 dim 0 : vector<16x16xf32>, i32 -> vector<16x16xf32>
    %c1_i32_182 = arith.constant 1 : i32
    %794 = tpu.dynamic_rotate %792 by %c1_i32_182 dim 0 : vector<16x16xf32>, i32 -> vector<16x16xf32>
    %795 = arith.select %61, %793, %794 : vector<16x16xi1>, vector<16x16xf32>
    %796 = arith.maximumf %792, %795 : vector<16x16xf32>
    %c15_i32_183 = arith.constant 15 : i32
    %797 = tpu.dynamic_rotate %796 by %c15_i32_183 dim 1 : vector<16x16xf32>, i32 -> vector<16x16xf32>
    %c1_i32_184 = arith.constant 1 : i32
    %798 = tpu.dynamic_rotate %796 by %c1_i32_184 dim 1 : vector<16x16xf32>, i32 -> vector<16x16xf32>
    %799 = arith.select %79, %797, %798 : vector<16x16xi1>, vector<16x16xf32>
    %800 = arith.maximumf %796, %799 : vector<16x16xf32>
    %c1_i32_185 = arith.constant 1 : i32
    %801 = tpu.dynamic_rotate %800 by %c1_i32_185 dim 1 : vector<16x16xf32>, i32 -> vector<16x16xf32>
    %cst_186 = arith.constant 0.000000e+00 : f32
    %802 = vector.broadcast %cst_186 : f32 to vector<16x16xf32>
    %803 = arith.select %41, %802, %801 : vector<16x16xi1>, vector<16x16xf32>
    %c15_i32_187 = arith.constant 15 : i32
    %804 = tpu.dynamic_rotate %800 by %c15_i32_187 dim 1 : vector<16x16xf32>, i32 -> vector<16x16xf32>
    %cst_188 = arith.constant 0.000000e+00 : f32
    %805 = vector.broadcast %cst_188 : f32 to vector<16x16xf32>
    %806 = arith.select %43, %805, %804 : vector<16x16xi1>, vector<16x16xf32>
    %c0_i32_189 = arith.constant 0 : i32
    %807 = arith.addi %735, %c0_i32_189 : i32
    %808 = arith.index_cast %807 : i32 to index
    %809 = memref.load %arg4[%808] : memref<90xf32, #tpu.memory_space<smem>>
    %810 = vector.broadcast %809 : f32 to vector<16x16xf32>
    %811 = arith.mulf %810, %803 : vector<16x16xf32>
    %c1_i32_190 = arith.constant 1 : i32
    %812 = arith.addi %735, %c1_i32_190 : i32
    %813 = arith.index_cast %812 : i32 to index
    %814 = memref.load %arg4[%813] : memref<90xf32, #tpu.memory_space<smem>>
    %815 = vector.broadcast %814 : f32 to vector<16x16xf32>
    %816 = arith.mulf %815, %800 : vector<16x16xf32>
    %817 = arith.addf %811, %816 : vector<16x16xf32>
    %c2_i32_191 = arith.constant 2 : i32
    %818 = arith.addi %735, %c2_i32_191 : i32
    %819 = arith.index_cast %818 : i32 to index
    %820 = memref.load %arg4[%819] : memref<90xf32, #tpu.memory_space<smem>>
    %821 = vector.broadcast %820 : f32 to vector<16x16xf32>
    %822 = arith.mulf %821, %806 : vector<16x16xf32>
    %823 = arith.addf %817, %822 : vector<16x16xf32>
    %824 = arith.addf %698, %823 : vector<16x16xf32>
    %c3_i32_192 = arith.constant 3 : i32
    %825 = arith.addi %735, %c3_i32_192 : i32
    %826 = arith.index_cast %825 : i32 to index
    %827 = memref.load %arg4[%826] : memref<90xf32, #tpu.memory_space<smem>>
    %828 = vector.broadcast %827 : f32 to vector<16x16xf32>
    %829 = arith.mulf %828, %803 : vector<16x16xf32>
    %c4_i32_193 = arith.constant 4 : i32
    %830 = arith.addi %735, %c4_i32_193 : i32
    %831 = arith.index_cast %830 : i32 to index
    %832 = memref.load %arg4[%831] : memref<90xf32, #tpu.memory_space<smem>>
    %833 = vector.broadcast %832 : f32 to vector<16x16xf32>
    %834 = arith.mulf %833, %800 : vector<16x16xf32>
    %835 = arith.addf %829, %834 : vector<16x16xf32>
    %c5_i32_194 = arith.constant 5 : i32
    %836 = arith.addi %735, %c5_i32_194 : i32
    %837 = arith.index_cast %836 : i32 to index
    %838 = memref.load %arg4[%837] : memref<90xf32, #tpu.memory_space<smem>>
    %839 = vector.broadcast %838 : f32 to vector<16x16xf32>
    %840 = arith.mulf %839, %806 : vector<16x16xf32>
    %841 = arith.addf %835, %840 : vector<16x16xf32>
    %842 = arith.addf %716, %841 : vector<16x16xf32>
    %c6_i32_195 = arith.constant 6 : i32
    %843 = arith.addi %735, %c6_i32_195 : i32
    %844 = arith.index_cast %843 : i32 to index
    %845 = memref.load %arg4[%844] : memref<90xf32, #tpu.memory_space<smem>>
    %846 = vector.broadcast %845 : f32 to vector<16x16xf32>
    %847 = arith.mulf %846, %803 : vector<16x16xf32>
    %c7_i32_196 = arith.constant 7 : i32
    %848 = arith.addi %735, %c7_i32_196 : i32
    %849 = arith.index_cast %848 : i32 to index
    %850 = memref.load %arg4[%849] : memref<90xf32, #tpu.memory_space<smem>>
    %851 = vector.broadcast %850 : f32 to vector<16x16xf32>
    %852 = arith.mulf %851, %800 : vector<16x16xf32>
    %853 = arith.addf %847, %852 : vector<16x16xf32>
    %c8_i32_197 = arith.constant 8 : i32
    %854 = arith.addi %735, %c8_i32_197 : i32
    %855 = arith.index_cast %854 : i32 to index
    %856 = memref.load %arg4[%855] : memref<90xf32, #tpu.memory_space<smem>>
    %857 = vector.broadcast %856 : f32 to vector<16x16xf32>
    %858 = arith.mulf %857, %806 : vector<16x16xf32>
    %859 = arith.addf %853, %858 : vector<16x16xf32>
    %860 = arith.addf %734, %859 : vector<16x16xf32>
    %c6_i32_198 = arith.constant 6 : i32
    %c9_i32_199 = arith.constant 9 : i32
    %861 = arith.muli %c6_i32_198, %c9_i32_199 : i32
    %862 = arith.index_cast %861 : i32 to index
    %863 = memref.load %arg2[%862] : memref<90xf32, #tpu.memory_space<smem>>
    %864 = vector.broadcast %863 : f32 to vector<16x16xf32>
    %865 = arith.mulf %864, %88 : vector<16x16xf32>
    %c1_i32_200 = arith.constant 1 : i32
    %866 = arith.addi %861, %c1_i32_200 : i32
    %867 = arith.index_cast %866 : i32 to index
    %868 = memref.load %arg2[%867] : memref<90xf32, #tpu.memory_space<smem>>
    %869 = vector.broadcast %868 : f32 to vector<16x16xf32>
    %870 = arith.mulf %869, %82 : vector<16x16xf32>
    %871 = arith.addf %865, %870 : vector<16x16xf32>
    %c2_i32_201 = arith.constant 2 : i32
    %872 = arith.addi %861, %c2_i32_201 : i32
    %873 = arith.index_cast %872 : i32 to index
    %874 = memref.load %arg2[%873] : memref<90xf32, #tpu.memory_space<smem>>
    %875 = vector.broadcast %874 : f32 to vector<16x16xf32>
    %876 = arith.mulf %875, %91 : vector<16x16xf32>
    %877 = arith.addf %871, %876 : vector<16x16xf32>
    %c3_i32_202 = arith.constant 3 : i32
    %878 = arith.addi %861, %c3_i32_202 : i32
    %879 = arith.index_cast %878 : i32 to index
    %880 = memref.load %arg2[%879] : memref<90xf32, #tpu.memory_space<smem>>
    %881 = vector.broadcast %880 : f32 to vector<16x16xf32>
    %882 = arith.mulf %881, %94 : vector<16x16xf32>
    %883 = arith.addf %877, %882 : vector<16x16xf32>
    %c4_i32_203 = arith.constant 4 : i32
    %884 = arith.addi %861, %c4_i32_203 : i32
    %885 = arith.index_cast %884 : i32 to index
    %886 = memref.load %arg2[%885] : memref<90xf32, #tpu.memory_space<smem>>
    %887 = vector.broadcast %886 : f32 to vector<16x16xf32>
    %888 = arith.mulf %887, %1 : vector<16x16xf32>
    %889 = arith.addf %883, %888 : vector<16x16xf32>
    %c5_i32_204 = arith.constant 5 : i32
    %890 = arith.addi %861, %c5_i32_204 : i32
    %891 = arith.index_cast %890 : i32 to index
    %892 = memref.load %arg2[%891] : memref<90xf32, #tpu.memory_space<smem>>
    %893 = vector.broadcast %892 : f32 to vector<16x16xf32>
    %894 = arith.mulf %893, %97 : vector<16x16xf32>
    %895 = arith.addf %889, %894 : vector<16x16xf32>
    %c6_i32_205 = arith.constant 6 : i32
    %896 = arith.addi %861, %c6_i32_205 : i32
    %897 = arith.index_cast %896 : i32 to index
    %898 = memref.load %arg2[%897] : memref<90xf32, #tpu.memory_space<smem>>
    %899 = vector.broadcast %898 : f32 to vector<16x16xf32>
    %900 = arith.mulf %899, %100 : vector<16x16xf32>
    %901 = arith.addf %895, %900 : vector<16x16xf32>
    %c7_i32_206 = arith.constant 7 : i32
    %902 = arith.addi %861, %c7_i32_206 : i32
    %903 = arith.index_cast %902 : i32 to index
    %904 = memref.load %arg2[%903] : memref<90xf32, #tpu.memory_space<smem>>
    %905 = vector.broadcast %904 : f32 to vector<16x16xf32>
    %906 = arith.mulf %905, %85 : vector<16x16xf32>
    %907 = arith.addf %901, %906 : vector<16x16xf32>
    %c8_i32_207 = arith.constant 8 : i32
    %908 = arith.addi %861, %c8_i32_207 : i32
    %909 = arith.index_cast %908 : i32 to index
    %910 = memref.load %arg2[%909] : memref<90xf32, #tpu.memory_space<smem>>
    %911 = vector.broadcast %910 : f32 to vector<16x16xf32>
    %912 = arith.mulf %911, %103 : vector<16x16xf32>
    %913 = arith.addf %907, %912 : vector<16x16xf32>
    %914 = arith.index_cast %c6_i32_198 : i32 to index
    %915 = memref.load %arg3[%914] : memref<10xf32, #tpu.memory_space<smem>>
    %916 = vector.broadcast %915 : f32 to vector<16x16xf32>
    %917 = arith.addf %913, %916 : vector<16x16xf32>
    %918 = math.tanh %917 : vector<16x16xf32>
    %c15_i32_208 = arith.constant 15 : i32
    %919 = tpu.dynamic_rotate %918 by %c15_i32_208 dim 0 : vector<16x16xf32>, i32 -> vector<16x16xf32>
    %c1_i32_209 = arith.constant 1 : i32
    %920 = tpu.dynamic_rotate %918 by %c1_i32_209 dim 0 : vector<16x16xf32>, i32 -> vector<16x16xf32>
    %921 = arith.select %61, %919, %920 : vector<16x16xi1>, vector<16x16xf32>
    %922 = arith.maximumf %918, %921 : vector<16x16xf32>
    %c15_i32_210 = arith.constant 15 : i32
    %923 = tpu.dynamic_rotate %922 by %c15_i32_210 dim 1 : vector<16x16xf32>, i32 -> vector<16x16xf32>
    %c1_i32_211 = arith.constant 1 : i32
    %924 = tpu.dynamic_rotate %922 by %c1_i32_211 dim 1 : vector<16x16xf32>, i32 -> vector<16x16xf32>
    %925 = arith.select %79, %923, %924 : vector<16x16xi1>, vector<16x16xf32>
    %926 = arith.maximumf %922, %925 : vector<16x16xf32>
    %c1_i32_212 = arith.constant 1 : i32
    %927 = tpu.dynamic_rotate %926 by %c1_i32_212 dim 1 : vector<16x16xf32>, i32 -> vector<16x16xf32>
    %cst_213 = arith.constant 0.000000e+00 : f32
    %928 = vector.broadcast %cst_213 : f32 to vector<16x16xf32>
    %929 = arith.select %41, %928, %927 : vector<16x16xi1>, vector<16x16xf32>
    %c15_i32_214 = arith.constant 15 : i32
    %930 = tpu.dynamic_rotate %926 by %c15_i32_214 dim 1 : vector<16x16xf32>, i32 -> vector<16x16xf32>
    %cst_215 = arith.constant 0.000000e+00 : f32
    %931 = vector.broadcast %cst_215 : f32 to vector<16x16xf32>
    %932 = arith.select %43, %931, %930 : vector<16x16xi1>, vector<16x16xf32>
    %c0_i32_216 = arith.constant 0 : i32
    %933 = arith.addi %861, %c0_i32_216 : i32
    %934 = arith.index_cast %933 : i32 to index
    %935 = memref.load %arg4[%934] : memref<90xf32, #tpu.memory_space<smem>>
    %936 = vector.broadcast %935 : f32 to vector<16x16xf32>
    %937 = arith.mulf %936, %929 : vector<16x16xf32>
    %c1_i32_217 = arith.constant 1 : i32
    %938 = arith.addi %861, %c1_i32_217 : i32
    %939 = arith.index_cast %938 : i32 to index
    %940 = memref.load %arg4[%939] : memref<90xf32, #tpu.memory_space<smem>>
    %941 = vector.broadcast %940 : f32 to vector<16x16xf32>
    %942 = arith.mulf %941, %926 : vector<16x16xf32>
    %943 = arith.addf %937, %942 : vector<16x16xf32>
    %c2_i32_218 = arith.constant 2 : i32
    %944 = arith.addi %861, %c2_i32_218 : i32
    %945 = arith.index_cast %944 : i32 to index
    %946 = memref.load %arg4[%945] : memref<90xf32, #tpu.memory_space<smem>>
    %947 = vector.broadcast %946 : f32 to vector<16x16xf32>
    %948 = arith.mulf %947, %932 : vector<16x16xf32>
    %949 = arith.addf %943, %948 : vector<16x16xf32>
    %950 = arith.addf %824, %949 : vector<16x16xf32>
    %c3_i32_219 = arith.constant 3 : i32
    %951 = arith.addi %861, %c3_i32_219 : i32
    %952 = arith.index_cast %951 : i32 to index
    %953 = memref.load %arg4[%952] : memref<90xf32, #tpu.memory_space<smem>>
    %954 = vector.broadcast %953 : f32 to vector<16x16xf32>
    %955 = arith.mulf %954, %929 : vector<16x16xf32>
    %c4_i32_220 = arith.constant 4 : i32
    %956 = arith.addi %861, %c4_i32_220 : i32
    %957 = arith.index_cast %956 : i32 to index
    %958 = memref.load %arg4[%957] : memref<90xf32, #tpu.memory_space<smem>>
    %959 = vector.broadcast %958 : f32 to vector<16x16xf32>
    %960 = arith.mulf %959, %926 : vector<16x16xf32>
    %961 = arith.addf %955, %960 : vector<16x16xf32>
    %c5_i32_221 = arith.constant 5 : i32
    %962 = arith.addi %861, %c5_i32_221 : i32
    %963 = arith.index_cast %962 : i32 to index
    %964 = memref.load %arg4[%963] : memref<90xf32, #tpu.memory_space<smem>>
    %965 = vector.broadcast %964 : f32 to vector<16x16xf32>
    %966 = arith.mulf %965, %932 : vector<16x16xf32>
    %967 = arith.addf %961, %966 : vector<16x16xf32>
    %968 = arith.addf %842, %967 : vector<16x16xf32>
    %c6_i32_222 = arith.constant 6 : i32
    %969 = arith.addi %861, %c6_i32_222 : i32
    %970 = arith.index_cast %969 : i32 to index
    %971 = memref.load %arg4[%970] : memref<90xf32, #tpu.memory_space<smem>>
    %972 = vector.broadcast %971 : f32 to vector<16x16xf32>
    %973 = arith.mulf %972, %929 : vector<16x16xf32>
    %c7_i32_223 = arith.constant 7 : i32
    %974 = arith.addi %861, %c7_i32_223 : i32
    %975 = arith.index_cast %974 : i32 to index
    %976 = memref.load %arg4[%975] : memref<90xf32, #tpu.memory_space<smem>>
    %977 = vector.broadcast %976 : f32 to vector<16x16xf32>
    %978 = arith.mulf %977, %926 : vector<16x16xf32>
    %979 = arith.addf %973, %978 : vector<16x16xf32>
    %c8_i32_224 = arith.constant 8 : i32
    %980 = arith.addi %861, %c8_i32_224 : i32
    %981 = arith.index_cast %980 : i32 to index
    %982 = memref.load %arg4[%981] : memref<90xf32, #tpu.memory_space<smem>>
    %983 = vector.broadcast %982 : f32 to vector<16x16xf32>
    %984 = arith.mulf %983, %932 : vector<16x16xf32>
    %985 = arith.addf %979, %984 : vector<16x16xf32>
    %986 = arith.addf %860, %985 : vector<16x16xf32>
    %c7_i32_225 = arith.constant 7 : i32
    %c9_i32_226 = arith.constant 9 : i32
    %987 = arith.muli %c7_i32_225, %c9_i32_226 : i32
    %988 = arith.index_cast %987 : i32 to index
    %989 = memref.load %arg2[%988] : memref<90xf32, #tpu.memory_space<smem>>
    %990 = vector.broadcast %989 : f32 to vector<16x16xf32>
    %991 = arith.mulf %990, %88 : vector<16x16xf32>
    %c1_i32_227 = arith.constant 1 : i32
    %992 = arith.addi %987, %c1_i32_227 : i32
    %993 = arith.index_cast %992 : i32 to index
    %994 = memref.load %arg2[%993] : memref<90xf32, #tpu.memory_space<smem>>
    %995 = vector.broadcast %994 : f32 to vector<16x16xf32>
    %996 = arith.mulf %995, %82 : vector<16x16xf32>
    %997 = arith.addf %991, %996 : vector<16x16xf32>
    %c2_i32_228 = arith.constant 2 : i32
    %998 = arith.addi %987, %c2_i32_228 : i32
    %999 = arith.index_cast %998 : i32 to index
    %1000 = memref.load %arg2[%999] : memref<90xf32, #tpu.memory_space<smem>>
    %1001 = vector.broadcast %1000 : f32 to vector<16x16xf32>
    %1002 = arith.mulf %1001, %91 : vector<16x16xf32>
    %1003 = arith.addf %997, %1002 : vector<16x16xf32>
    %c3_i32_229 = arith.constant 3 : i32
    %1004 = arith.addi %987, %c3_i32_229 : i32
    %1005 = arith.index_cast %1004 : i32 to index
    %1006 = memref.load %arg2[%1005] : memref<90xf32, #tpu.memory_space<smem>>
    %1007 = vector.broadcast %1006 : f32 to vector<16x16xf32>
    %1008 = arith.mulf %1007, %94 : vector<16x16xf32>
    %1009 = arith.addf %1003, %1008 : vector<16x16xf32>
    %c4_i32_230 = arith.constant 4 : i32
    %1010 = arith.addi %987, %c4_i32_230 : i32
    %1011 = arith.index_cast %1010 : i32 to index
    %1012 = memref.load %arg2[%1011] : memref<90xf32, #tpu.memory_space<smem>>
    %1013 = vector.broadcast %1012 : f32 to vector<16x16xf32>
    %1014 = arith.mulf %1013, %1 : vector<16x16xf32>
    %1015 = arith.addf %1009, %1014 : vector<16x16xf32>
    %c5_i32_231 = arith.constant 5 : i32
    %1016 = arith.addi %987, %c5_i32_231 : i32
    %1017 = arith.index_cast %1016 : i32 to index
    %1018 = memref.load %arg2[%1017] : memref<90xf32, #tpu.memory_space<smem>>
    %1019 = vector.broadcast %1018 : f32 to vector<16x16xf32>
    %1020 = arith.mulf %1019, %97 : vector<16x16xf32>
    %1021 = arith.addf %1015, %1020 : vector<16x16xf32>
    %c6_i32_232 = arith.constant 6 : i32
    %1022 = arith.addi %987, %c6_i32_232 : i32
    %1023 = arith.index_cast %1022 : i32 to index
    %1024 = memref.load %arg2[%1023] : memref<90xf32, #tpu.memory_space<smem>>
    %1025 = vector.broadcast %1024 : f32 to vector<16x16xf32>
    %1026 = arith.mulf %1025, %100 : vector<16x16xf32>
    %1027 = arith.addf %1021, %1026 : vector<16x16xf32>
    %c7_i32_233 = arith.constant 7 : i32
    %1028 = arith.addi %987, %c7_i32_233 : i32
    %1029 = arith.index_cast %1028 : i32 to index
    %1030 = memref.load %arg2[%1029] : memref<90xf32, #tpu.memory_space<smem>>
    %1031 = vector.broadcast %1030 : f32 to vector<16x16xf32>
    %1032 = arith.mulf %1031, %85 : vector<16x16xf32>
    %1033 = arith.addf %1027, %1032 : vector<16x16xf32>
    %c8_i32_234 = arith.constant 8 : i32
    %1034 = arith.addi %987, %c8_i32_234 : i32
    %1035 = arith.index_cast %1034 : i32 to index
    %1036 = memref.load %arg2[%1035] : memref<90xf32, #tpu.memory_space<smem>>
    %1037 = vector.broadcast %1036 : f32 to vector<16x16xf32>
    %1038 = arith.mulf %1037, %103 : vector<16x16xf32>
    %1039 = arith.addf %1033, %1038 : vector<16x16xf32>
    %1040 = arith.index_cast %c7_i32_225 : i32 to index
    %1041 = memref.load %arg3[%1040] : memref<10xf32, #tpu.memory_space<smem>>
    %1042 = vector.broadcast %1041 : f32 to vector<16x16xf32>
    %1043 = arith.addf %1039, %1042 : vector<16x16xf32>
    %1044 = math.tanh %1043 : vector<16x16xf32>
    %c15_i32_235 = arith.constant 15 : i32
    %1045 = tpu.dynamic_rotate %1044 by %c15_i32_235 dim 0 : vector<16x16xf32>, i32 -> vector<16x16xf32>
    %c1_i32_236 = arith.constant 1 : i32
    %1046 = tpu.dynamic_rotate %1044 by %c1_i32_236 dim 0 : vector<16x16xf32>, i32 -> vector<16x16xf32>
    %1047 = arith.select %61, %1045, %1046 : vector<16x16xi1>, vector<16x16xf32>
    %1048 = arith.maximumf %1044, %1047 : vector<16x16xf32>
    %c15_i32_237 = arith.constant 15 : i32
    %1049 = tpu.dynamic_rotate %1048 by %c15_i32_237 dim 1 : vector<16x16xf32>, i32 -> vector<16x16xf32>
    %c1_i32_238 = arith.constant 1 : i32
    %1050 = tpu.dynamic_rotate %1048 by %c1_i32_238 dim 1 : vector<16x16xf32>, i32 -> vector<16x16xf32>
    %1051 = arith.select %79, %1049, %1050 : vector<16x16xi1>, vector<16x16xf32>
    %1052 = arith.maximumf %1048, %1051 : vector<16x16xf32>
    %c1_i32_239 = arith.constant 1 : i32
    %1053 = tpu.dynamic_rotate %1052 by %c1_i32_239 dim 1 : vector<16x16xf32>, i32 -> vector<16x16xf32>
    %cst_240 = arith.constant 0.000000e+00 : f32
    %1054 = vector.broadcast %cst_240 : f32 to vector<16x16xf32>
    %1055 = arith.select %41, %1054, %1053 : vector<16x16xi1>, vector<16x16xf32>
    %c15_i32_241 = arith.constant 15 : i32
    %1056 = tpu.dynamic_rotate %1052 by %c15_i32_241 dim 1 : vector<16x16xf32>, i32 -> vector<16x16xf32>
    %cst_242 = arith.constant 0.000000e+00 : f32
    %1057 = vector.broadcast %cst_242 : f32 to vector<16x16xf32>
    %1058 = arith.select %43, %1057, %1056 : vector<16x16xi1>, vector<16x16xf32>
    %c0_i32_243 = arith.constant 0 : i32
    %1059 = arith.addi %987, %c0_i32_243 : i32
    %1060 = arith.index_cast %1059 : i32 to index
    %1061 = memref.load %arg4[%1060] : memref<90xf32, #tpu.memory_space<smem>>
    %1062 = vector.broadcast %1061 : f32 to vector<16x16xf32>
    %1063 = arith.mulf %1062, %1055 : vector<16x16xf32>
    %c1_i32_244 = arith.constant 1 : i32
    %1064 = arith.addi %987, %c1_i32_244 : i32
    %1065 = arith.index_cast %1064 : i32 to index
    %1066 = memref.load %arg4[%1065] : memref<90xf32, #tpu.memory_space<smem>>
    %1067 = vector.broadcast %1066 : f32 to vector<16x16xf32>
    %1068 = arith.mulf %1067, %1052 : vector<16x16xf32>
    %1069 = arith.addf %1063, %1068 : vector<16x16xf32>
    %c2_i32_245 = arith.constant 2 : i32
    %1070 = arith.addi %987, %c2_i32_245 : i32
    %1071 = arith.index_cast %1070 : i32 to index
    %1072 = memref.load %arg4[%1071] : memref<90xf32, #tpu.memory_space<smem>>
    %1073 = vector.broadcast %1072 : f32 to vector<16x16xf32>
    %1074 = arith.mulf %1073, %1058 : vector<16x16xf32>
    %1075 = arith.addf %1069, %1074 : vector<16x16xf32>
    %1076 = arith.addf %950, %1075 : vector<16x16xf32>
    %c3_i32_246 = arith.constant 3 : i32
    %1077 = arith.addi %987, %c3_i32_246 : i32
    %1078 = arith.index_cast %1077 : i32 to index
    %1079 = memref.load %arg4[%1078] : memref<90xf32, #tpu.memory_space<smem>>
    %1080 = vector.broadcast %1079 : f32 to vector<16x16xf32>
    %1081 = arith.mulf %1080, %1055 : vector<16x16xf32>
    %c4_i32_247 = arith.constant 4 : i32
    %1082 = arith.addi %987, %c4_i32_247 : i32
    %1083 = arith.index_cast %1082 : i32 to index
    %1084 = memref.load %arg4[%1083] : memref<90xf32, #tpu.memory_space<smem>>
    %1085 = vector.broadcast %1084 : f32 to vector<16x16xf32>
    %1086 = arith.mulf %1085, %1052 : vector<16x16xf32>
    %1087 = arith.addf %1081, %1086 : vector<16x16xf32>
    %c5_i32_248 = arith.constant 5 : i32
    %1088 = arith.addi %987, %c5_i32_248 : i32
    %1089 = arith.index_cast %1088 : i32 to index
    %1090 = memref.load %arg4[%1089] : memref<90xf32, #tpu.memory_space<smem>>
    %1091 = vector.broadcast %1090 : f32 to vector<16x16xf32>
    %1092 = arith.mulf %1091, %1058 : vector<16x16xf32>
    %1093 = arith.addf %1087, %1092 : vector<16x16xf32>
    %1094 = arith.addf %968, %1093 : vector<16x16xf32>
    %c6_i32_249 = arith.constant 6 : i32
    %1095 = arith.addi %987, %c6_i32_249 : i32
    %1096 = arith.index_cast %1095 : i32 to index
    %1097 = memref.load %arg4[%1096] : memref<90xf32, #tpu.memory_space<smem>>
    %1098 = vector.broadcast %1097 : f32 to vector<16x16xf32>
    %1099 = arith.mulf %1098, %1055 : vector<16x16xf32>
    %c7_i32_250 = arith.constant 7 : i32
    %1100 = arith.addi %987, %c7_i32_250 : i32
    %1101 = arith.index_cast %1100 : i32 to index
    %1102 = memref.load %arg4[%1101] : memref<90xf32, #tpu.memory_space<smem>>
    %1103 = vector.broadcast %1102 : f32 to vector<16x16xf32>
    %1104 = arith.mulf %1103, %1052 : vector<16x16xf32>
    %1105 = arith.addf %1099, %1104 : vector<16x16xf32>
    %c8_i32_251 = arith.constant 8 : i32
    %1106 = arith.addi %987, %c8_i32_251 : i32
    %1107 = arith.index_cast %1106 : i32 to index
    %1108 = memref.load %arg4[%1107] : memref<90xf32, #tpu.memory_space<smem>>
    %1109 = vector.broadcast %1108 : f32 to vector<16x16xf32>
    %1110 = arith.mulf %1109, %1058 : vector<16x16xf32>
    %1111 = arith.addf %1105, %1110 : vector<16x16xf32>
    %1112 = arith.addf %986, %1111 : vector<16x16xf32>
    %c8_i32_252 = arith.constant 8 : i32
    %c9_i32_253 = arith.constant 9 : i32
    %1113 = arith.muli %c8_i32_252, %c9_i32_253 : i32
    %1114 = arith.index_cast %1113 : i32 to index
    %1115 = memref.load %arg2[%1114] : memref<90xf32, #tpu.memory_space<smem>>
    %1116 = vector.broadcast %1115 : f32 to vector<16x16xf32>
    %1117 = arith.mulf %1116, %88 : vector<16x16xf32>
    %c1_i32_254 = arith.constant 1 : i32
    %1118 = arith.addi %1113, %c1_i32_254 : i32
    %1119 = arith.index_cast %1118 : i32 to index
    %1120 = memref.load %arg2[%1119] : memref<90xf32, #tpu.memory_space<smem>>
    %1121 = vector.broadcast %1120 : f32 to vector<16x16xf32>
    %1122 = arith.mulf %1121, %82 : vector<16x16xf32>
    %1123 = arith.addf %1117, %1122 : vector<16x16xf32>
    %c2_i32_255 = arith.constant 2 : i32
    %1124 = arith.addi %1113, %c2_i32_255 : i32
    %1125 = arith.index_cast %1124 : i32 to index
    %1126 = memref.load %arg2[%1125] : memref<90xf32, #tpu.memory_space<smem>>
    %1127 = vector.broadcast %1126 : f32 to vector<16x16xf32>
    %1128 = arith.mulf %1127, %91 : vector<16x16xf32>
    %1129 = arith.addf %1123, %1128 : vector<16x16xf32>
    %c3_i32_256 = arith.constant 3 : i32
    %1130 = arith.addi %1113, %c3_i32_256 : i32
    %1131 = arith.index_cast %1130 : i32 to index
    %1132 = memref.load %arg2[%1131] : memref<90xf32, #tpu.memory_space<smem>>
    %1133 = vector.broadcast %1132 : f32 to vector<16x16xf32>
    %1134 = arith.mulf %1133, %94 : vector<16x16xf32>
    %1135 = arith.addf %1129, %1134 : vector<16x16xf32>
    %c4_i32_257 = arith.constant 4 : i32
    %1136 = arith.addi %1113, %c4_i32_257 : i32
    %1137 = arith.index_cast %1136 : i32 to index
    %1138 = memref.load %arg2[%1137] : memref<90xf32, #tpu.memory_space<smem>>
    %1139 = vector.broadcast %1138 : f32 to vector<16x16xf32>
    %1140 = arith.mulf %1139, %1 : vector<16x16xf32>
    %1141 = arith.addf %1135, %1140 : vector<16x16xf32>
    %c5_i32_258 = arith.constant 5 : i32
    %1142 = arith.addi %1113, %c5_i32_258 : i32
    %1143 = arith.index_cast %1142 : i32 to index
    %1144 = memref.load %arg2[%1143] : memref<90xf32, #tpu.memory_space<smem>>
    %1145 = vector.broadcast %1144 : f32 to vector<16x16xf32>
    %1146 = arith.mulf %1145, %97 : vector<16x16xf32>
    %1147 = arith.addf %1141, %1146 : vector<16x16xf32>
    %c6_i32_259 = arith.constant 6 : i32
    %1148 = arith.addi %1113, %c6_i32_259 : i32
    %1149 = arith.index_cast %1148 : i32 to index
    %1150 = memref.load %arg2[%1149] : memref<90xf32, #tpu.memory_space<smem>>
    %1151 = vector.broadcast %1150 : f32 to vector<16x16xf32>
    %1152 = arith.mulf %1151, %100 : vector<16x16xf32>
    %1153 = arith.addf %1147, %1152 : vector<16x16xf32>
    %c7_i32_260 = arith.constant 7 : i32
    %1154 = arith.addi %1113, %c7_i32_260 : i32
    %1155 = arith.index_cast %1154 : i32 to index
    %1156 = memref.load %arg2[%1155] : memref<90xf32, #tpu.memory_space<smem>>
    %1157 = vector.broadcast %1156 : f32 to vector<16x16xf32>
    %1158 = arith.mulf %1157, %85 : vector<16x16xf32>
    %1159 = arith.addf %1153, %1158 : vector<16x16xf32>
    %c8_i32_261 = arith.constant 8 : i32
    %1160 = arith.addi %1113, %c8_i32_261 : i32
    %1161 = arith.index_cast %1160 : i32 to index
    %1162 = memref.load %arg2[%1161] : memref<90xf32, #tpu.memory_space<smem>>
    %1163 = vector.broadcast %1162 : f32 to vector<16x16xf32>
    %1164 = arith.mulf %1163, %103 : vector<16x16xf32>
    %1165 = arith.addf %1159, %1164 : vector<16x16xf32>
    %1166 = arith.index_cast %c8_i32_252 : i32 to index
    %1167 = memref.load %arg3[%1166] : memref<10xf32, #tpu.memory_space<smem>>
    %1168 = vector.broadcast %1167 : f32 to vector<16x16xf32>
    %1169 = arith.addf %1165, %1168 : vector<16x16xf32>
    %1170 = math.tanh %1169 : vector<16x16xf32>
    %c15_i32_262 = arith.constant 15 : i32
    %1171 = tpu.dynamic_rotate %1170 by %c15_i32_262 dim 0 : vector<16x16xf32>, i32 -> vector<16x16xf32>
    %c1_i32_263 = arith.constant 1 : i32
    %1172 = tpu.dynamic_rotate %1170 by %c1_i32_263 dim 0 : vector<16x16xf32>, i32 -> vector<16x16xf32>
    %1173 = arith.select %61, %1171, %1172 : vector<16x16xi1>, vector<16x16xf32>
    %1174 = arith.maximumf %1170, %1173 : vector<16x16xf32>
    %c15_i32_264 = arith.constant 15 : i32
    %1175 = tpu.dynamic_rotate %1174 by %c15_i32_264 dim 1 : vector<16x16xf32>, i32 -> vector<16x16xf32>
    %c1_i32_265 = arith.constant 1 : i32
    %1176 = tpu.dynamic_rotate %1174 by %c1_i32_265 dim 1 : vector<16x16xf32>, i32 -> vector<16x16xf32>
    %1177 = arith.select %79, %1175, %1176 : vector<16x16xi1>, vector<16x16xf32>
    %1178 = arith.maximumf %1174, %1177 : vector<16x16xf32>
    %c1_i32_266 = arith.constant 1 : i32
    %1179 = tpu.dynamic_rotate %1178 by %c1_i32_266 dim 1 : vector<16x16xf32>, i32 -> vector<16x16xf32>
    %cst_267 = arith.constant 0.000000e+00 : f32
    %1180 = vector.broadcast %cst_267 : f32 to vector<16x16xf32>
    %1181 = arith.select %41, %1180, %1179 : vector<16x16xi1>, vector<16x16xf32>
    %c15_i32_268 = arith.constant 15 : i32
    %1182 = tpu.dynamic_rotate %1178 by %c15_i32_268 dim 1 : vector<16x16xf32>, i32 -> vector<16x16xf32>
    %cst_269 = arith.constant 0.000000e+00 : f32
    %1183 = vector.broadcast %cst_269 : f32 to vector<16x16xf32>
    %1184 = arith.select %43, %1183, %1182 : vector<16x16xi1>, vector<16x16xf32>
    %c0_i32_270 = arith.constant 0 : i32
    %1185 = arith.addi %1113, %c0_i32_270 : i32
    %1186 = arith.index_cast %1185 : i32 to index
    %1187 = memref.load %arg4[%1186] : memref<90xf32, #tpu.memory_space<smem>>
    %1188 = vector.broadcast %1187 : f32 to vector<16x16xf32>
    %1189 = arith.mulf %1188, %1181 : vector<16x16xf32>
    %c1_i32_271 = arith.constant 1 : i32
    %1190 = arith.addi %1113, %c1_i32_271 : i32
    %1191 = arith.index_cast %1190 : i32 to index
    %1192 = memref.load %arg4[%1191] : memref<90xf32, #tpu.memory_space<smem>>
    %1193 = vector.broadcast %1192 : f32 to vector<16x16xf32>
    %1194 = arith.mulf %1193, %1178 : vector<16x16xf32>
    %1195 = arith.addf %1189, %1194 : vector<16x16xf32>
    %c2_i32_272 = arith.constant 2 : i32
    %1196 = arith.addi %1113, %c2_i32_272 : i32
    %1197 = arith.index_cast %1196 : i32 to index
    %1198 = memref.load %arg4[%1197] : memref<90xf32, #tpu.memory_space<smem>>
    %1199 = vector.broadcast %1198 : f32 to vector<16x16xf32>
    %1200 = arith.mulf %1199, %1184 : vector<16x16xf32>
    %1201 = arith.addf %1195, %1200 : vector<16x16xf32>
    %1202 = arith.addf %1076, %1201 : vector<16x16xf32>
    %c3_i32_273 = arith.constant 3 : i32
    %1203 = arith.addi %1113, %c3_i32_273 : i32
    %1204 = arith.index_cast %1203 : i32 to index
    %1205 = memref.load %arg4[%1204] : memref<90xf32, #tpu.memory_space<smem>>
    %1206 = vector.broadcast %1205 : f32 to vector<16x16xf32>
    %1207 = arith.mulf %1206, %1181 : vector<16x16xf32>
    %c4_i32_274 = arith.constant 4 : i32
    %1208 = arith.addi %1113, %c4_i32_274 : i32
    %1209 = arith.index_cast %1208 : i32 to index
    %1210 = memref.load %arg4[%1209] : memref<90xf32, #tpu.memory_space<smem>>
    %1211 = vector.broadcast %1210 : f32 to vector<16x16xf32>
    %1212 = arith.mulf %1211, %1178 : vector<16x16xf32>
    %1213 = arith.addf %1207, %1212 : vector<16x16xf32>
    %c5_i32_275 = arith.constant 5 : i32
    %1214 = arith.addi %1113, %c5_i32_275 : i32
    %1215 = arith.index_cast %1214 : i32 to index
    %1216 = memref.load %arg4[%1215] : memref<90xf32, #tpu.memory_space<smem>>
    %1217 = vector.broadcast %1216 : f32 to vector<16x16xf32>
    %1218 = arith.mulf %1217, %1184 : vector<16x16xf32>
    %1219 = arith.addf %1213, %1218 : vector<16x16xf32>
    %1220 = arith.addf %1094, %1219 : vector<16x16xf32>
    %c6_i32_276 = arith.constant 6 : i32
    %1221 = arith.addi %1113, %c6_i32_276 : i32
    %1222 = arith.index_cast %1221 : i32 to index
    %1223 = memref.load %arg4[%1222] : memref<90xf32, #tpu.memory_space<smem>>
    %1224 = vector.broadcast %1223 : f32 to vector<16x16xf32>
    %1225 = arith.mulf %1224, %1181 : vector<16x16xf32>
    %c7_i32_277 = arith.constant 7 : i32
    %1226 = arith.addi %1113, %c7_i32_277 : i32
    %1227 = arith.index_cast %1226 : i32 to index
    %1228 = memref.load %arg4[%1227] : memref<90xf32, #tpu.memory_space<smem>>
    %1229 = vector.broadcast %1228 : f32 to vector<16x16xf32>
    %1230 = arith.mulf %1229, %1178 : vector<16x16xf32>
    %1231 = arith.addf %1225, %1230 : vector<16x16xf32>
    %c8_i32_278 = arith.constant 8 : i32
    %1232 = arith.addi %1113, %c8_i32_278 : i32
    %1233 = arith.index_cast %1232 : i32 to index
    %1234 = memref.load %arg4[%1233] : memref<90xf32, #tpu.memory_space<smem>>
    %1235 = vector.broadcast %1234 : f32 to vector<16x16xf32>
    %1236 = arith.mulf %1235, %1184 : vector<16x16xf32>
    %1237 = arith.addf %1231, %1236 : vector<16x16xf32>
    %1238 = arith.addf %1112, %1237 : vector<16x16xf32>
    %c9_i32_279 = arith.constant 9 : i32
    %c9_i32_280 = arith.constant 9 : i32
    %1239 = arith.muli %c9_i32_279, %c9_i32_280 : i32
    %1240 = arith.index_cast %1239 : i32 to index
    %1241 = memref.load %arg2[%1240] : memref<90xf32, #tpu.memory_space<smem>>
    %1242 = vector.broadcast %1241 : f32 to vector<16x16xf32>
    %1243 = arith.mulf %1242, %88 : vector<16x16xf32>
    %c1_i32_281 = arith.constant 1 : i32
    %1244 = arith.addi %1239, %c1_i32_281 : i32
    %1245 = arith.index_cast %1244 : i32 to index
    %1246 = memref.load %arg2[%1245] : memref<90xf32, #tpu.memory_space<smem>>
    %1247 = vector.broadcast %1246 : f32 to vector<16x16xf32>
    %1248 = arith.mulf %1247, %82 : vector<16x16xf32>
    %1249 = arith.addf %1243, %1248 : vector<16x16xf32>
    %c2_i32_282 = arith.constant 2 : i32
    %1250 = arith.addi %1239, %c2_i32_282 : i32
    %1251 = arith.index_cast %1250 : i32 to index
    %1252 = memref.load %arg2[%1251] : memref<90xf32, #tpu.memory_space<smem>>
    %1253 = vector.broadcast %1252 : f32 to vector<16x16xf32>
    %1254 = arith.mulf %1253, %91 : vector<16x16xf32>
    %1255 = arith.addf %1249, %1254 : vector<16x16xf32>
    %c3_i32_283 = arith.constant 3 : i32
    %1256 = arith.addi %1239, %c3_i32_283 : i32
    %1257 = arith.index_cast %1256 : i32 to index
    %1258 = memref.load %arg2[%1257] : memref<90xf32, #tpu.memory_space<smem>>
    %1259 = vector.broadcast %1258 : f32 to vector<16x16xf32>
    %1260 = arith.mulf %1259, %94 : vector<16x16xf32>
    %1261 = arith.addf %1255, %1260 : vector<16x16xf32>
    %c4_i32_284 = arith.constant 4 : i32
    %1262 = arith.addi %1239, %c4_i32_284 : i32
    %1263 = arith.index_cast %1262 : i32 to index
    %1264 = memref.load %arg2[%1263] : memref<90xf32, #tpu.memory_space<smem>>
    %1265 = vector.broadcast %1264 : f32 to vector<16x16xf32>
    %1266 = arith.mulf %1265, %1 : vector<16x16xf32>
    %1267 = arith.addf %1261, %1266 : vector<16x16xf32>
    %c5_i32_285 = arith.constant 5 : i32
    %1268 = arith.addi %1239, %c5_i32_285 : i32
    %1269 = arith.index_cast %1268 : i32 to index
    %1270 = memref.load %arg2[%1269] : memref<90xf32, #tpu.memory_space<smem>>
    %1271 = vector.broadcast %1270 : f32 to vector<16x16xf32>
    %1272 = arith.mulf %1271, %97 : vector<16x16xf32>
    %1273 = arith.addf %1267, %1272 : vector<16x16xf32>
    %c6_i32_286 = arith.constant 6 : i32
    %1274 = arith.addi %1239, %c6_i32_286 : i32
    %1275 = arith.index_cast %1274 : i32 to index
    %1276 = memref.load %arg2[%1275] : memref<90xf32, #tpu.memory_space<smem>>
    %1277 = vector.broadcast %1276 : f32 to vector<16x16xf32>
    %1278 = arith.mulf %1277, %100 : vector<16x16xf32>
    %1279 = arith.addf %1273, %1278 : vector<16x16xf32>
    %c7_i32_287 = arith.constant 7 : i32
    %1280 = arith.addi %1239, %c7_i32_287 : i32
    %1281 = arith.index_cast %1280 : i32 to index
    %1282 = memref.load %arg2[%1281] : memref<90xf32, #tpu.memory_space<smem>>
    %1283 = vector.broadcast %1282 : f32 to vector<16x16xf32>
    %1284 = arith.mulf %1283, %85 : vector<16x16xf32>
    %1285 = arith.addf %1279, %1284 : vector<16x16xf32>
    %c8_i32_288 = arith.constant 8 : i32
    %1286 = arith.addi %1239, %c8_i32_288 : i32
    %1287 = arith.index_cast %1286 : i32 to index
    %1288 = memref.load %arg2[%1287] : memref<90xf32, #tpu.memory_space<smem>>
    %1289 = vector.broadcast %1288 : f32 to vector<16x16xf32>
    %1290 = arith.mulf %1289, %103 : vector<16x16xf32>
    %1291 = arith.addf %1285, %1290 : vector<16x16xf32>
    %1292 = arith.index_cast %c9_i32_279 : i32 to index
    %1293 = memref.load %arg3[%1292] : memref<10xf32, #tpu.memory_space<smem>>
    %1294 = vector.broadcast %1293 : f32 to vector<16x16xf32>
    %1295 = arith.addf %1291, %1294 : vector<16x16xf32>
    %1296 = math.tanh %1295 : vector<16x16xf32>
    %c15_i32_289 = arith.constant 15 : i32
    %1297 = tpu.dynamic_rotate %1296 by %c15_i32_289 dim 0 : vector<16x16xf32>, i32 -> vector<16x16xf32>
    %c1_i32_290 = arith.constant 1 : i32
    %1298 = tpu.dynamic_rotate %1296 by %c1_i32_290 dim 0 : vector<16x16xf32>, i32 -> vector<16x16xf32>
    %1299 = arith.select %61, %1297, %1298 : vector<16x16xi1>, vector<16x16xf32>
    %1300 = arith.maximumf %1296, %1299 : vector<16x16xf32>
    %c15_i32_291 = arith.constant 15 : i32
    %1301 = tpu.dynamic_rotate %1300 by %c15_i32_291 dim 1 : vector<16x16xf32>, i32 -> vector<16x16xf32>
    %c1_i32_292 = arith.constant 1 : i32
    %1302 = tpu.dynamic_rotate %1300 by %c1_i32_292 dim 1 : vector<16x16xf32>, i32 -> vector<16x16xf32>
    %1303 = arith.select %79, %1301, %1302 : vector<16x16xi1>, vector<16x16xf32>
    %1304 = arith.maximumf %1300, %1303 : vector<16x16xf32>
    %c1_i32_293 = arith.constant 1 : i32
    %1305 = tpu.dynamic_rotate %1304 by %c1_i32_293 dim 1 : vector<16x16xf32>, i32 -> vector<16x16xf32>
    %cst_294 = arith.constant 0.000000e+00 : f32
    %1306 = vector.broadcast %cst_294 : f32 to vector<16x16xf32>
    %1307 = arith.select %41, %1306, %1305 : vector<16x16xi1>, vector<16x16xf32>
    %c15_i32_295 = arith.constant 15 : i32
    %1308 = tpu.dynamic_rotate %1304 by %c15_i32_295 dim 1 : vector<16x16xf32>, i32 -> vector<16x16xf32>
    %cst_296 = arith.constant 0.000000e+00 : f32
    %1309 = vector.broadcast %cst_296 : f32 to vector<16x16xf32>
    %1310 = arith.select %43, %1309, %1308 : vector<16x16xi1>, vector<16x16xf32>
    %c0_i32_297 = arith.constant 0 : i32
    %1311 = arith.addi %1239, %c0_i32_297 : i32
    %1312 = arith.index_cast %1311 : i32 to index
    %1313 = memref.load %arg4[%1312] : memref<90xf32, #tpu.memory_space<smem>>
    %1314 = vector.broadcast %1313 : f32 to vector<16x16xf32>
    %1315 = arith.mulf %1314, %1307 : vector<16x16xf32>
    %c1_i32_298 = arith.constant 1 : i32
    %1316 = arith.addi %1239, %c1_i32_298 : i32
    %1317 = arith.index_cast %1316 : i32 to index
    %1318 = memref.load %arg4[%1317] : memref<90xf32, #tpu.memory_space<smem>>
    %1319 = vector.broadcast %1318 : f32 to vector<16x16xf32>
    %1320 = arith.mulf %1319, %1304 : vector<16x16xf32>
    %1321 = arith.addf %1315, %1320 : vector<16x16xf32>
    %c2_i32_299 = arith.constant 2 : i32
    %1322 = arith.addi %1239, %c2_i32_299 : i32
    %1323 = arith.index_cast %1322 : i32 to index
    %1324 = memref.load %arg4[%1323] : memref<90xf32, #tpu.memory_space<smem>>
    %1325 = vector.broadcast %1324 : f32 to vector<16x16xf32>
    %1326 = arith.mulf %1325, %1310 : vector<16x16xf32>
    %1327 = arith.addf %1321, %1326 : vector<16x16xf32>
    %1328 = arith.addf %1202, %1327 : vector<16x16xf32>
    %c3_i32_300 = arith.constant 3 : i32
    %1329 = arith.addi %1239, %c3_i32_300 : i32
    %1330 = arith.index_cast %1329 : i32 to index
    %1331 = memref.load %arg4[%1330] : memref<90xf32, #tpu.memory_space<smem>>
    %1332 = vector.broadcast %1331 : f32 to vector<16x16xf32>
    %1333 = arith.mulf %1332, %1307 : vector<16x16xf32>
    %c4_i32_301 = arith.constant 4 : i32
    %1334 = arith.addi %1239, %c4_i32_301 : i32
    %1335 = arith.index_cast %1334 : i32 to index
    %1336 = memref.load %arg4[%1335] : memref<90xf32, #tpu.memory_space<smem>>
    %1337 = vector.broadcast %1336 : f32 to vector<16x16xf32>
    %1338 = arith.mulf %1337, %1304 : vector<16x16xf32>
    %1339 = arith.addf %1333, %1338 : vector<16x16xf32>
    %c5_i32_302 = arith.constant 5 : i32
    %1340 = arith.addi %1239, %c5_i32_302 : i32
    %1341 = arith.index_cast %1340 : i32 to index
    %1342 = memref.load %arg4[%1341] : memref<90xf32, #tpu.memory_space<smem>>
    %1343 = vector.broadcast %1342 : f32 to vector<16x16xf32>
    %1344 = arith.mulf %1343, %1310 : vector<16x16xf32>
    %1345 = arith.addf %1339, %1344 : vector<16x16xf32>
    %1346 = arith.addf %1220, %1345 : vector<16x16xf32>
    %c6_i32_303 = arith.constant 6 : i32
    %1347 = arith.addi %1239, %c6_i32_303 : i32
    %1348 = arith.index_cast %1347 : i32 to index
    %1349 = memref.load %arg4[%1348] : memref<90xf32, #tpu.memory_space<smem>>
    %1350 = vector.broadcast %1349 : f32 to vector<16x16xf32>
    %1351 = arith.mulf %1350, %1307 : vector<16x16xf32>
    %c7_i32_304 = arith.constant 7 : i32
    %1352 = arith.addi %1239, %c7_i32_304 : i32
    %1353 = arith.index_cast %1352 : i32 to index
    %1354 = memref.load %arg4[%1353] : memref<90xf32, #tpu.memory_space<smem>>
    %1355 = vector.broadcast %1354 : f32 to vector<16x16xf32>
    %1356 = arith.mulf %1355, %1304 : vector<16x16xf32>
    %1357 = arith.addf %1351, %1356 : vector<16x16xf32>
    %c8_i32_305 = arith.constant 8 : i32
    %1358 = arith.addi %1239, %c8_i32_305 : i32
    %1359 = arith.index_cast %1358 : i32 to index
    %1360 = memref.load %arg4[%1359] : memref<90xf32, #tpu.memory_space<smem>>
    %1361 = vector.broadcast %1360 : f32 to vector<16x16xf32>
    %1362 = arith.mulf %1361, %1310 : vector<16x16xf32>
    %1363 = arith.addf %1357, %1362 : vector<16x16xf32>
    %1364 = arith.addf %1238, %1363 : vector<16x16xf32>
    %c10_i32 = arith.constant 10 : i32
    %c1_i32_306 = arith.constant 1 : i32
    %1365 = tpu.dynamic_rotate %1328 by %c1_i32_306 dim 0 : vector<16x16xf32>, i32 -> vector<16x16xf32>
    %cst_307 = arith.constant 0.000000e+00 : f32
    %1366 = vector.broadcast %cst_307 : f32 to vector<16x16xf32>
    %1367 = arith.select %37, %1366, %1365 : vector<16x16xi1>, vector<16x16xf32>
    %1368 = arith.addf %1367, %1346 : vector<16x16xf32>
    %c15_i32_308 = arith.constant 15 : i32
    %1369 = tpu.dynamic_rotate %1364 by %c15_i32_308 dim 0 : vector<16x16xf32>, i32 -> vector<16x16xf32>
    %cst_309 = arith.constant 0.000000e+00 : f32
    %1370 = vector.broadcast %cst_309 : f32 to vector<16x16xf32>
    %1371 = arith.select %39, %1370, %1369 : vector<16x16xi1>, vector<16x16xf32>
    %1372 = arith.addf %1368, %1371 : vector<16x16xf32>
    %c0_310 = arith.constant 0 : index
    %1373 = memref.load %arg5[%c0_310] : memref<1xf32, #tpu.memory_space<smem>>
    %1374 = vector.broadcast %1373 : f32 to vector<16x16xf32>
    %1375 = arith.addf %1372, %1374 : vector<16x16xf32>
    %1376 = math.tanh %1375 : vector<16x16xf32>
    %c0_311 = arith.constant 0 : index
    %c0_312 = arith.constant 0 : index
    %c0_313 = arith.constant 0 : index
    %1377 = vector.load %arg6[%c0_311, %c0_312, %c0_313] : memref<1x16x16xf32, #tpu.memory_space<vmem>>, vector<1x16x16xf32>
    %1378 = vector.shape_cast %1377 : vector<1x16x16xf32> to vector<16x16xf32>
    %1379 = vector.shape_cast %1376 : vector<16x16xf32> to vector<1x16x16xf32>
    tpu.vector_store %arg6[%c0_311, %c0_312, %c0_313], %1379 {strides = array<i32>} : memref<1x16x16xf32, #tpu.memory_space<vmem>>, vector<1x16x16xf32>,
    return
  }
  func.func @transform_0(%arg0: i32) -> (i32, i32, i32) {
    %c0_i32 = arith.constant 0 : i32
    %c0_i32_0 = arith.constant 0 : i32
    %c0_i32_1 = arith.constant 0 : i32
    return %arg0, %c0_i32, %c0_i32_0 : i32, i32, i32
  }
  func.func @transform_1(%arg0: i32) -> i32 {
    %c0_i32 = arith.constant 0 : i32
    %c0_i32_0 = arith.constant 0 : i32
    return %c0_i32 : i32
  }
  func.func @transform_2(%arg0: i32) -> i32 {
    %c0_i32 = arith.constant 0 : i32
    %c0_i32_0 = arith.constant 0 : i32
    return %c0_i32 : i32
  }
  func.func @transform_3(%arg0: i32) -> i32 {
    %c0_i32 = arith.constant 0 : i32
    %c0_i32_0 = arith.constant 0 : i32
    return %c0_i32 : i32
  }
  func.func @transform_4(%arg0: i32) -> i32 {
    %c0_i32 = arith.constant 0 : i32
    %c0_i32_0 = arith.constant 0 : i32
    return %c0_i32 : i32
  }
  func.func @transform_5(%arg0: i32) -> (i32, i32, i32) {
    %c0_i32 = arith.constant 0 : i32
    %c0_i32_0 = arith.constant 0 : i32
    %c0_i32_1 = arith.constant 0 : i32
    return %arg0, %c0_i32, %c0_i32_0 : i32, i32, i32
  }
}

</mosaic_0001>

<bundles_post_ra>
// kernel: filter_network_forward.1
= control target key start
LH: loop header
LB: loop body
LE: loop exit
PB: predicated region body
PF: predicated region fallthrough
CT: control target
= control target key end

     0   :  { %s5722_s0 = inlined_call_operand.vmem [shape: f32[2,16,16], index: 0, kind: input, shape index: {}]   ;;  %s5723_s1 = inlined_call_operand.vmem [shape: f32[90], index: 1, kind: input, shape index: {}]   ;;  %s5724_s2 = inlined_call_operand.vmem [shape: f32[10], index: 2, kind: input, shape index: {}]   ;;  %s5725_s3 = inlined_call_operand.vmem [shape: f32[90], index: 3, kind: input, shape index: {}]   ;;  %s5726_s4 = inlined_call_operand.<no memory space> [shape: f32[1], index: 4, kind: input, shape index: {}]   ;;  %s5727_s5 = inlined_call_operand.hbm [shape: f32[2,16,16], index: 5, kind: output, shape index: {}]  }
   0x1   :  { %5928 = sst [smem:[#allocation130_spill]] %s5722_s0 }
   0x2   :  { %5929 = sst [smem:[#allocation131_spill]] %s5723_s1 }
   0x3   :  { %5930 = sst [smem:[#allocation132_spill]] %s5724_s2 }
   0x4   :  { %5931 = sst [smem:[#allocation133_spill]] %s5725_s3 }
   0x5   :  { %5932 = sst [smem:[#allocation134_spill]] %s5727_s5 }
   0x6   :  { %10 = sst [smem:[#allocation2]] %s5726_s4 }
   0x7   :  { %11 = vsyncpa [#allocation5], 0 }
   0x8   :  { %12 = vsyncpa [#allocation7], 0 }
   0x9   :  { %13 = vsyncpa [#allocation4], 0 }
   0xa   :  { %15 = vsyncpa [#allocation4 + $0x1], 0  ;;  %s2911_s20 = smov 0   ;;  %s2913_s21 = smov 0  }
   0xb   :  { %s2915_s22 = smov 0   ;;  %s2917_s23 = smov 0  }
   0xc LB: > { %5933 = sst [smem:[#allocation13_spill]] %s2855_s20  ;;  %s2932_s4 = sadd.s32 4294967295, %s2867_s23   ;;  %s2867_s23 = sphi %s2917_s23, %s6718_s23   ;;  %s2863_s22 = sphi %s2915_s22, %s6721_s22   ;;  %s2859_s21 = sphi %s2913_s21, %s6720_s21   ;;  %s2855_s20 = sphi %s2911_s20, %s6719_s20  }
   0xd   : > { %5934 = sst [smem:[#allocation14_spill]] %s2859_s21  ;;  %s2428_s24 = sadd.s32 4294967294, %s2867_s23  }
   0xe   : > { %5935 = sst [smem:[#allocation15_spill]] %s2863_s22  ;;  %s2936_s25 = sadd.s32 1, %s2867_s23  }
   0xf   : > { %5936 = sst [smem:[#allocation16_spill]] %s2867_s23  ;;  %s138_s26 = sadd.s32 1, %s2863_s22 }
  0x10   : > { %5937 = sst [smem:[#allocation17_spill]] %s2932_s4  ;;  %s135_s27 = ssub.s32 %s2867_s23, %s2936_s25 }
  0x11   : > { %5938 = sst [smem:[#allocation18_spill]] %s2936_s25  ;;  %p148_p0 = scmp.ne.s32.totalorder %s2863_s22, %s2859_s21 }
  0x12   : > { %p136_p1 = scmp.eq.s32.totalorder %s135_s27, 0  ;;  %p149_p2 = scmp.eq.s32.totalorder %s2932_s4, 1 }
  0x13   : > { %p154_p3 = scmp.ne.s32.totalorder %s2859_s21, %s2855_s20  ;;  %p155_p4 = scmp.eq.s32.totalorder %s2428_s24, 1 }
  0x14   : > { %s2947_s28 = scalar_select %p136_p1, %s2863_s22, %s138_s26  }
  0x15   : > { %p2949_p5 = por %p149_p2, %p148_p0  ;;  %p2953_p6 = por %p155_p4, %p154_p3 }
  0x16   : > { %5939 = sst [smem:[#allocation19_spill]] %s2947_s28  ;;  %p2429_p7 = scmp.ge.s32.totalorder %s2867_s23, 1 }
  0x17   : > { %s5940_s29 = scalar_select %p2949_p5, 1, 0 }
  0x18   : > { %s5942_s30 = scalar_select %p2953_p6, 1, 0 }
  0x19   : > { %5941 = sst [smem:[#allocation20_spill]] %s5940_s29  ;;  %p162_p8 = scmp.lt.s32.totalorder %s2867_s23, 3 }
  0x1a   : > { %5943 = sst [smem:[#allocation21_spill]] %s5942_s30  ;;  %p5728_p9 = scmp.eq.s32.totalorder %s2932_s4, 0 }
  0x1b   : > { %p2960_p10 = pnand %p2429_p7, %p162_p8  ;;  %s5945_s2 = sld [smem:[#allocation132_spill]] }
  0x1c   : > { %s5946_s1 = sld [smem:[#allocation131_spill]] }
  0x1d   : > { %s5944_s6 = scalar_select %p2960_p10, 1, 0 }
  0x1e   : > { %p2649_p11 = pneg %p2960_p10  ;;  %s5948_s3 = sld [smem:[#allocation133_spill]] }
  0x20   : > { %p2974_p12 = pnand %p5728_p9, %p2649_p11 }
  0x21   : > { %s186_s9 = sshll.u32 %s5945_s2, 4  ;;  %s187_s9 = int_to_ptr.vmem [resolvable:$true] %s186_s9 }
  0x22   : > { %s175_s12 = sshll.u32 %s5946_s1, 4  ;;  %s2754_s17 = scalar_lea.vmem %s187_s9, 16  ;;  %s176_s12 = int_to_ptr.vmem [resolvable:$true] %s175_s12 }
  0x23   : > { %p2755_p13 = scmp.ne.s32.totalorder %s187_s9, %s2754_s17  ;;  %p2756_p0 = pneg %p2974_p12 }
  0x24   : > { %s197_s16 = sshll.u32 %s5948_s3, 4  ;;  %p2762_p3 = scmp.lt.s32.totalorder %s187_s9, %s187_s9  ;;  %s2981_s16 = int_to_ptr.vmem [resolvable:$true] %s197_s16 }
  0x25   : > { %p2757_p1 = pnand %p2756_p0, %p2755_p13  ;;  %p2763_p4 = scmp.lt.s32.totalorder %s2754_s17, %s2754_s17 }
  0x27   : > { %p2758_p2 = pneg %p2757_p1  ;;  %p2764_p7 = por %p2763_p4, %p2762_p3 }
  0x29   : > { %p2765_p8 = pnand %p2764_p7, %p2758_p2 }
  0x2b   : > { %2768 = shalt.err (!%p2765_p8)
}
  0x2c   : > { %s2869_s18 = smov [#allocation6]   ;;  %s2769_s19 = scalar_lea.vmem %s176_s12, 16 }
  0x2d   : > { %2655 = dma.vmem_to_smem (!%p2974_p12), %s187_s9, 16, %s2869_s18, [#allocation7]  }
  0x2e   : > { %p2770_p11 = scmp.ne.s32.totalorder %s176_s12, %s2769_s19  ;;  %p2777_p5 = scmp.lt.s32.totalorder %s176_s12, %s176_s12 }
  0x2f   : > { %p2778_p10 = scmp.lt.s32.totalorder %s2769_s19, %s2769_s19 }
  0x30   : > { %p2772_p9 = pnand %p2770_p11, %p2756_p0 }
  0x31   : > { %p2779_p13 = por %p2778_p10, %p2777_p5 }
  0x32   : > { %p2773_p6 = pneg %p2772_p9 }
  0x34   : > { %p2780_p1 = pnand %p2779_p13, %p2773_p6 }
  0x36   : > { %2783 = shalt.err (!%p2780_p1)
}
  0x37   : > { %s2870_s24 = smov [#allocation3]   ;;  %s2784_s26 = scalar_lea.vmem %s2981_s16, 16 }
  0x38   : > { %2652 = dma.vmem_to_smem (!%p2974_p12), %s176_s12, 16, %s2870_s24, [#allocation5]  }
  0x39   : > { %p2785_p2 = scmp.ne.s32.totalorder %s2981_s16, %s2784_s26  ;;  %p2792_p9 = scmp.lt.s32.totalorder %s2981_s16, %s2981_s16 }
  0x3a   : > { %p2793_p7 = scmp.lt.s32.totalorder %s2784_s26, %s2784_s26 }
  0x3b   : > { %p2787_p3 = pnand %p2785_p2, %p2756_p0 }
  0x3c   : > { %p2794_p5 = por %p2793_p7, %p2792_p9 }
  0x3d   : > { %p2788_p4 = pneg %p2787_p3 }
  0x3f   : > { %p2795_p6 = pnand %p2794_p5, %p2788_p4 }
  0x41   : > { %2798 = shalt.err (!%p2795_p6)
}
  0x42   : > { %s2871_s27 = smov [#allocation8]   ;;  %p5949_p10 = scmp.ne.s32.totalorder %s5944_s6, 0 }
  0x43   : > { %2658 = dma.vmem_to_smem (!%p2974_p12), %s2981_s16, 16, %s2871_s27, [#allocation7]  }
  0x44   : > { %221 = sbr.rel (%p5949_p10) target bundleno = 1421 (0x58d), region = 40 }
  0x49   : > { %p5950_p8 = scmp.eq.s32.totalorder %s2932_s4, 0 }
  0x4b   : > { %2842 = dma.done.wait (%p5950_p8), [#allocation5], 16   ;;  %p5951_p0 = pmov %p5950_p8 }
  0x4d   : > { %2844 = vsyncadd (%p5951_p0), [#allocation5], 4294967280  ;;  %p5952_p11 = pmov %p5951_p0 }
  0x4e   : > { %p5953_p13 = pmov %p5951_p0 }
  0x4f   : > { %2846 = dma.done.wait (%p5952_p11), [#allocation7], 32  }
  0x50   : > { %2848 = vsyncadd (%p5953_p13), [#allocation7], 4294967264 }
  0x51   : > { %235 = sfence }
  0x52   : > { %p258_p1 = scmp.lt.s32.totalorder %s2932_s4, 1  ;;  %v265_v0 = vlaneseq  ;;  %s5955_s0 = sld [smem:[#allocation130_spill]]  ;;  %v5957_v6 = vmov 0  ;;  %v5960_v15 = vmov 0  ;;  %vm365_vm4 = vcmask 1047680  }
  0x53   : > { %s5733_s11 = smov 16   ;;  %s5731_s12 = smov 113   ;;  %vm2318_vm10 = vcmask 130048  }
  0x54   : > { %s259_s7 = scalar_select %p258_p1, %s2932_s4, 1  ;;  %v3018_v1 = vshrl.u32 %v265_v0, 7  ;;  %v3243_v43 = vand.u32 127, %v265_v0 }
  0x55   : > { %s5735_s13 = smov 127   ;;  %s3117_s14 = sld [smem:[#allocation3 + $0x3]] }
  0x56   : > { %5954 = vst [vmem:[#allocation22_spill] sm:$0xff] %v3018_v1  ;;  %s2633_s6 = sshll.u32 %s259_s7, 4  ;;  %v274_v2 = vand.u32 15, %v3018_v1  ;;  %v3025_v3 = vadd.s32 8, %v3018_v1  ;;  %vm353_vm1 = vcmp.lt.s32.totalorder %v3018_v1, 1  ;;  %vm360_vm2 = vcmp.lt.s32.totalorder %v3018_v1, 7 }
  0x57   : > { %s3119_s15 = sld [smem:[#allocation3 + $0xc]]  ;;  %6013 = vst [vmem:[#allocation76_spill] sm:$0xff] %v3243_v43  ;;  %v5816_v44 = vand.u32 15, %v3243_v43 }
  0x58   : > { %s262_s10 = scalar_lea.vmem %s5955_s0, %s2633_s6  ;;  %5956 = vst [vmem:[#allocation23_spill] sm:$0xff] %v3025_v3  ;;  %vm3031_vm0 = vcmp.eq.s32.totalorder %v274_v2, 0  ;;  %v281_v11 = vand.u32 15, %v3025_v3  ;;  %s3123_s16 = sld [smem:[#allocation3 + $0x15]] }
  0x59   : > { %v3027_v4 = vld [vmem:[%s262_s10] sm:$0xff]  ;;  %v3029_v5 = vld [vmem:[%s262_s10 + $0x8] sm:$0xff]  ;;  %v5958_v6 = vsel %vm3031_vm0, 4294967295, %v5957_v6  ;;  %s3125_s17 = sld [smem:[#allocation3 + $0x1e]]  ;;  %vm3495_vm5 = vcmp.eq.s32.totalorder %v5816_v44, 0 }
  0x5a   : > { %5959 = vst [vmem:[#allocation24_spill] sm:$0xff] %v5958_v6  ;;  %v351_v7 = vrot.slane %v3027_v4, 7  ;;  %v352_v8 = vrot.slane %v3029_v5, 7  ;;  %396 = vrot.lane.b32.xlu1 %v3027_v4, %s5733_s11  ;;  %v358_v9 = vrot.slane %v3027_v4, 1  ;;  %v359_v10 = vrot.slane %v3029_v5, 1  ;;  %s3127_s18 = sld [smem:[#allocation3 + $0x27]] }
  0x5b   : > { %vm3052_vm3 = vcmp.eq.s32.totalorder %v281_v11, 15  ;;  %5963 = sst [smem:[#allocation26_spill]] %s3117_s14 }
  0x5c   : > { %v355_v12 = vsel %vm353_vm1, %v352_v8, %v351_v7  ;;  %v362_v13 = vsel %vm360_vm2, %v359_v10, %v358_v9  ;;  %v5961_v15 = vsel %vm3052_vm3, 4294967295, %v5960_v15  ;;  %v3062_v16 = vsel %vm353_vm1, %v351_v7, %v352_v8  ;;  %s3129_s19 = sld [smem:[#allocation3 + $0x30]] }
  0x5d   : > { %v3050_v14 = vsel %vm3031_vm0, 0.0, %v355_v12  ;;  %5962 = vst [vmem:[#allocation25_spill] sm:$0xff] %v5961_v15  ;;  %v3066_v17 = vsel %vm3052_vm3, 0.0, %v362_v13  ;;  %v3074_v18 = vsel %vm360_vm2, %v358_v9, %v359_v10  ;;  %5964 = sst [smem:[#allocation27_spill]] %s3119_s15 }
  0x5e   : > { %366 = vrot.lane.b32.xlu0 %v3050_v14, %s5733_s11  ;;  %399 = vrot.lane.b32.xlu1 %v3029_v5, %s5733_s11  ;;  %5965 = sst [smem:[#allocation28_spill]] %s3123_s16 }
  0x5f   : > { %5966 = sst [smem:[#allocation29_spill]] %s3125_s17 }
  0x60   : > { %5967 = sst [smem:[#allocation30_spill]] %s3127_s18 }
  0x61   : > { %s3132_s24 = sld [smem:[#allocation3 + $0x39]] }
  0x62   : > { %369 = vrot.lane.b32.xlu0 %v3062_v16, %s5733_s11  ;;  %429 = vrot.lane.b32.xlu1 %v3066_v17, %s5733_s11  ;;  %5968 = sst [smem:[#allocation31_spill]] %s3129_s19 }
  0x63   : > { %s3134_s26 = sld [smem:[#allocation3 + $0x42]] }
  0x64   : > { %s3136_s27 = sld [smem:[#allocation3 + $0x4b]] }
  0x65   : > { %s3138_s7 = sld [smem:[#allocation3 + $0x54]] }
  0x66   : > { %426 = vrot.lane.b32.xlu0 %v3074_v18, %s5733_s11  ;;  %s3140_s6 = sld [smem:[#allocation3]] }
  0x67   : > { %5969 = sst [smem:[#allocation32_spill]] %s3132_s24 }
  0x68   : > { %s3142_s8 = sld [smem:[#allocation3 + $0x1]] }
  0x69   : > { %5970 = sst [smem:[#allocation33_spill]] %s3134_s26 }
  0x6a   : > { %5971 = sst [smem:[#allocation34_spill]] %s3136_s27 }
  0x6b   : > { %5972 = sst [smem:[#allocation35_spill]] %s3138_s7 }
  0x6c   : > { %5973 = sst [smem:[#allocation36_spill]] %s3140_s6 }
  0x6d   : > { %s3144_s9 = sld [smem:[#allocation3 + $0x9]] }
  0x6e   : > { %s3146_s10 = sld [smem:[#allocation3 + $0xa]]  ;;  %v461_v49 = vstv %s3142_s8 }
  0x6f   : > { %s3154_s0 = sld [smem:[#allocation3 + $0x1c]]  ;;  %v3278_v60 = vmul.f32 %v461_v49, %v3050_v14  ;;  %v3299_v10 = vmul.f32 %v461_v49, %v3062_v16 }
  0x70   : > { %s3156_s1 = sld [smem:[#allocation3 + $0x24]] }
  0x71   : > { %s3158_s2 = sld [smem:[#allocation3 + $0x25]] }
  0x72   : > { %s3160_s3 = sld [smem:[#allocation3 + $0x2d]] }
  0x73   : > { %5974 = sst [smem:[#allocation37_spill]] %s3144_s9 }
  0x74   : > { %s3162_s28 = sld [smem:[#allocation3 + $0x2e]]  ;;  %v645_v52 = vstv %s3146_s10 }
  0x75   : > { %s3164_s22 = sld [smem:[#allocation3 + $0x36]]  ;;  %v1013_v57 = vstv %s3154_s0  ;;  %v3284_v62 = vmul.f32 %v645_v52, %v3050_v14  ;;  %v3306_v13 = vmul.f32 %v645_v52, %v3062_v16 }
  0x76   : > { %5977 = sst [smem:[#allocation40_spill]] %s3156_s1  ;;  %v3295_v8 = vmul.f32 %v1013_v57, %v3050_v14 }
  0x77   : > { %s3166_s25 = sld [smem:[#allocation3 + $0x37]]  ;;  %v1197_v2 = vstv %s3158_s2 }
  0x78   : > { %5978 = sst [smem:[#allocation41_spill]] %s3160_s3 }
  0x79   : > { %s3168_s30 = sld [smem:[#allocation3 + $0x3f]] }
  0x7a   : > { %s3170_s20 = sld [smem:[#allocation3 + $0x40]]  ;;  %v1381_v9 = vstv %s3162_s28 }
  0x7b   : > { %5979 = sst [smem:[#allocation42_spill]] %s3164_s22 }
  0x7c   : > { %s3172_s23 = sld [smem:[#allocation3 + $0x48]] }
  0x7d   : > { %5980 = sst [smem:[#allocation43_spill]] %s3166_s25 }
  0x7e   : > { %s3174_s5 = sld [smem:[#allocation3 + $0x49]] }
  0x7f   : > { %5981 = sst [smem:[#allocation44_spill]] %s3168_s30 }
  0x80   : > { %5982 = sst [smem:[#allocation45_spill]] %s3170_s20 }
  0x81   : > { %s3176_s29 = sld [smem:[#allocation3 + $0x51]] }
  0x82   : > { %5983 = sst [smem:[#allocation46_spill]] %s3172_s23 }
  0x83   : > { %s3178_s4 = sld [smem:[#allocation3 + $0x52]] }
  0x84   : > { %5984 = sst [smem:[#allocation47_spill]] %s3174_s5 }
  0x85   : > { %s3180_s21 = sld [smem:[#allocation3 + $0x2]] }
  0x86   : > { %s3182_s3 = sld [smem:[#allocation3 + $0xb]] }
  0x87   : > { %5985 = sst [smem:[#allocation48_spill]] %s3176_s29 }
  0x88   : > { %s3184_s1 = sld [smem:[#allocation3 + $0x14]] }
  0x89   : > { %5986 = sst [smem:[#allocation49_spill]] %s3178_s4 }
  0x8a   : > { %s3186_s22 = sld [smem:[#allocation3 + $0x1d]] }
  0x8b   : > { %5987 = sst [smem:[#allocation50_spill]] %s3180_s21 }
  0x8c   : > { %5988 = sst [smem:[#allocation51_spill]] %s3182_s3 }
  0x8d   : > { %s3188_s25 = sld [smem:[#allocation3 + $0x26]] }
  0x8e   : > { %5989 = sst [smem:[#allocation52_spill]] %s3184_s1 }
  0x8f   : > { %s3190_s30 = sld [smem:[#allocation3 + $0x2f]] }
  0x90   : > { %5990 = sst [smem:[#allocation53_spill]] %s3186_s22 }
  0x91   : > { %s3192_s20 = sld [smem:[#allocation3 + $0x38]] }
  0x92   : > { %s3194_s23 = sld [smem:[#allocation3 + $0x41]] }
  0x93   : > { %5991 = sst [smem:[#allocation54_spill]] %s3188_s25 }
  0x94   : > { %s3196_s5 = sld [smem:[#allocation3 + $0x4a]] }
  0x95   : > { %5992 = sst [smem:[#allocation55_spill]] %s3190_s30 }
  0x96   : > { %s3198_s29 = sld [smem:[#allocation3 + $0x53]] }
  0x97   : > { %5993 = sst [smem:[#allocation56_spill]] %s3192_s20 }
  0x98   : > { %5994 = sst [smem:[#allocation57_spill]] %s3194_s23 }
  0x99   : > { %s3200_s4 = sld [smem:[#allocation3 + $0x4]] }
  0x9a   : > { %5995 = sst [smem:[#allocation58_spill]] %s3196_s5 }
  0x9b   : > { %s3202_s21 = sld [smem:[#allocation3 + $0x5]] }
  0x9c   : > { %5996 = sst [smem:[#allocation59_spill]] %s3198_s29 }
  0x9d   : > { %s3204_s3 = sld [smem:[#allocation3 + $0xd]] }
  0x9e   : > { %s3206_s1 = sld [smem:[#allocation3 + $0xe]] }
  0x9f   : > { %5997 = sst [smem:[#allocation60_spill]] %s3200_s4 }
  0xa0   : > { %s3208_s22 = sld [smem:[#allocation3 + $0x16]] }
  0xa1   : > { %5998 = sst [smem:[#allocation61_spill]] %s3202_s21 }
  0xa2   : > { %s3210_s25 = sld [smem:[#allocation3 + $0x17]] }
  0xa3   : > { %s3212_s30 = sld [smem:[#allocation3 + $0x1f]] }
  0xa4   : > { %5999 = sst [smem:[#allocation62_spill]] %s3206_s1 }
  0xa5   : > { %s3214_s20 = sld [smem:[#allocation3 + $0x20]] }
  0xa6   : > { %6000 = sst [smem:[#allocation63_spill]] %s3208_s22 }
  0xa7   : > { %s3216_s23 = sld [smem:[#allocation3 + $0x28]] }
  0xa8   : > { %6001 = sst [smem:[#allocation64_spill]] %s3210_s25 }
  0xa9   : > { %s3218_s5 = sld [smem:[#allocation3 + $0x29]]  ;;  %v1031_v52 = vstv %s3212_s30 }
  0xaa   : > { %s3220_s29 = sld [smem:[#allocation3 + $0x31]] }
  0xab   : > { %6002 = sst [smem:[#allocation65_spill]] %s3214_s20 }
  0xac   : > { %s3222_s4 = sld [smem:[#allocation3 + $0x32]] }
  0xad   : > { %s3224_s21 = sld [smem:[#allocation3 + $0x3a]] }
  0xae   : > { %s3226_s1 = sld [smem:[#allocation3 + $0x3b]] }
  0xaf   : > { %6003 = sst [smem:[#allocation66_spill]] %s3218_s5 }
  0xb0   : > { %6004 = sst [smem:[#allocation67_spill]] %s3220_s29 }
  0xb1   : > { %s3228_s22 = sld [smem:[#allocation3 + $0x43]] }
  0xb2   : > { %6005 = sst [smem:[#allocation68_spill]] %s3222_s4 }
  0xb3   : > { %6006 = sst [smem:[#allocation69_spill]] %s3224_s21 }
  0xb4   : > { %6007 = sst [smem:[#allocation70_spill]] %s3226_s1 }
  0xb5   : > { %s3230_s25 = sld [smem:[#allocation3 + $0x44]] }
  0xb6   : > { %s3232_s20 = sld [smem:[#allocation3 + $0x4c]] }
  0xb7   : > { %s3234_s5 = sld [smem:[#allocation3 + $0x4d]] }
  0xb8   : > { %s3236_s29 = sld [smem:[#allocation3 + $0x55]] }
  0xb9   : > { %s3238_s4 = sld [smem:[#allocation3 + $0x56]] }
  0xba   : > { %s3240_s21 = sld [smem:[#allocation3 + $0x6]] }
  0xbb   : > { %6008 = sst [smem:[#allocation71_spill]] %s3230_s25 }
  0xbc   : > { %6009 = sst [smem:[#allocation72_spill]] %s3232_s20 }
  0xbd   : > { %6010 = sst [smem:[#allocation73_spill]] %s3234_s5 }
  0xbe   : > { %s3245_s25 = sld [smem:[#allocation3 + $0xf]] }
  0xbf   : > { %6011 = sst [smem:[#allocation74_spill]] %s3238_s4 }
  0xc0   : > { %6012 = sst [smem:[#allocation75_spill]] %s3240_s21 }
  0xc1   : > { %s3247_s1 = sld [smem:[#allocation3 + $0x18]] }
  0xc2   : > { %s3249_s20 = sld [smem:[#allocation3 + $0x21]] }
  0xc3   : > { %s3251_s5 = sld [smem:[#allocation3 + $0x2a]] }
  0xc4   : > { %s3255_s21 = sld [smem:[#allocation3 + $0x33]] }
  0xc5   : > { %s3273_s16 = sld [smem:[#allocation3 + $0x4e]] }
  0xc6   : > { %s6020_s8 = sld [smem:[#allocation43_spill]] }
  0xc7   : > { %6014 = sst [smem:[#allocation77_spill]] %s3247_s1 }
  0xc8   : > { %6015 = sst [smem:[#allocation78_spill]] %s3249_s20 }
  0xc9   : > { %6016 = sst [smem:[#allocation79_spill]] %s3251_s5 }
  0xca   : > { %s3261_s1 = sld [smem:[#allocation3 + $0x3c]] }
  0xcb   : > { %s3267_s5 = sld [smem:[#allocation3 + $0x45]] }
  0xcc   : > { %v397_v19 = vpop.permute.xlu1 %396  ;;  %6018 = sst [smem:[#allocation81_spill]] %s3273_s16  ;;  %v1565_v12 = vstv %s6020_s8 }
  0xcd   : > { %v398_v22 = vsel %vm365_vm4, %v397_v19, %v3027_v4  ;;  %s3281_s10 = sld [smem:[#allocation3 + $0x57]] }
  0xce   : > { %s6023_s27 = sld [smem:[#allocation45_spill]] }
  0xcf   : > { %s3291_s0 = sld [smem:[#allocation3 + $0x7]] }
  0xd0   : > { %v367_v20 = vpop.permute.xlu0 %366  ;;  %v400_v24 = vpop.permute.xlu1 %399  ;;  %s6024_s6 = sld [smem:[#allocation47_spill]] }
  0xd1   : > { %v368_v21 = vsel %vm365_vm4, %v367_v20, %v3050_v14  ;;  %v401_v26 = vsel %vm365_vm4, %v400_v24, %v3029_v5  ;;  %6017 = sst [smem:[#allocation80_spill]] %s3267_s5  ;;  %v3314_v20 = vmul.f32 %v1197_v2, %v3050_v14  ;;  %v3324_v24 = vmul.f32 %v1381_v9, %v3050_v14 }
  0xd2   : > { %372 = vrot.lane.b32.xlu0 %v368_v21, %s5733_s11  ;;  %s6025_s9 = sld [smem:[#allocation49_spill]] }
  0xd3   : > { %6021 = sst [smem:[#allocation43_spill]] %s3281_s10 }
  0xd4   : > { %v370_v23 = vpop.permute.xlu0 %369  ;;  %v430_v28 = vpop.permute.xlu1 %429  ;;  %s3301_s7 = sld [smem:[#allocation3 + $0x8]] }
  0xd5   : > { %v371_v25 = vsel %vm365_vm4, %v370_v23, %v3062_v16  ;;  %v431_v30 = vsel %vm365_vm4, %v430_v28, %v3066_v17  ;;  %s3311_s2 = sld [smem:[#allocation6]]  ;;  %v3319_v23 = vmul.f32 %v1013_v57, %v3062_v16  ;;  %v663_v57 = vstv %s3204_s3 }
  0xd6   : > { %402 = vrot.lane.b32.xlu0 %v398_v22, %s5733_s11  ;;  %374 = vrot.lane.b32.xlu1 %v371_v25, %s5733_s11  ;;  %v1749_v22 = vstv %s6023_s27  ;;  %s3321_s17 = sld [smem:[#allocation3 + $0x10]]  ;;  %v1933_v25 = vstv %s6024_s6 }
  0xd7   : > { %s6035_s24 = sld [smem:[#allocation60_spill]]  ;;  %v497_v55 = vstv %s3291_s0 }
  0xd8   : > { %v427_v27 = vpop.permute.xlu0 %426  ;;  %s3341_s19 = sld [smem:[#allocation6 + $0x1]]  ;;  %v3512_v51 = vmul.f32 %v497_v55, %v3074_v18  ;;  %v3534_v47 = vmul.f32 %v497_v55, %v3066_v17 }
  0xd9   : > { %v428_v29 = vsel %vm365_vm4, %v427_v27, %v3074_v18  ;;  %v3329_v27 = vmul.f32 %v1197_v2, %v3062_v16  ;;  %s3353_s26 = sld [smem:[#allocation3 + $0x19]]  ;;  %v3397_v2 = vmul.f32 %v663_v57, %v3027_v4 }
  0xda   : > { %404 = vrot.lane.b32.xlu1 %v401_v26, %s5733_s11  ;;  %432 = vrot.lane.b32.xlu0 %v428_v29, %s5733_s11  ;;  %6026 = sst [smem:[#allocation45_spill]] %s3301_s7  ;;  %v2117_v26 = vstv %s6025_s9  ;;  %v3335_v29 = vmul.f32 %v1565_v12, %v3050_v14  ;;  %6101 = vst [vmem:[#allocation104_spill] sm:$0xff] %v3512_v51  ;;  %6106 = vst [vmem:[#allocation107_spill] sm:$0xff] %v3534_v47 }
  0xdb   : > { %6029 = sst [smem:[#allocation47_spill]] %s3311_s2  ;;  %6055 = vst [vmem:[#allocation82_spill] sm:$0xff] %v3397_v2 }
  0xdc   : > { %s6043_s28 = sld [smem:[#allocation63_spill]] }
  0xdd   : > { %v479_v49 = vstv %s6035_s24  ;;  %s3373_s8 = sld [smem:[#allocation6 + $0x2]] }
  0xde   : > { %434 = vrot.lane.b32.xlu1 %v431_v30, %s5733_s11  ;;  %s3150_s11 = sld [smem:[#allocation3 + $0x13]]  ;;  %v3431_v30 = vmul.f32 %v1031_v52, %v3029_v5 }
  0xdf   : > { %s3379_s16 = sld [smem:[#allocation3 + $0x22]] }
  0xe0   : > { %s6051_s5 = sld [smem:[#allocation67_spill]]  ;;  %6069 = vst [vmem:[#allocation89_spill] sm:$0xff] %v3431_v30 }
  0xe1   : > { %s3385_s27 = sld [smem:[#allocation3 + $0x23]] }
  0xe2   : > { %s6052_s24 = sld [smem:[#allocation69_spill]] }
  0xe3   : > { %6047 = sst [smem:[#allocation63_spill]] %s3373_s8 }
  0xe4   : > { %v829_v53 = vstv %s3150_s11  ;;  %s6033_s11 = sld [smem:[#allocation50_spill]] }
  0xe5   : > { %v3288_v0 = vmul.f32 %v829_v53, %v3050_v14  ;;  %v3309_v19 = vmul.f32 %v829_v53, %v3062_v16  ;;  %6036 = sst [smem:[#allocation50_spill]] %s3341_s19  ;;  %v3414_v53 = vmul.f32 %v1031_v52, %v3027_v4  ;;  %v2135_v52 = vstv %s3236_s29 }
  0xe6   : > { %s3365_s19 = sld [smem:[#allocation3 + $0x1a]]  ;;  %v3482_v58 = vmul.f32 %v2135_v52, %v3029_v5 }
  0xe7   : > { %s6058_s2 = sld [smem:[#allocation72_spill]]  ;;  %6062 = vst [vmem:[#allocation85_spill] sm:$0xff] %v3414_v53 }
  0xe8   : > { %s3411_s30 = sld [smem:[#allocation3 + $0x2c]]  ;;  %6088 = vst [vmem:[#allocation102_spill] sm:$0xff] %v3482_v58 }
  0xe9   : > { %s3443_s3 = sld [smem:[#allocation3 + $0x35]] }
  0xea   : > { %s3463_s7 = sld [smem:[#allocation3 + $0x3d]] }
  0xeb   : > { %s6082_s29 = sld [smem:[#allocation79_spill]] }
  0xec   : > { %6044 = sst [smem:[#allocation60_spill]] %s3365_s19 }
  0xed   : > { %s3475_s19 = sld [smem:[#allocation3 + $0x3e]] }
  0xee   : > { %6060 = sst [smem:[#allocation69_spill]] %s3411_s30 }
  0xef   : > { %6073 = sst [smem:[#allocation92_spill]] %s3443_s3 }
  0xf0   : > { %s6089_s10 = sld [smem:[#allocation81_spill]]  ;;  %v1601_v15 = vstv %s3463_s7 }
  0xf1   : > { %s6090_s14 = sld [smem:[#allocation43_spill]]  ;;  %v3573_v6 = vmul.f32 %v1601_v15, %v3074_v18  ;;  %v3580_v55 = vmul.f32 %v1601_v15, %v3066_v17  ;;  %v6127_v15 = vmov 0 }
  0xf2   : > { %s3485_s15 = sld [smem:[#allocation6 + $0x6]] }
  0xf3   : > { %6085 = sst [smem:[#allocation79_spill]] %s3475_s19  ;;  %6116 = vst [vmem:[#allocation116_spill] sm:$0xff] %v3573_v6  ;;  %6118 = vst [vmem:[#allocation117_spill] sm:$0xff] %v3580_v55  ;;  %v6125_v6 = vand.u32 15, %v3243_v43 }
  0xf4   : > { %s6092_s18 = sld [smem:[#allocation45_spill]] }
  0xf5   : > { %s3491_s6 = sld [smem:[#allocation3 + $0x46]]  ;;  %vm3594_vm6 = vcmp.eq.s32.totalorder %v6125_v6, 15 }
  0xf6   : > { %s6100_s20 = sld [smem:[#allocation60_spill]]  ;;  %v6128_v15 = vsel %vm3594_vm6, 4294967295, %v6127_v15 }
  0xf7   : > { %s3509_s0 = sld [smem:[#allocation3 + $0x4f]]  ;;  %6129 = vst [vmem:[#allocation120_spill] sm:$0xff] %v6128_v15 }
  0xf8   : > { %s3544_s4 = sld [smem:[#allocation3 + $0x59]] }
  0xf9   : > { %s6117_s7 = sld [smem:[#allocation26_spill]] }
  0xfa   : > { %s6149_s19 = sld [smem:[#allocation40_spill]] }
  0xfb   : > { %v1785_v44 = vstv %s3491_s6  ;;  %s6119_s6 = sld [smem:[#allocation27_spill]] }
  0xfc   : > { %v3586_v47 = vmul.f32 %v1785_v44, %v3074_v18  ;;  %s6150_s3 = sld [smem:[#allocation41_spill]] }
  0xfd   : > { %s6152_s30 = sld [smem:[#allocation42_spill]] }
  0xfe   : > { %6121 = vst [vmem:[#allocation118_spill] sm:$0xff] %v3586_v47  ;;  %s6157_s8 = sld [smem:[#allocation44_spill]] }
  0xff   : > { %s6161_s9 = sld [smem:[#allocation46_spill]] }
 0x144   : > { %v373_v31 = vpop.permute.xlu0 %372 }
 0x145   : > { %v376_v37 = vsel %vm365_vm4, %v373_v31, %v3050_v14  ;;  %v3339_v31 = vmul.f32 %v1381_v9, %v3062_v16  ;;  %v1215_v9 = vstv %s3216_s23  ;;  %s3423_s23 = sld [smem:[#allocation6 + $0x4]] }
 0x146   : > { %v3441_v21 = vmul.f32 %v1215_v9, %v3029_v5 }
 0x148   : > { %v375_v32 = vpop.permute.xlu1 %374  ;;  %v403_v33 = vpop.permute.xlu0 %402  ;;  %6072 = vst [vmem:[#allocation91_spill] sm:$0xff] %v3441_v21 }
 0x149   : > { %v406_v34 = vsel %vm365_vm4, %v403_v33, %v3027_v4  ;;  %v377_v38 = vsel %vm365_vm4, %v375_v32, %v3062_v16  ;;  %v3344_v32 = vmul.f32 %v1749_v22, %v3050_v14  ;;  %v1767_v33 = vstv %s3228_s22 }
 0x14a   : > { %410 = vrot.lane.b32.xlu0 %v406_v34, %s5731_s12  ;;  %v3470_v28 = vmul.f32 %v1767_v33, %v3029_v5 }
 0x14b   : > { %6065 = sst [smem:[#allocation72_spill]] %s3423_s23 }
 0x14c   : > { %v405_v35 = vpop.permute.xlu1 %404  ;;  %v433_v39 = vpop.permute.xlu0 %432  ;;  %6083 = vst [vmem:[#allocation99_spill] sm:$0xff] %v3470_v28  ;;  %s6134_s23 = sld [smem:[#allocation34_spill]] }
 0x14d   : > { %v407_v36 = vsel %vm365_vm4, %v405_v35, %v3029_v5  ;;  %v436_v40 = vsel %vm365_vm4, %v433_v39, %v3074_v18  ;;  %v3351_v35 = vmul.f32 %v1749_v22, %v3062_v16  ;;  %v3363_v39 = vmul.f32 %v1933_v25, %v3062_v16 }
 0x14e   : > { %412 = vrot.lane.b32.xlu1 %v407_v36, %s5731_s12  ;;  %380 = vrot.lane.b32.xlu0 %v376_v37, %s5731_s12 }
 0x150   : > { %v435_v41 = vpop.permute.xlu1 %434 }
 0x151   : > { %v437_v42 = vsel %vm365_vm4, %v435_v41, %v3066_v17  ;;  %v3418_v41 = vmul.f32 %v663_v57, %v3029_v5 }
 0x152   : > { %382 = vrot.lane.b32.xlu1 %v377_v38, %s5731_s12  ;;  %388 = vrot.lane.b32.xlu0 %v376_v37, %s5735_s13 }
 0x153   : > { %6063 = vst [vmem:[#allocation86_spill] sm:$0xff] %v3418_v41 }
 0x156   : > { %390 = vrot.lane.b32.xlu1 %v377_v38, %s5735_s13  ;;  %418 = vrot.lane.b32.xlu0 %v406_v34, %s5735_s13  ;;  %v3348_v34 = vmul.f32 %v1565_v12, %v3062_v16  ;;  %v3360_v38 = vmul.f32 %v2117_v26, %v3050_v14  ;;  %v847_v12 = vstv %s6043_s28  ;;  %s3401_s28 = sld [smem:[#allocation3 + $0x2b]] }
 0x157   : > { %v3404_v22 = vmul.f32 %v847_v12, %v3027_v4  ;;  %v3421_v37 = vmul.f32 %v847_v12, %v3029_v5  ;;  %v1951_v12 = vstv %s6058_s2  ;;  %s3503_s2 = sld [smem:[#allocation3 + $0x47]] }
 0x158   : > { %v3466_v61 = vmul.f32 %v1951_v12, %v3027_v4  ;;  %v3473_v59 = vmul.f32 %v1951_v12, %v3029_v5 }
 0x159   : > { %6057 = vst [vmem:[#allocation83_spill] sm:$0xff] %v3404_v22  ;;  %6064 = vst [vmem:[#allocation87_spill] sm:$0xff] %v3421_v37 }
 0x15a   : > { %420 = vrot.lane.b32.xlu1 %v407_v36, %s5735_s13  ;;  %440 = vrot.lane.b32.xlu0 %v436_v40, %s5731_s12  ;;  %v3356_v36 = vmul.f32 %v1933_v25, %v3050_v14  ;;  %v1399_v14 = vstv %s6051_s5  ;;  %6081 = vst [vmem:[#allocation98_spill] sm:$0xff] %v3466_v61  ;;  %6084 = vst [vmem:[#allocation100_spill] sm:$0xff] %v3473_v59  ;;  %s6087_s5 = sld [smem:[#allocation80_spill]]  ;;  %v6168_v61 = vstv %s6150_s3 }
 0x15b   : > { %v3437_v57 = vmul.f32 %v1399_v14, %v3027_v4  ;;  %v3451_v7 = vmul.f32 %v1399_v14, %v3029_v5  ;;  %6091 = sst [smem:[#allocation80_spill]] %s3485_s15  ;;  %v681_v14 = vstv %s3321_s17 }
 0x15c   : > { %s3517_s17 = sld [smem:[#allocation3 + $0x58]]  ;;  %v3520_v48 = vmul.f32 %v681_v14, %v3074_v18  ;;  %v3537_v12 = vmul.f32 %v681_v14, %v3066_v17 }
 0x15d   : > { %6071 = vst [vmem:[#allocation90_spill] sm:$0xff] %v3437_v57  ;;  %6076 = vst [vmem:[#allocation94_spill] sm:$0xff] %v3451_v7  ;;  %6099 = sst [smem:[#allocation81_spill]] %s3503_s2 }
 0x15e   : > { %442 = vrot.lane.b32.xlu1 %v437_v42, %s5731_s12  ;;  %448 = vrot.lane.b32.xlu0 %v436_v40, %s5735_s13  ;;  %s3148_s12 = sld [smem:[#allocation3 + $0x12]]  ;;  %v3368_v40 = vmul.f32 %v2117_v26, %v3062_v16  ;;  %v3390_v26 = vmul.f32 %v479_v49, %v3027_v4  ;;  %v1583_v16 = vstv %s6052_s24  ;;  %6102 = vst [vmem:[#allocation105_spill] sm:$0xff] %v3520_v48  ;;  %6107 = vst [vmem:[#allocation108_spill] sm:$0xff] %v3537_v12 }
 0x15f   : > { %s3433_s24 = sld [smem:[#allocation3 + $0x34]]  ;;  %v3447_v11 = vmul.f32 %v1583_v16, %v3027_v4  ;;  %v3461_v25 = vmul.f32 %v1583_v16, %v3029_v5  ;;  %v3478_v16 = vmul.f32 %v2135_v52, %v3027_v4  ;;  %v1049_v52 = vstv %s3379_s16 }
 0x160   : > { %s3531_s16 = sld [smem:[#allocation3 + $0x50]]  ;;  %v3541_v46 = vmul.f32 %v1049_v52, %v3074_v18  ;;  %v3553_v14 = vmul.f32 %v1049_v52, %v3066_v17  ;;  %v6156_v48 = vstv %s6119_s6 }
 0x161   : > { %6074 = vst [vmem:[#allocation93_spill] sm:$0xff] %v3447_v11  ;;  %6080 = vst [vmem:[#allocation97_spill] sm:$0xff] %v3461_v25  ;;  %s6130_s15 = sld [smem:[#allocation32_spill]] }
 0x162   : > { %450 = vrot.lane.b32.xlu1 %v437_v42, %s5735_s13  ;;  %s3152_s13 = sld [smem:[#allocation3 + $0x1b]]  ;;  %v3409_v42 = vmul.f32 %v479_v49, %v3029_v5  ;;  %v3427_v49 = vmul.f32 %v1215_v9, %v3027_v4  ;;  %v3457_v9 = vmul.f32 %v1767_v33, %v3027_v4  ;;  %6086 = vst [vmem:[#allocation101_spill] sm:$0xff] %v3478_v16  ;;  %v6094_v4 = vmov 0  ;;  %6108 = vst [vmem:[#allocation109_spill] sm:$0xff] %v3541_v46 }
 0x163   : > { %v6095_v4 = vsel %vm3495_vm5, 4294967295, %v6094_v4  ;;  %v865_v33 = vstv %s3353_s26  ;;  %s3527_s26 = sld [smem:[#allocation6 + $0x7]]  ;;  %v1233_v5 = vstv %s3401_s28  ;;  %6111 = vst [vmem:[#allocation111_spill] sm:$0xff] %v3553_v14 }
 0x164   : > { %5975 = sst [smem:[#allocation38_spill]] %s3148_s12  ;;  %6059 = vst [vmem:[#allocation84_spill] sm:$0xff] %v3409_v42  ;;  %6067 = vst [vmem:[#allocation88_spill] sm:$0xff] %v3427_v49  ;;  %v3525_v54 = vmul.f32 %v865_v33, %v3074_v18  ;;  %v3547_v50 = vmul.f32 %v865_v33, %v3066_v17  ;;  %v3556_v63 = vmul.f32 %v1233_v5, %v3074_v18 }
 0x165   : > { %s3393_s12 = sld [smem:[#allocation6 + $0x3]]  ;;  %6079 = vst [vmem:[#allocation96_spill] sm:$0xff] %v3457_v9  ;;  %6096 = vst [vmem:[#allocation103_spill] sm:$0xff] %v6095_v4  ;;  %v1417_v45 = vstv %s3433_s24  ;;  %v3561_v12 = vmul.f32 %v1233_v5, %v3066_v17  ;;  %v1969_v5 = vstv %s3509_s0  ;;  %v6170_v9 = vstv %s6152_s30 }
 0x166   : > { %6103 = vst [vmem:[#allocation106_spill] sm:$0xff] %v3525_v54  ;;  %6105 = sst [smem:[#allocation45_spill]] %s3531_s16  ;;  %6110 = vst [vmem:[#allocation110_spill] sm:$0xff] %v3547_v50  ;;  %v3564_v33 = vmul.f32 %v1417_v45, %v3074_v18  ;;  %v3569_v50 = vmul.f32 %v1417_v45, %v3066_v17  ;;  %v3604_v1 = vmul.f32 %v1969_v5, %v3066_v17  ;;  %v6155_v54 = vstv %s6117_s7 }
 0x167   : > { %6112 = vst [vmem:[#allocation112_spill] sm:$0xff] %v3556_v63  ;;  %6113 = vst [vmem:[#allocation113_spill] sm:$0xff] %v3561_v12  ;;  %v2153_v63 = vstv %s3517_s17  ;;  %s6120_s28 = sld [smem:[#allocation28_spill]]  ;;  %v3590_v12 = vmul.f32 %v1785_v44, %v3066_v17 }
 0x168   : > { %5976 = sst [smem:[#allocation39_spill]] %s3152_s13  ;;  %6114 = vst [vmem:[#allocation114_spill] sm:$0xff] %v3564_v33  ;;  %6115 = vst [vmem:[#allocation115_spill] sm:$0xff] %v3569_v50  ;;  %v3609_v6 = vmul.f32 %v2153_v63, %v3074_v18  ;;  %v3613_v45 = vmul.f32 %v2153_v63, %v3066_v17  ;;  %v6153_v33 = vstv %s6134_s23 }
 0x169   : > { %s3331_s13 = sld [smem:[#allocation3 + $0x11]]  ;;  %6124 = vst [vmem:[#allocation119_spill] sm:$0xff] %v3590_v12  ;;  %6133 = vst [vmem:[#allocation122_spill] sm:$0xff] %v3604_v1  ;;  %v6138_v12 = vstv %s6117_s7 }
 0x16a   : > { %6104 = sst [smem:[#allocation43_spill]] %s3527_s26  ;;  %6136 = vst [vmem:[#allocation123_spill] sm:$0xff] %v3609_v6  ;;  %6137 = vst [vmem:[#allocation124_spill] sm:$0xff] %v3613_v45  ;;  %v6148_v6 = vstv %s6130_s15 }
 0x16b   : > { %6053 = sst [smem:[#allocation67_spill]] %s3393_s12 }
 0x16c   : > { %s6122_s24 = sld [smem:[#allocation29_spill]] }
 0x16d   : > { %s6123_s0 = sld [smem:[#allocation30_spill]]  ;;  %v6158_v58 = vstv %s6120_s28 }
 0x16e   : > { %s6126_s17 = sld [smem:[#allocation31_spill]] }
 0x16f   : > { %6032 = sst [smem:[#allocation49_spill]] %s3331_s13 }
 0x170   : > { %s3453_s13 = sld [smem:[#allocation6 + $0x5]] }
 0x171   : > { %s6097_s22 = sld [smem:[#allocation49_spill]] }
 0x172   : > { %6109 = sst [smem:[#allocation49_spill]] %s3544_s4  ;;  %v6142_v43 = vstv %s6122_s24  ;;  %v6159_v59 = vstv %s6122_s24 }
 0x173   : > { %s6135_s2 = sld [smem:[#allocation35_spill]]  ;;  %v6144_v63 = vstv %s6123_s0 }
 0x174   : > { %s6141_s26 = sld [smem:[#allocation36_spill]]  ;;  %v6146_v45 = vstv %s6126_s17  ;;  %v6166_v41 = vstv %s6126_s17 }
 0x175   : > { %s6143_s4 = sld [smem:[#allocation37_spill]] }
 0x176   : > { %6077 = sst [smem:[#allocation95_spill]] %s3453_s13 }
 0x177   : > { %s6132_s13 = sld [smem:[#allocation33_spill]] }
 0x178   : > { %s6145_s16 = sld [smem:[#allocation38_spill]] }
 0x179   : > { %s6147_s12 = sld [smem:[#allocation39_spill]]  ;;  %v6154_v46 = vstv %s6135_s2 }
 0x17a   : > { %s6169_s7 = sld [smem:[#allocation48_spill]] }
 0x17b   : > { %v6163_v7 = vstv %s6143_s4  ;;  %s6236_s24 = sld [smem:[#allocation71_spill]] }
 0x17c   : > { %s6249_s17 = sld [smem:[#allocation74_spill]] }
 0x17d   : > { %v6151_v47 = vstv %s6132_s13 }
 0x17e   : > { %v6164_v21 = vstv %s6145_s16 }
 0x17f   : > { %v6165_v37 = vstv %s6147_s12 }
 0x1bc   : > { %v411_v56 = vpop.permute.xlu0 %410 }
 0x1bd   : > { %v416_v50 = vsel %vm3495_vm5, 0.0, %v411_v56  ;;  %v3600_v56 = vmul.f32 %v1969_v5, %v3074_v18  ;;  %v6139_v5 = vstv %s6119_s6  ;;  %s6232_s6 = sld [smem:[#allocation68_spill]] }
 0x1be   : > { %v3617_v3 = vmul.f32 %v6138_v12, %v416_v50  ;;  %v3621_v1 = vmul.f32 %v6139_v5, %v416_v50  ;;  %v3631_v17 = vmul.f32 %v6142_v43, %v416_v50  ;;  %v3635_v12 = vmul.f32 %v6144_v63, %v416_v50 }
 0x1bf   : > { %6131 = vst [vmem:[#allocation121_spill] sm:$0xff] %v3600_v56  ;;  %v6140_v56 = vstv %s6120_s28  ;;  %v3639_v5 = vmul.f32 %v6146_v45, %v416_v50  ;;  %v3647_v43 = vmul.f32 %v6151_v47, %v416_v50  ;;  %v3651_v63 = vmul.f32 %v6153_v33, %v416_v50  ;;  %s6234_s28 = sld [smem:[#allocation70_spill]] }
 0x1c0   : > { %v413_v52 = vpop.permute.xlu1 %412  ;;  %v381_v14 = vpop.permute.xlu0 %380  ;;  %v3655_v45 = vmul.f32 %v6154_v46, %v416_v50  ;;  %v6160_v33 = vstv %s6141_s26  ;;  %v6162_v46 = vstv %s6123_s0  ;;  %s6247_s0 = sld [smem:[#allocation73_spill]] }
 0x1c1   : > { %v417_v44 = vsel %vm3495_vm5, 0.0, %v413_v52  ;;  %v3625_v52 = vmul.f32 %v6140_v56, %v416_v50  ;;  %v386_v18 = vsel %vm3495_vm5, 0.0, %v381_v14  ;;  %v3643_v56 = vmul.f32 %v6148_v6, %v416_v50 }
 0x1c2   : > { %v3659_v6 = vmul.f32 %v6155_v54, %v417_v44  ;;  %v3663_v51 = vmul.f32 %v6156_v48, %v417_v44  ;;  %v3667_v47 = vmul.f32 %v6158_v58, %v417_v44  ;;  %v3671_v28 = vmul.f32 %v6159_v59, %v417_v44 }
 0x1c3   : > { %v458_v25 = vmul.f32 %v6160_v33, %v386_v18  ;;  %v3677_v50 = vmul.f32 %v6162_v46, %v417_v44  ;;  %v642_v54 = vmul.f32 %v6163_v7, %v386_v18  ;;  %v826_v30 = vmul.f32 %v6164_v21, %v386_v18 }
 0x1c4   : > { %v383_v55 = vpop.permute.xlu1 %382  ;;  %v389_v14 = vpop.permute.xlu0 %388  ;;  %v1010_v48 = vmul.f32 %v6165_v37, %v386_v18  ;;  %v3687_v42 = vmul.f32 %v6166_v41, %v417_v44  ;;  %v6167_v58 = vstv %s6149_s19  ;;  %v1378_v59 = vmul.f32 %v6168_v61, %v386_v18 }
 0x1c5   : > { %v1194_v16 = vmul.f32 %v6167_v58, %v386_v18  ;;  %v1562_v11 = vmul.f32 %v6170_v9, %v386_v18  ;;  %v6171_v33 = vstv %s6130_s15  ;;  %v6173_v46 = vstv %s6132_s13  ;;  %s6182_s13 = sld [smem:[#allocation51_spill]] }
 0x1c6   : > { %v3697_v57 = vmul.f32 %v6171_v33, %v417_v44  ;;  %v3701_v49 = vmul.f32 %v6173_v46, %v417_v44  ;;  %v6175_v7 = vstv %s6134_s23  ;;  %v6177_v37 = vstv %s6157_s8  ;;  %s6184_s15 = sld [smem:[#allocation52_spill]] }
 0x1c7   : > { %v3705_v21 = vmul.f32 %v6175_v7, %v417_v44  ;;  %v1746_v53 = vmul.f32 %v6177_v37, %v386_v18  ;;  %v6178_v41 = vstv %s6135_s2  ;;  %v464_v58 = vadd.f32 %v3278_v60, %v458_v25  ;;  %s6186_s23 = sld [smem:[#allocation53_spill]] }
 0x1c8   : > { %6172 = vst [vmem:[#allocation125_spill] sm:$0xff] %v3697_v57  ;;  %6174 = vst [vmem:[#allocation126_spill] sm:$0xff] %v3701_v49  ;;  %v3711_v22 = vmul.f32 %v6178_v41, %v417_v44  ;;  %v6180_v61 = vstv %s6161_s9  ;;  %v387_v9 = vsel %vm3495_vm5, 0.0, %v383_v55  ;;  %v391_v33 = vpop.permute.xlu1 %390  ;;  %v419_v46 = vpop.permute.xlu0 %418  ;;  %v648_v7 = vadd.f32 %v3284_v62, %v642_v54  ;;  %s6190_s2 = sld [smem:[#allocation54_spill]] }
 0x1c9   : > { %6176 = vst [vmem:[#allocation127_spill] sm:$0xff] %v3705_v21  ;;  %v1930_v2 = vmul.f32 %v6180_v61, %v386_v18  ;;  %v832_v37 = vadd.f32 %v3288_v0, %v826_v30  ;;  %v1016_v44 = vadd.f32 %v3295_v8, %v1010_v48  ;;  %v6181_v41 = vstv %s6169_s7 }
 0x1ca   : > { %6179 = vst [vmem:[#allocation128_spill] sm:$0xff] %v3711_v22  ;;  %v2114_v60 = vmul.f32 %v6181_v41, %v386_v18  ;;  %v1200_v25 = vadd.f32 %v3314_v20, %v1194_v16  ;;  %v1384_v55 = vadd.f32 %v3324_v24, %v1378_v59  ;;  %v1568_v61 = vadd.f32 %v3335_v29, %v1562_v11 }
 0x1cb   : > { %v394_v62 = vsel %vm3594_vm6, 0.0, %v389_v14  ;;  %v1752_v0 = vadd.f32 %v3344_v32, %v1746_v53  ;;  %v6183_v8 = vstv %s6141_s26  ;;  %v395_v18 = vsel %vm3594_vm6, 0.0, %v391_v33  ;;  %s6195_s26 = sld [smem:[#allocation55_spill]] }
 0x1cc   : > { %v459_v30 = vmul.f32 %v6183_v8, %v387_v9  ;;  %v3735_v20 = vsel %vm3594_vm6, 0.0, %v419_v46  ;;  %v1936_v11 = vadd.f32 %v3356_v36, %v1930_v2  ;;  %v6187_v24 = vstv %s6143_s4  ;;  %s6202_s4 = sld [smem:[#allocation56_spill]] }
 0x1cd   : > { %6185 = vst [vmem:[#allocation129_spill] sm:$0xff] %v3735_v20  ;;  %v643_v29 = vmul.f32 %v6187_v24, %v387_v9  ;;  %v6188_v16 = vstv %s6145_s16  ;;  %v6189_v54 = vstv %s6147_s12  ;;  %v2120_v53 = vadd.f32 %v3360_v38, %v2114_v60  ;;  %s6203_s12 = sld [smem:[#allocation57_spill]] }
 0x1ce   : > { %v827_v14 = vmul.f32 %v6188_v16, %v387_v9  ;;  %v1011_v32 = vmul.f32 %v6189_v54, %v387_v9  ;;  %v6191_v48 = vstv %s6149_s19  ;;  %v6192_v33 = vstv %s6033_s11  ;;  %s6205_s19 = sld [smem:[#allocation58_spill]] }
 0x1cf   : > { %v1195_v59 = vmul.f32 %v6191_v48, %v387_v9  ;;  %v468_v41 = vmul.f32 %v6192_v33, %v394_v62  ;;  %v6193_v8 = vstv %s6182_s13  ;;  %v6194_v46 = vstv %s6150_s3  ;;  %s6225_s3 = sld [smem:[#allocation64_spill]] }
 0x1d0   : > { %v652_v4 = vmul.f32 %v6193_v8, %v394_v62  ;;  %v1379_v15 = vmul.f32 %v6194_v46, %v387_v9  ;;  %v6196_v20 = vstv %s6152_s30  ;;  %v6197_v2 = vstv %s6157_s8  ;;  %s6206_s8 = sld [smem:[#allocation59_spill]] }
 0x1d1   : > { %v1563_v36 = vmul.f32 %v6196_v20, %v387_v9  ;;  %v1747_v24 = vmul.f32 %v6197_v2, %v387_v9  ;;  %v6198_v22 = vstv %s6161_s9  ;;  %v465_v54 = vadd.f32 %v3299_v10, %v459_v30  ;;  %s6223_s9 = sld [smem:[#allocation62_spill]] }
 0x1d2   : > { %v1931_v16 = vmul.f32 %v6198_v22, %v387_v9  ;;  %v6199_v21 = vstv %s6169_s7  ;;  %v6200_v38 = vstv %s6184_s15  ;;  %v6201_v48 = vstv %s6186_s23  ;;  %s6227_s30 = sld [smem:[#allocation65_spill]] }
 0x1d3   : > { %v2115_v49 = vmul.f32 %v6199_v21, %v387_v9  ;;  %v836_v60 = vmul.f32 %v6200_v38, %v394_v62  ;;  %v1020_v57 = vmul.f32 %v6201_v48, %v394_v62  ;;  %v649_v33 = vadd.f32 %v3306_v13, %v643_v29  ;;  %s6229_s16 = sld [smem:[#allocation66_spill]] }
 0x1d4   : > { %v833_v8 = vadd.f32 %v3309_v19, %v827_v14  ;;  %v1017_v20 = vadd.f32 %v3319_v23, %v1011_v32  ;;  %v6204_v46 = vstv %s6190_s2  ;;  %v1201_v10 = vadd.f32 %v3329_v27, %v1195_v59  ;;  %s6267_s7 = sld [smem:[#allocation75_spill]] }
 0x1d5   : > { %v1204_v2 = vmul.f32 %v6204_v46, %v394_v62  ;;  %v470_v22 = vadd.f32 %v468_v41, %v464_v58  ;;  %v654_v21 = vadd.f32 %v652_v4, %v648_v7  ;;  %v6207_v9 = vstv %s6195_s26  ;;  %s6347_s23 = sld [smem:[#allocation95_spill]] }
 0x1d6   : > { %v1388_v30 = vmul.f32 %v6207_v9, %v394_v62  ;;  %v1385_v38 = vadd.f32 %v3339_v31, %v1379_v15  ;;  %v1569_v13 = vadd.f32 %v3348_v34, %v1563_v36  ;;  %v1753_v19 = vadd.f32 %v3351_v35, %v1747_v24  ;;  %s4043_s2 = sld [smem:[#allocation6 + $0x9]] }
 0x1d7   : > { %v1937_v23 = vadd.f32 %v3363_v39, %v1931_v16  ;;  %v2121_v29 = vadd.f32 %v3368_v40, %v2115_v49  ;;  %v838_v27 = vadd.f32 %v836_v60, %v832_v37  ;;  %v1022_v58 = vadd.f32 %v1020_v57, %v1016_v44  ;;  %s6350_s26 = sld [smem:[#allocation80_spill]] }
 0x1d8   : > { %v6208_v4 = vstv %s6202_s4  ;;  %v1206_v14 = vadd.f32 %v1204_v2, %v1200_v25  ;;  %v6209_v32 = vstv %s6203_s12  ;;  %v6210_v15 = vstv %s6205_s19  ;;  %s6355_s4 = sld [smem:[#allocation49_spill]] }
 0x1d9   : > { %v1572_v7 = vmul.f32 %v6208_v4, %v394_v62  ;;  %v1756_v31 = vmul.f32 %v6209_v32, %v394_v62  ;;  %v1940_v59 = vmul.f32 %v6210_v15, %v394_v62  ;;  %v6211_v34 = vstv %s6206_s8  ;;  %s6357_s12 = sld [smem:[#allocation43_spill]] }
 0x1da   : > { %v2124_v41 = vmul.f32 %v6211_v34, %v394_v62  ;;  %v476_v35 = vadd.f32 %v3617_v3, %v470_v22  ;;  %v660_v39 = vadd.f32 %v3621_v1, %v654_v21  ;;  %v1390_v36 = vadd.f32 %v1388_v30, %v1384_v55 }
 0x1db   : > { %v6212_v40 = vstv %s6033_s11  ;;  %v6213_v57 = vstv %s6182_s13  ;;  %v6214_v44 = vstv %s6184_s15  ;;  %v6215_v24 = vmov %v6201_v48  ;;  %s6221_s11 = sld [smem:[#allocation61_spill]] }
 0x1dc   : > { %v469_v49 = vmul.f32 %v6212_v40, %v395_v18  ;;  %v653_v37 = vmul.f32 %v6213_v57, %v395_v18  ;;  %v837_v25 = vmul.f32 %v6214_v44, %v395_v18  ;;  %v1021_v16 = vmul.f32 %v6215_v24, %v395_v18  ;;  %s6271_s13 = sld [smem:[#allocation77_spill]] }
 0x1dd   : > { %v6216_v60 = vmov %v6204_v46  ;;  %v844_v62 = vadd.f32 %v3625_v52, %v838_v27  ;;  %v1028_v3 = vadd.f32 %v3631_v17, %v1022_v58  ;;  %v1574_v46 = vadd.f32 %v1572_v7, %v1568_v61  ;;  %s6272_s15 = sld [smem:[#allocation78_spill]] }
 0x1de   : > { %v1205_v48 = vmul.f32 %v6216_v60, %v395_v18  ;;  %v6217_v1 = vmov %v6207_v9  ;;  %v1758_v55 = vadd.f32 %v1756_v31, %v1752_v0  ;;  %v1942_v22 = vadd.f32 %v1940_v59, %v1936_v11  ;;  %v6235_v31 = vld [vmem:[#allocation127_spill] sm:$0xff] }
 0x1df   : > { %v1389_v2 = vmul.f32 %v6217_v1, %v395_v18  ;;  %v2126_v21 = vadd.f32 %v2124_v41, %v2120_v53  ;;  %v6218_v9 = vmov %v6208_v4  ;;  %v471_v4 = vadd.f32 %v469_v49, %v465_v54  ;;  %v6237_v41 = vld [vmem:[#allocation128_spill] sm:$0xff] }
 0x1e0   : > { %v1573_v30 = vmul.f32 %v6218_v9, %v395_v18  ;;  %v1757_v15 = vmul.f32 %v6209_v32, %v395_v18  ;;  %v6219_v34 = vstv %s6205_s19  ;;  %v6220_v57 = vstv %s6206_s8  ;;  %v6239_v49 = vld [vmem:[#allocation96_spill] sm:$0xff]  ;;  %s6377_s19 = smov 16   ;;  %s6378_s8 = smov 127  }
 0x1e1   : > { %v1941_v40 = vmul.f32 %v6219_v34, %v395_v18  ;;  %v2125_v44 = vmul.f32 %v6220_v57, %v395_v18  ;;  %v655_v24 = vadd.f32 %v653_v37, %v649_v33  ;;  %v839_v60 = vadd.f32 %v837_v25, %v833_v8  ;;  %v6240_v25 = vld [vmem:[#allocation98_spill] sm:$0xff] }
 0x1e2   : > { %v1023_v52 = vadd.f32 %v1021_v16, %v1017_v20  ;;  %v1207_v27 = vadd.f32 %v1205_v48, %v1201_v10  ;;  %v1212_v17 = vadd.f32 %v3635_v12, %v1206_v14  ;;  %v1396_v61 = vadd.f32 %v3639_v5, %v1390_v36  ;;  %v6241_v48 = vld [vmem:[#allocation101_spill] sm:$0xff] }
 0x1e3   : > { %v1580_v0 = vadd.f32 %v3643_v56, %v1574_v46  ;;  %v1391_v11 = vadd.f32 %v1389_v2, %v1385_v38  ;;  %v1764_v53 = vadd.f32 %v3647_v43, %v1758_v55  ;;  %v1948_v54 = vadd.f32 %v3651_v63, %v1942_v22  ;;  %v421_v2 = vpop.permute.xlu1 %420 }
 0x1e4   : > { %v2132_v58 = vadd.f32 %v3655_v45, %v2126_v21  ;;  %v1575_v7 = vadd.f32 %v1573_v30, %v1569_v13  ;;  %v477_v18 = vadd.f32 %v3659_v6, %v471_v4  ;;  %v1759_v33 = vadd.f32 %v1757_v15, %v1753_v19  ;;  %v6222_v45 = vld [vmem:[#allocation82_spill] sm:$0xff]  ;;  %v6224_v6 = vld [vmem:[#allocation83_spill] sm:$0xff] }
 0x1e5   : > { %v1943_v8 = vadd.f32 %v1941_v40, %v1937_v23  ;;  %v2127_v20 = vadd.f32 %v2125_v44, %v2121_v29  ;;  %v661_v10 = vadd.f32 %v3663_v51, %v655_v24  ;;  %v845_v12 = vadd.f32 %v3667_v47, %v839_v60  ;;  %v6226_v19 = vld [vmem:[#allocation125_spill] sm:$0xff]  ;;  %v6228_v23 = vld [vmem:[#allocation85_spill] sm:$0xff] }
 0x1e6   : > { %v1029_v5 = vadd.f32 %v3671_v28, %v1023_v52  ;;  %v1213_v56 = vadd.f32 %v3677_v50, %v1207_v27  ;;  %v1397_v43 = vadd.f32 %v3687_v42, %v1391_v11  ;;  %v482_v63 = vadd.f32 %v3390_v26, %v476_v35  ;;  %v6230_v28 = vld [vmem:[#allocation88_spill] sm:$0xff]  ;;  %v6231_v50 = vld [vmem:[#allocation90_spill] sm:$0xff] }
 0x1e7   : > { %v666_v38 = vadd.f32 %v6222_v45, %v660_v39  ;;  %v850_v13 = vadd.f32 %v6224_v6, %v844_v62  ;;  %v1581_v51 = vadd.f32 %v6226_v19, %v1575_v7  ;;  %v1034_v47 = vadd.f32 %v6228_v23, %v1028_v3  ;;  %v6233_v42 = vld [vmem:[#allocation126_spill] sm:$0xff]  ;;  %v6242_v3 = vld [vmem:[#allocation129_spill] sm:$0xff] }
 0x1e8   : > { %v1218_v29 = vadd.f32 %v6230_v28, %v1212_v17  ;;  %v1402_v14 = vadd.f32 %v6231_v50, %v1396_v61  ;;  %v1765_v26 = vadd.f32 %v6233_v42, %v1759_v33  ;;  %v1949_v59 = vadd.f32 %v6235_v31, %v1943_v8  ;;  %v6238_v39 = vld [vmem:[#allocation93_spill] sm:$0xff]  ;;  %v441_v42 = vpop.permute.xlu0 %440 }
 0x1e9   : > { %v2133_v35 = vadd.f32 %v6237_v41, %v2127_v20  ;;  %v1586_v36 = vadd.f32 %v6238_v39, %v1580_v0  ;;  %v1770_v37 = vadd.f32 %v6239_v49, %v1764_v53  ;;  %v1954_v16 = vadd.f32 %v6240_v25, %v1948_v54  ;;  %v6254_v7 = vld [vmem:[#allocation84_spill] sm:$0xff]  ;;  %v6262_v39 = vld [vmem:[#allocation91_spill] sm:$0xff]  ;;  %v6263_v49 = vld [vmem:[#allocation94_spill] sm:$0xff] }
 0x1ea   : > { %v2138_v62 = vadd.f32 %v6241_v48, %v2132_v58  ;;  %v6243_v46 = vstv %s6221_s11  ;;  %v6244_v55 = vstv %s6223_s9  ;;  %v6245_v21 = vstv %s6225_s3  ;;  %s6379_s11 = smov 113   ;;  %s4725_s9 = sld [smem:[#allocation8 + $0x1]] }
 0x1eb   : > { %v486_v1 = vmul.f32 %v6243_v46, %v6242_v3  ;;  %v670_v22 = vmul.f32 %v6244_v55, %v6242_v3  ;;  %v854_v9 = vmul.f32 %v6245_v21, %v6242_v3  ;;  %v6246_v30 = vstv %s6227_s30  ;;  %s4727_s3 = sld [smem:[#allocation8 + $0x4]] }
 0x1ec   : > { %v1038_v4 = vmul.f32 %v6246_v30, %v6242_v3  ;;  %v6248_v32 = vstv %s6229_s16  ;;  %v6250_v40 = vstv %s6232_s6  ;;  %v6251_v44 = vstv %s6234_s28  ;;  %s4731_s30 = sld [smem:[#allocation8 + $0x7]] }
 0x1ed   : > { %v1222_v15 = vmul.f32 %v6248_v32, %v6242_v3  ;;  %v488_v34 = vadd.f32 %v486_v1, %v482_v63  ;;  %v1406_v57 = vmul.f32 %v6250_v40, %v6242_v3  ;;  %v1590_v24 = vmul.f32 %v6251_v44, %v6242_v3  ;;  %v6266_v1 = vld [vmem:[#allocation97_spill] sm:$0xff]  ;;  %s4733_s16 = sld [smem:[#allocation8 + $0xa]] }
 0x1ee   : > { %v6252_v60 = vstv %s6236_s24  ;;  %v672_v27 = vadd.f32 %v670_v22, %v666_v38  ;;  %v856_v17 = vadd.f32 %v854_v9, %v850_v13  ;;  %v1040_v61 = vadd.f32 %v1038_v4, %v1034_v47  ;;  %v6257_v38 = vld [vmem:[#allocation86_spill] sm:$0xff]  ;;  %v6274_v4 = vld [vmem:[#allocation99_spill] sm:$0xff]  ;;  %s4735_s6 = sld [smem:[#allocation8 + $0xd]] }
 0x1ef   : > { %v1774_v52 = vmul.f32 %v6252_v60, %v6242_v3  ;;  %v425_v11 = vsel %vm3594_vm6, 0.0, %v421_v2  ;;  %v1224_v53 = vadd.f32 %v1222_v15, %v1218_v29  ;;  %v1408_v54 = vadd.f32 %v1406_v57, %v1402_v14  ;;  %v6260_v29 = vld [vmem:[#allocation87_spill] sm:$0xff]  ;;  %v6261_v14 = vld [vmem:[#allocation89_spill] sm:$0xff]  ;;  %s4741_s28 = sld [smem:[#allocation8 + $0x10]] }
 0x1f0   : > { %v1592_v58 = vadd.f32 %v1590_v24, %v1586_v36  ;;  %v483_v33 = vadd.f32 %v6254_v7, %v477_v18  ;;  %v6255_v20 = vstv %s6247_s0  ;;  %v6256_v45 = vstv %s6249_s17  ;;  %s4745_s24 = sld [smem:[#allocation8 + $0x13]] }
 0x1f1   : > { %v1776_v8 = vadd.f32 %v1774_v52, %v1770_v37  ;;  %v1958_v63 = vmul.f32 %v6255_v20, %v6242_v3  ;;  %v2142_v6 = vmul.f32 %v6256_v45, %v6242_v3  ;;  %v667_v13 = vadd.f32 %v6257_v38, %v661_v10  ;;  %v449_v38 = vpop.permute.xlu0 %448  ;;  %s4747_s0 = sld [smem:[#allocation8 + $0x16]] }
 0x1f2   : > { %v6258_v19 = vmov %v6243_v46  ;;  %v6259_v47 = vmov %v6244_v55  ;;  %v851_v50 = vadd.f32 %v6260_v29, %v845_v12  ;;  %v1035_v18 = vadd.f32 %v6261_v14, %v1029_v5 }
 0x1f3   : > { %v487_v23 = vmul.f32 %v6258_v19, %v425_v11  ;;  %v671_v28 = vmul.f32 %v6259_v47, %v425_v11  ;;  %v1960_v31 = vadd.f32 %v1958_v63, %v1954_v16  ;;  %v2144_v41 = vadd.f32 %v2142_v6, %v2138_v62  ;;  %v443_v6 = vpop.permute.xlu1 %442 }
 0x1f4   : > { %v1219_v36 = vadd.f32 %v6262_v39, %v1213_v56  ;;  %v1403_v37 = vadd.f32 %v6263_v49, %v1397_v43  ;;  %v6264_v10 = vmov %v6245_v21  ;;  %v6265_v3 = vmov %v6246_v30 }
 0x1f5   : > { %v489_v25 = vadd.f32 %v487_v23, %v483_v33  ;;  %v855_v48 = vmul.f32 %v6264_v10, %v425_v11  ;;  %v1039_v46 = vmul.f32 %v6265_v3, %v425_v11  ;;  %v1587_v2 = vadd.f32 %v6266_v1, %v1581_v51  ;;  %v6278_v33 = vld [vmem:[#allocation102_spill] sm:$0xff] }
 0x1f6   : > { %v673_v12 = vadd.f32 %v671_v28, %v667_v13  ;;  %v6268_v5 = vmov %v6248_v32  ;;  %v6269_v22 = vmov %v6250_v40  ;;  %v446_v56 = vsel %vm3495_vm5, 0.0, %v441_v42 }
 0x1f7   : > { %v1223_v55 = vmul.f32 %v6268_v5, %v425_v11  ;;  %v1407_v16 = vmul.f32 %v6269_v22, %v425_v11  ;;  %v857_v43 = vadd.f32 %v855_v48, %v851_v50  ;;  %v1041_v21 = vadd.f32 %v1039_v46, %v1035_v18 }
 0x1f8   : > { %v6273_v9 = vmov %v6251_v44  ;;  %v1771_v51 = vadd.f32 %v6274_v4, %v1765_v26  ;;  %v6275_v40 = vmov %v6252_v60  ;;  %v6276_v44 = vld [vmem:[#allocation100_spill] sm:$0xff]  ;;  %v6277_v52 = vmov %v6255_v20 }
 0x1f9   : > { %v1591_v30 = vmul.f32 %v6273_v9, %v425_v11  ;;  %v1225_v32 = vadd.f32 %v1223_v55, %v1219_v36  ;;  %v1409_v15 = vadd.f32 %v1407_v16, %v1403_v37  ;;  %v1775_v57 = vmul.f32 %v6275_v40, %v425_v11 }
 0x1fa   : > { %v1955_v24 = vadd.f32 %v6276_v44, %v1949_v59  ;;  %v1959_v7 = vmul.f32 %v6277_v52, %v425_v11  ;;  %v2139_v20 = vadd.f32 %v6278_v33, %v2133_v35  ;;  %v6279_v63 = vstv %s6267_s7  ;;  %v6295_v33 = vld [vmem:[#allocation104_spill] sm:$0xff]  ;;  %s4751_s7 = sld [smem:[#allocation8 + $0x1c]] }
 0x1fb   : > { %v1593_v60 = vadd.f32 %v1591_v30, %v1587_v2  ;;  %v492_v45 = vmul.f32 %v6279_v63, %v446_v56  ;;  %v6280_v26 = vstv %s3245_s25  ;;  %v6281_v19 = vstv %s6271_s13  ;;  %s6310_s25 = sld [smem:[#allocation63_spill]] }
 0x1fc   : > { %v676_v13 = vmul.f32 %v6280_v26, %v446_v56  ;;  %v860_v23 = vmul.f32 %v6281_v19, %v446_v56  ;;  %v6282_v47 = vstv %s6272_s15  ;;  %v6283_v29 = vstv %s6082_s29  ;;  %s6323_s29 = sld [smem:[#allocation67_spill]] }
 0x1fd   : > { %v1044_v28 = vmul.f32 %v6282_v47, %v446_v56  ;;  %v1228_v50 = vmul.f32 %v6283_v29, %v446_v56  ;;  %v6284_v59 = vstv %s6249_s17  ;;  %v6285_v18 = vstv %s3255_s21  ;;  %s6308_s21 = sld [smem:[#allocation50_spill]] }
 0x1fe   : > { %v2143_v14 = vmul.f32 %v6284_v59, %v425_v11  ;;  %v1412_v42 = vmul.f32 %v6285_v18, %v446_v56  ;;  %v6286_v39 = vstv %s3261_s1  ;;  %v6287_v35 = vstv %s6087_s5  ;;  %s6306_s1 = sld [smem:[#allocation47_spill]] }
 0x1ff   : > { %v1596_v36 = vmul.f32 %v6286_v39, %v446_v56  ;;  %v1780_v49 = vmul.f32 %v6287_v35, %v446_v56  ;;  %v1777_v37 = vadd.f32 %v1775_v57, %v1771_v51  ;;  %v6288_v10 = vstv %s6089_s10  ;;  %s6311_s10 = sld [smem:[#allocation69_spill]] }
 0x200   : > { %v1964_v48 = vmul.f32 %v6288_v10, %v446_v56  ;;  %v447_v3 = vsel %vm3495_vm5, 0.0, %v443_v6  ;;  %v3923_v46 = vsel %vm3594_vm6, 0.0, %v449_v38  ;;  %v1961_v11 = vadd.f32 %v1959_v7, %v1955_v24  ;;  %v6299_v38 = vld [vmem:[#allocation105_spill] sm:$0xff]  ;;  %s6314_s5 = sld [smem:[#allocation92_spill]] }
 0x201   : > { %v3925_v1 = vadd.f32 %v2143_v14, %v2139_v20  ;;  %v494_v2 = vadd.f32 %v492_v45, %v488_v34  ;;  %v6289_v5 = vstv %s6090_s14  ;;  %v678_v22 = vadd.f32 %v676_v13, %v672_v27  ;;  %s4749_s17 = sld [smem:[#allocation8 + $0x19]] }
 0x202   : > { %v2148_v55 = vmul.f32 %v6289_v5, %v446_v56  ;;  %v862_v16 = vadd.f32 %v860_v23, %v856_v17  ;;  %v1046_v9 = vadd.f32 %v1044_v28, %v1040_v61  ;;  %v1230_v30 = vadd.f32 %v1228_v50, %v1224_v53  ;;  %s4755_s13 = sld [smem:[#allocation8 + $0x1f]] }
 0x203   : > { %v1414_v4 = vadd.f32 %v1412_v42, %v1408_v54  ;;  %v1598_v51 = vadd.f32 %v1596_v36, %v1592_v58  ;;  %v3929_v40 = vadd.f32 %v1780_v49, %v1776_v8  ;;  %v6290_v57 = vmov %v6279_v63  ;;  %s4757_s15 = sld [smem:[#allocation8 + $0x22]] }
 0x204   : > { %v493_v44 = vmul.f32 %v6290_v57, %v447_v3  ;;  %v3933_v34 = vadd.f32 %v1964_v48, %v1960_v31  ;;  %v6291_v56 = vmov %v6280_v26  ;;  %v6292_v27 = vmov %v6281_v19 }
 0x205   : > { %v677_v24 = vmul.f32 %v6291_v56, %v447_v3  ;;  %v861_v52 = vmul.f32 %v6292_v27, %v447_v3  ;;  %v6293_v17 = vmov %v6282_v47  ;;  %v3941_v61 = vadd.f32 %v2148_v55, %v2144_v41  ;;  %v6317_v27 = vld [vmem:[#allocation108_spill] sm:$0xff] }
 0x206   : > { %v1045_v7 = vmul.f32 %v6293_v17, %v447_v3  ;;  %v6294_v53 = vmov %v6283_v29  ;;  %v500_v58 = vadd.f32 %v6295_v33, %v494_v2  ;;  %v6296_v8 = vstv %s6092_s18  ;;  %v6303_v29 = vld [vmem:[#allocation106_spill] sm:$0xff]  ;;  %s6342_s18 = sld [smem:[#allocation72_spill]] }
 0x207   : > { %v1229_v54 = vmul.f32 %v6294_v53, %v447_v3  ;;  %v504_v20 = vmul.f32 %v6296_v8, %v3923_v46  ;;  %v6297_v63 = vmov %v6285_v18  ;;  %v6298_v6 = vmov %v6286_v39 }
 0x208   : > { %v1413_v45 = vmul.f32 %v6297_v63, %v447_v3  ;;  %v1597_v31 = vmul.f32 %v6298_v6, %v447_v3  ;;  %v684_v26 = vadd.f32 %v6299_v38, %v678_v22  ;;  %v6300_v13 = vstv %s6097_s22  ;;  %s6345_s22 = sld [smem:[#allocation45_spill]] }
 0x209   : > { %v688_v19 = vmul.f32 %v6300_v13, %v3923_v46  ;;  %v6301_v23 = vmov %v6287_v35  ;;  %v6302_v47 = vmov %v6288_v10  ;;  %v868_v50 = vadd.f32 %v6303_v29, %v862_v16  ;;  %v451_v35 = vpop.permute.xlu1 %450  ;;  %v6305_v10 = vld [vmem:[#allocation109_spill] sm:$0xff] }
 0x20a   : > { %v1781_v41 = vmul.f32 %v6301_v23, %v447_v3  ;;  %v1965_v28 = vmul.f32 %v6302_v47, %v447_v3  ;;  %v6304_v59 = vstv %s6100_s20  ;;  %v495_v18 = vadd.f32 %v493_v44, %v489_v25  ;;  %s6333_s20 = sld [smem:[#allocation81_spill]] }
 0x20b   : > { %v872_v14 = vmul.f32 %v6304_v59, %v3923_v46  ;;  %v679_v42 = vadd.f32 %v677_v24, %v673_v12  ;;  %v863_v39 = vadd.f32 %v861_v52, %v857_v43  ;;  %v1047_v36 = vadd.f32 %v1045_v7, %v1041_v21  ;;  %v6313_v24 = vld [vmem:[#allocation107_spill] sm:$0xff] }
 0x20c   : > { %v1231_v49 = vadd.f32 %v1229_v54, %v1225_v32  ;;  %v1052_v48 = vadd.f32 %v6305_v10, %v1046_v9  ;;  %v506_v2 = vadd.f32 %v504_v20, %v500_v58  ;;  %v6307_v5 = vstv %s3385_s27  ;;  %v6312_v9 = vld [vmem:[#allocation112_spill] sm:$0xff]  ;;  %v6322_v20 = vld [vmem:[#allocation110_spill] sm:$0xff]  ;;  %s4035_s27 = sld [smem:[#allocation6 + $0x8]] }
 0x20d   : > { %v1056_v55 = vmul.f32 %v6307_v5, %v3923_v46  ;;  %v1415_v22 = vadd.f32 %v1413_v45, %v1409_v15  ;;  %v1599_v16 = vadd.f32 %v1597_v31, %v1593_v60  ;;  %v6309_v57 = vstv %s6090_s14  ;;  %s6316_s14 = sld [smem:[#allocation79_spill]]  ;;  %v6325_v31 = vld [vmem:[#allocation116_spill] sm:$0xff] }
 0x20e   : > { %v2149_v56 = vmul.f32 %v6309_v57, %v447_v3  ;;  %v690_v25 = vadd.f32 %v688_v19, %v684_v26  ;;  %v1783_v12 = vadd.f32 %v1781_v41, %v1777_v37  ;;  %v3971_v43 = vadd.f32 %v1965_v28, %v1961_v11  ;;  %v6318_v11 = vld [vmem:[#allocation114_spill] sm:$0xff] }
 0x20f   : > { %v874_v21 = vadd.f32 %v872_v14, %v868_v50  ;;  %v3975_v32 = vsel %vm3594_vm6, 0.0, %v451_v35  ;;  %v1236_v44 = vadd.f32 %v6312_v9, %v1230_v30  ;;  %v501_v15 = vadd.f32 %v6313_v24, %v495_v18  ;;  %v6334_v35 = vld [vmem:[#allocation113_spill] sm:$0xff] }
 0x210   : > { %v6315_v60 = vmov %v6296_v8  ;;  %v685_v37 = vadd.f32 %v6317_v27, %v679_v42  ;;  %v1420_v52 = vadd.f32 %v6318_v11, %v1414_v4  ;;  %v6319_v17 = vstv %s6306_s1  ;;  %s4759_s1 = sld [smem:[#allocation8 + $0x25]] }
 0x211   : > { %v505_v3 = vmul.f32 %v6315_v60, %v3975_v32  ;;  %v510_v7 = vadd.f32 %v6319_v17, %v506_v2  ;;  %v1058_v53 = vadd.f32 %v1056_v55, %v1052_v48  ;;  %v6320_v54 = vmov %v6300_v13 }
 0x212   : > { %v689_v33 = vmul.f32 %v6320_v54, %v3975_v32  ;;  %v6321_v30 = vstv %s6308_s21  ;;  %v869_v63 = vadd.f32 %v6322_v20, %v863_v39  ;;  %v6324_v45 = vmov %v6304_v59  ;;  %v6330_v59 = vld [vmem:[#allocation111_spill] sm:$0xff]  ;;  %s4765_s21 = sld [smem:[#allocation8 + $0x28]] }
 0x213   : > { %v694_v58 = vadd.f32 %v6321_v30, %v690_v25  ;;  %v507_v8 = vadd.f32 %v505_v3, %v501_v15  ;;  %v873_v6 = vmul.f32 %v6324_v45, %v3975_v32  ;;  %v1604_v4 = vadd.f32 %v6325_v31, %v1598_v51  ;;  %v6352_v45 = vld [vmem:[#allocation119_spill] sm:$0xff] }
 0x214   : > { %v6326_v38 = vstv %s6310_s25  ;;  %v6327_v13 = vstv %s6311_s10  ;;  %v691_v23 = vadd.f32 %v689_v33, %v685_v37  ;;  %v6328_v41 = vstv %s6314_s5  ;;  %s4769_s25 = sld [smem:[#allocation8 + $0x2b]] }
 0x215   : > { %v878_v26 = vadd.f32 %v6326_v38, %v874_v21  ;;  %v1240_v19 = vmul.f32 %v6327_v13, %v3923_v46  ;;  %v1424_v47 = vmul.f32 %v6328_v41, %v3923_v46  ;;  %v6329_v28 = vstv %s6316_s14  ;;  %v6338_v21 = vld [vmem:[#allocation115_spill] sm:$0xff]  ;;  %s4771_s10 = sld [smem:[#allocation8 + $0x2e]] }
 0x216   : > { %v1608_v29 = vmul.f32 %v6329_v28, %v3923_v46  ;;  %v875_v50 = vadd.f32 %v873_v6, %v869_v63  ;;  %v1053_v14 = vadd.f32 %v6330_v59, %v1047_v36  ;;  %2710 = vtanh.f32 %v510_v7  ;;  %s4773_s5 = sld [smem:[#allocation8 + $0x31]] }
 0x217   : > { %v6331_v18 = vmov %v6319_v17  ;;  %v6332_v42 = vmov %v6307_v5  ;;  %v1237_v10 = vadd.f32 %v6334_v35, %v1231_v49  ;;  %2712 = vtanh.f32 %v694_v58  ;;  %v6340_v49 = vld [vmem:[#allocation118_spill] sm:$0xff]  ;;  %s4775_s14 = sld [smem:[#allocation8 + $0x34]] }
 0x218   : > { %v511_v51 = vadd.f32 %v6331_v18, %v507_v8  ;;  %v1057_v39 = vmul.f32 %v6332_v42, %v3975_v32  ;;  %v6335_v48 = vstv %s6323_s29  ;;  %v6336_v5 = vmov %v6321_v30  ;;  %s4779_s29 = sld [smem:[#allocation8 + $0x37]] }
 0x219   : > { %v1062_v2 = vadd.f32 %v6335_v48, %v1058_v53  ;;  %v695_v55 = vadd.f32 %v6336_v5, %v691_v23  ;;  %v6337_v57 = vmov %v6327_v13  ;;  %2714 = vtanh.f32 %v878_v26 }
 0x21a   : > { %v1241_v25 = vmul.f32 %v6337_v57, %v3975_v32  ;;  %v1059_v36 = vadd.f32 %v1057_v39, %v1053_v14  ;;  %v1421_v9 = vadd.f32 %v6338_v21, %v1415_v22  ;;  %v6339_v24 = vmov %v6328_v41  ;;  %v6364_v39 = vld [vmem:[#allocation22_spill] sm:$0xff] }
 0x21b   : > { %v1425_v15 = vmul.f32 %v6339_v24, %v3975_v32  ;;  %v2151_v60 = vadd.f32 %v2149_v56, %v3925_v1  ;;  %v1788_v3 = vadd.f32 %v6340_v49, %v3929_v40  ;;  %v6341_v27 = vmov %v6326_v38  ;;  %v6346_v56 = vld [vmem:[#allocation117_spill] sm:$0xff] }
 0x21c   : > { %v879_v37 = vadd.f32 %v6341_v27, %v875_v50  ;;  %v1243_v11 = vadd.f32 %v1241_v25, %v1237_v10  ;;  %v1242_v17 = vadd.f32 %v1240_v19, %v1236_v44  ;;  %v6343_v7 = vstv %s6333_s20  ;;  %v6349_v44 = vld [vmem:[#allocation121_spill] sm:$0xff]  ;;  %v6361_v50 = vld [vmem:[#allocation123_spill] sm:$0xff]  ;;  %s4781_s20 = sld [smem:[#allocation8 + $0x3a]] }
 0x21d   : > { %v1792_v53 = vmul.f32 %v6343_v7, %v3923_v46  ;;  %2716 = vtanh.f32 %v511_v51  ;;  %v6344_v54 = vmov %v6335_v48  ;;  %v1426_v1 = vadd.f32 %v1424_v47, %v1420_v52  ;;  %v6359_v47 = vld [vmem:[#allocation122_spill] sm:$0xff]  ;;  %v6365_v48 = vld [vmem:[#allocation124_spill] sm:$0xff] }
 0x21e   : > { %v1063_v22 = vadd.f32 %v6344_v54, %v1059_v36  ;;  %2718 = vtanh.f32 %v695_v55  ;;  %v1605_v40 = vadd.f32 %v6346_v56, %v1599_v16  ;;  %v6348_v33 = vmov %v6329_v28 }
 0x21f   : > { %v1609_v30 = vmul.f32 %v6348_v33, %v3975_v32  ;;  %v1972_v58 = vadd.f32 %v6349_v44, %v3933_v34  ;;  %2720 = vtanh.f32 %v1062_v2  ;;  %v1610_v8 = vadd.f32 %v1608_v29, %v1604_v4 }
 0x220   : > { %v1427_v20 = vadd.f32 %v1425_v15, %v1421_v9  ;;  %2722 = vtanh.f32 %v879_v37  ;;  %v6351_v52 = vstv %s6342_s18  ;;  %v1789_v6 = vadd.f32 %v6352_v45, %v1783_v12  ;;  %s4783_s18 = sld [smem:[#allocation8 + $0x3d]] }
 0x221   : > { %v1247_v63 = vadd.f32 %v6351_v52, %v1243_v11  ;;  %v6353_v16 = vmov %v6343_v7  ;;  %v6354_v38 = vmov %v6351_v52  ;;  %v1794_v34 = vadd.f32 %v1792_v53, %v1788_v3 }
 0x222   : > { %v1793_v31 = vmul.f32 %v6353_v16, %v3975_v32  ;;  %v1246_v26 = vadd.f32 %v6354_v38, %v1242_v17  ;;  %v6356_v13 = vstv %s6345_s22  ;;  %2724 = vtanh.f32 %v1063_v22  ;;  %s4793_s22 = sld [smem:[#allocation8 + $0x43]] }
 0x223   : > { %v1976_v19 = vmul.f32 %v6356_v13, %v3923_v46  ;;  %v6358_v4 = vstv %s6347_s23  ;;  %v1611_v41 = vadd.f32 %v1609_v30, %v1605_v40  ;;  %v1973_v12 = vadd.f32 %v6359_v47, %v3971_v43  ;;  %v2711_v21 = vpop.eup %2710  ;;  %s4795_s23 = sld [smem:[#allocation8 + $0x46]] }
 0x224   : > { %v1430_v23 = vadd.f32 %v6358_v4, %v1426_v1  ;;  %v6360_v28 = vmov %v6356_v13  ;;  %v2156_v59 = vadd.f32 %v6361_v50, %v3941_v61  ;;  %v6362_v14 = vstv %s6350_s26  ;;  %v2713_v3 = vpop.eup %2712  ;;  %s4799_s26 = sld [smem:[#allocation8 + $0x4c]] }
 0x225   : > { %v1977_v29 = vmul.f32 %v6360_v28, %v3975_v32  ;;  %v1614_v18 = vadd.f32 %v6362_v14, %v1610_v8  ;;  %v6363_v51 = vmov %v6358_v4  ;;  %v316_v35 = vand.u32 1, %v6364_v39 }
 0x226   : > { %v1431_v42 = vadd.f32 %v6363_v51, %v1427_v20  ;;  %2726 = vtanh.f32 %v1247_v63  ;;  %v1795_v10 = vadd.f32 %v1793_v31, %v1789_v6  ;;  %v2157_v2 = vadd.f32 %v6365_v48, %v2151_v60  ;;  %v6370_v60 = vld [vmem:[#allocation23_spill] sm:$0xff]  ;;  %v4089_v11 = vpop.eup %2714 }
 0x227   : > { %v6366_v43 = vstv %s6355_s4  ;;  %2728 = vtanh.f32 %v1246_v26  ;;  %v6367_v55 = vstv %s6357_s12  ;;  %v1978_v25 = vadd.f32 %v1976_v19, %v1972_v58  ;;  %s4803_s4 = sld [smem:[#allocation8 + $0x4f]] }
 0x228   : > { %v2161_v5 = vmul.f32 %v6366_v43, %v3975_v32  ;;  %v1798_v57 = vadd.f32 %v6367_v55, %v1794_v34  ;;  %v6368_v61 = vmov %v6366_v43  ;;  %v1981_v9 = vstv %s4035_s27  ;;  %s4789_s27 = sld [smem:[#allocation8 + $0x40]] }
 0x229   : > { %v2160_v36 = vmul.f32 %v6368_v61, %v3923_v46  ;;  %2730 = vtanh.f32 %v1430_v23  ;;  %v6369_v24 = vmov %v6362_v14  ;;  %v1979_v49 = vadd.f32 %v1977_v29, %v1973_v12  ;;  %6383 = sst [smem:[#allocation60_spill]] %s4793_s22 }
 0x22a   : > { %v1615_v15 = vadd.f32 %v6369_v24, %v1611_v41  ;;  %v2165_v27 = vstv %s4043_s2  ;;  %2732 = vtanh.f32 %v1614_v18  ;;  %v6371_v37 = vand.u32 1, %v6370_v60  ;;  %v2717_v56 = vpop.eup %2716  ;;  %6384 = sst [smem:[#allocation26_spill]] %s4795_s23 }
 0x22b   : > { %2734 = vtanh.f32 %v1431_v42  ;;  %v6374_v17 = vmov %v6367_v55  ;;  %v2163_v7 = vadd.f32 %v2161_v5, %v2157_v2  ;;  %vm4093_vm8 = vcmp.eq.s32.totalorder %v316_v35, 0  ;;  %v2719_v44 = vpop.eup %2718  ;;  %s4797_s2 = sld [smem:[#allocation8 + $0x49]] }
 0x22c   : > { %vm4085_vm7 = vcmp.eq.s32.totalorder %v6371_v37, 0  ;;  %v1799_v46 = vadd.f32 %v6374_v17, %v1795_v10  ;;  %2736 = vtanh.f32 %v1798_v57  ;;  %v4097_v54 = vadd.f32 %v1981_v9, %v1978_v25  ;;  %v4102_v63 = vpop.eup %2720  ;;  %6386 = sst [smem:[#allocation28_spill]] %s4799_s26 }
 0x22d   : > { %v4099_v22 = vadd.f32 %v2160_v36, %v2156_v59  ;;  %v514_v1 = vrot.slane %v2711_v21, 1  ;;  %2738 = vtanh.f32 %v1615_v15  ;;  %v1983_v40 = vadd.f32 %v1981_v9, %v1979_v49  ;;  %v2723_v31 = vpop.eup %2722  ;;  %6387 = sst [smem:[#allocation29_spill]] %s4803_s4 }
 0x22e   : > { %v518_v33 = vrot.slane %v2711_v21, 7  ;;  %v698_v30 = vrot.slane %v2713_v3, 1  ;;  %v515_v58 = vrot.slane %v2717_v56, 1  ;;  %v519_v8 = vrot.slane %v2717_v56, 7  ;;  %s4805_s12 = sld [smem:[#allocation8 + $0x52]] }
 0x22f   : > { %v702_v20 = vrot.slane %v2713_v3, 7  ;;  %v882_v52 = vrot.slane %v4089_v11, 1  ;;  %2740 = vtanh.f32 %v1799_v46  ;;  %v2167_v45 = vadd.f32 %v2165_v27, %v2163_v7  ;;  %v4114_v19 = vpop.eup %2724  ;;  %s4817_s26 = sld [smem:[#allocation8]] }
 0x230   : > { %v699_v6 = vrot.slane %v2719_v44, 1  ;;  %v703_v16 = vrot.slane %v2719_v44, 7  ;;  %v517_v38 = vsel %vm360_vm2, %v515_v58, %v514_v1  ;;  %v520_v26 = vsel %vm353_vm1, %v518_v33, %v519_v8  ;;  %s4819_s23 = sld [smem:[#allocation8 + $0x3]] }
 0x231   : > { %v516_v34 = vsel %vm360_vm2, %v514_v1, %v515_v58  ;;  %v521_v13 = vsel %vm353_vm1, %v519_v8, %v518_v33  ;;  %v523_v4 = vsel %vm4085_vm7, %v517_v38, %v520_v26  ;;  %v886_v50 = vrot.slane %v4089_v11, 7  ;;  %6385 = sst [smem:[#allocation27_spill]] %s4797_s2 }
 0x232   : > { %v522_v23 = vsel %vm4093_vm8, %v516_v34, %v521_v13  ;;  %v701_v41 = vsel %vm360_vm2, %v699_v6, %v698_v30  ;;  %v704_v47 = vsel %vm353_vm1, %v702_v20, %v703_v16  ;;  %v4124_v12 = vmax.f32 %v2717_v56, %v523_v4  ;;  %s4813_s2 = sld [smem:[#allocation8 + $0x58]] }
 0x233   : > { %v4126_v28 = vmax.f32 %v2711_v21, %v522_v23  ;;  %v700_v29 = vsel %vm360_vm2, %v698_v30, %v699_v6  ;;  %v707_v59 = vsel %vm4085_vm7, %v701_v41, %v704_v47  ;;  %v705_v14 = vsel %vm353_vm1, %v703_v16, %v702_v20  ;;  %v4135_v42 = vpop.eup %2726  ;;  %s4821_s4 = sld [smem:[#allocation8 + $0x6]] }
 0x234   : > { %v883_v18 = vrot.slane %v2723_v31, 1  ;;  %v887_v51 = vrot.slane %v2723_v31, 7  ;;  %529 = vrot.lane.b32.xlu1 %v4124_v12, %s6377_s19  ;;  %v706_v35 = vsel %vm4093_vm8, %v700_v29, %v705_v14  ;;  %v1066_v10 = vrot.slane %v4102_v63, 1  ;;  %v2729_v43 = vpop.eup %2728  ;;  %6388 = sst [smem:[#allocation30_spill]] %s4805_s12 }
 0x235   : > { %526 = vrot.lane.b32.xlu0 %v4126_v28, %s6377_s19  ;;  %v1067_v48 = vrot.slane %v4114_v19, 1  ;;  %v1071_v2 = vrot.slane %v4114_v19, 7  ;;  %2742 = vtanh.f32 %v1983_v40  ;;  %v4154_v61 = vmax.f32 %v2719_v44, %v707_v59  ;;  %6391 = sst [smem:[#allocation33_spill]] %s4817_s26 }
 0x236   : > { %v885_v5 = vsel %vm360_vm2, %v883_v18, %v882_v52  ;;  %v888_v55 = vsel %vm353_vm1, %v886_v50, %v887_v51  ;;  %v884_v57 = vsel %vm360_vm2, %v882_v52, %v883_v18  ;;  %v4152_v25 = vpop.eup %2730  ;;  %v4156_v36 = vmax.f32 %v2713_v3, %v706_v35  ;;  %6392 = sst [smem:[#allocation34_spill]] %s4819_s23 }
 0x237   : > { %v889_v21 = vsel %vm353_vm1, %v887_v51, %v886_v50  ;;  %v1070_v9 = vrot.slane %v4102_v63, 7  ;;  %v4161_v24 = vpop.eup %2732  ;;  %v891_v15 = vsel %vm4085_vm7, %v885_v5, %v888_v55  ;;  %v1069_v60 = vsel %vm360_vm2, %v1067_v48, %v1066_v10  ;;  %s4823_s12 = sld [smem:[#allocation8 + $0x9]] }
 0x238   : > { %v890_v49 = vsel %vm4093_vm8, %v884_v57, %v889_v21  ;;  %v1251_v3 = vrot.slane %v4135_v42, 1  ;;  %v2735_v37 = vpop.eup %2734  ;;  %713 = vrot.lane.b32.xlu1 %v4154_v61, %s6377_s19  ;;  %v1068_v46 = vsel %vm360_vm2, %v1066_v10, %v1067_v48  ;;  %v1255_v1 = vrot.slane %v4135_v42, 7  ;;  %6390 = sst [smem:[#allocation32_spill]] %s4813_s2 }
 0x239   : > { %710 = vrot.lane.b32.xlu0 %v4156_v36, %s6377_s19  ;;  %v1072_v17 = vsel %vm353_vm1, %v1070_v9, %v1071_v2  ;;  %v1073_v7 = vsel %vm353_vm1, %v1071_v2, %v1070_v9  ;;  %v4181_v56 = vpop.eup %2736  ;;  %2744 = vtanh.f32 %v4097_v54  ;;  %v2166_v40 = vadd.f32 %v2165_v27, %v4099_v22  ;;  %6393 = sst [smem:[#allocation35_spill]] %s4821_s4 }
 0x23a   : > { %v1250_v33 = vrot.slane %v2729_v43, 1  ;;  %v4187_v30 = vpop.eup %2738  ;;  %2746 = vtanh.f32 %v2167_v45  ;;  %v4189_v44 = vmax.f32 %v2723_v31, %v891_v15  ;;  %v4192_v58 = vmax.f32 %v4089_v11, %v890_v49  ;;  %s4829_s2 = sld [smem:[#allocation8 + $0xf]] }
 0x23b   : > { %v1254_v8 = vrot.slane %v2729_v43, 7  ;;  %v1075_v20 = vsel %vm4085_vm7, %v1069_v60, %v1072_v17  ;;  %v1074_v52 = vsel %vm4093_vm8, %v1068_v46, %v1073_v7  ;;  %v1435_v27 = vrot.slane %v2735_v37, 1  ;;  %s4831_s22 = sld [smem:[#allocation8 + $0x2]] }
 0x23c   : > { %v1253_v54 = vsel %vm360_vm2, %v1251_v3, %v1250_v33  ;;  %v4200_v22 = vpop.eup %2740  ;;  %897 = vrot.lane.b32.xlu1 %v4189_v44, %s6377_s19  ;;  %v1252_v45 = vsel %vm360_vm2, %v1250_v33, %v1251_v3  ;;  %v1439_v16 = vrot.slane %v2735_v37, 7  ;;  %2748 = vtanh.f32 %v2166_v40  ;;  %s4837_s4 = sld [smem:[#allocation8 + $0x5]] }
 0x23d   : > { %894 = vrot.lane.b32.xlu0 %v4192_v58, %s6377_s19  ;;  %v1256_v11 = vsel %vm353_vm1, %v1254_v8, %v1255_v1  ;;  %v1257_v6 = vsel %vm353_vm1, %v1255_v1, %v1254_v8  ;;  %v1434_v31 = vrot.slane %v4152_v25, 1  ;;  %v4214_v38 = vmax.f32 %v4114_v19, %v1075_v20  ;;  %6394 = sst [smem:[#allocation36_spill]] %s4823_s12 }
 0x23e   : > { %v4217_v26 = vmax.f32 %v4102_v63, %v1074_v52  ;;  %v1438_v34 = vrot.slane %v4152_v25, 7  ;;  %v1259_v13 = vsel %vm4085_vm7, %v1253_v54, %v1256_v11  ;;  %v1258_v4 = vsel %vm4093_vm8, %v1252_v45, %v1257_v6  ;;  %s4841_s12 = sld [smem:[#allocation8 + $0x8]] }
 0x23f   : > { %v1437_v23 = vsel %vm360_vm2, %v1435_v27, %v1434_v31  ;;  %v1619_v41 = vrot.slane %v4187_v30, 1  ;;  %v1436_v19 = vsel %vm360_vm2, %v1434_v31, %v1435_v27  ;;  %v1623_v29 = vrot.slane %v4187_v30, 7  ;;  %s4843_s23 = sld [smem:[#allocation8 + $0xb]] }
 0x240   : > { %1081 = vrot.lane.b32.xlu1 %v4214_v38, %s6377_s19  ;;  %v1440_v63 = vsel %vm353_vm1, %v1438_v34, %v1439_v16  ;;  %v1441_v47 = vsel %vm353_vm1, %v1439_v16, %v1438_v34  ;;  %v1618_v50 = vrot.slane %v4161_v24, 1  ;;  %v4240_v14 = vmax.f32 %v4135_v42, %v1259_v13  ;;  %6396 = sst [smem:[#allocation38_spill]] %s4829_s2 }
 0x241   : > { %1078 = vrot.lane.b32.xlu0 %v4217_v26, %s6377_s19  ;;  %v4242_v18 = vmax.f32 %v2729_v43, %v1258_v4  ;;  %v1622_v51 = vrot.slane %v4161_v24, 7  ;;  %v1443_v35 = vsel %vm4085_vm7, %v1437_v23, %v1440_v63  ;;  %v1442_v10 = vsel %vm4093_vm8, %v1436_v19, %v1441_v47  ;;  %6397 = sst [smem:[#allocation39_spill]] %s4831_s22 }
 0x242   : > { %v2743_v59 = vpop.eup %2742  ;;  %v1621_v48 = vsel %vm360_vm2, %v1619_v41, %v1618_v50  ;;  %v1803_v2 = vrot.slane %v4200_v22, 1  ;;  %v1620_v43 = vsel %vm360_vm2, %v1618_v50, %v1619_v41  ;;  %v1807_v55 = vrot.slane %v4200_v22, 7  ;;  %6398 = sst [smem:[#allocation40_spill]] %s4837_s4 }
 0x243   : > { %v1624_v42 = vsel %vm353_vm1, %v1622_v51, %v1623_v29  ;;  %v1625_v5 = vsel %vm353_vm1, %v1623_v29, %v1622_v51  ;;  %v1802_v57 = vrot.slane %v4181_v56, 1  ;;  %v4264_v9 = vmax.f32 %v2735_v37, %v1443_v35  ;;  %s4847_s2 = sld [smem:[#allocation8 + $0x11]] }
 0x244   : > { %1265 = vrot.lane.b32.xlu1 %v4240_v14, %s6377_s19  ;;  %v4267_v15 = vmax.f32 %v4152_v25, %v1442_v10  ;;  %v1806_v49 = vrot.slane %v4181_v56, 7  ;;  %v1627_v3 = vsel %vm4085_vm7, %v1621_v48, %v1624_v42  ;;  %v1626_v17 = vsel %vm4093_vm8, %v1620_v43, %v1625_v5  ;;  %6399 = sst [smem:[#allocation41_spill]] %s4841_s12 }
 0x245   : > { %1262 = vrot.lane.b32.xlu0 %v4242_v18, %s6377_s19  ;;  %v1805_v46 = vsel %vm360_vm2, %v1803_v2, %v1802_v57  ;;  %v1987_v7 = vrot.slane %v2743_v59, 1  ;;  %v1804_v37 = vsel %vm360_vm2, %v1802_v57, %v1803_v2  ;;  %v1991_v40 = vrot.slane %v2743_v59, 7  ;;  %6400 = sst [smem:[#allocation42_spill]] %s4843_s23 }
 0x246   : > { %v2745_v21 = vpop.eup %2744  ;;  %v1808_v25 = vsel %vm353_vm1, %v1806_v49, %v1807_v55  ;;  %v1809_v1 = vsel %vm353_vm1, %v1807_v55, %v1806_v49  ;;  %v4287_v20 = vmax.f32 %v4187_v30, %v1627_v3  ;;  %v4290_v52 = vmax.f32 %v4161_v24, %v1626_v17  ;;  %s4851_s22 = sld [smem:[#allocation8 + $0x12]] }
 0x247   : > { %v2747_v60 = vpop.eup %2746  ;;  %v1986_v33 = vrot.slane %v2745_v21, 1  ;;  %v1990_v54 = vrot.slane %v2745_v21, 7  ;;  %v1811_v27 = vsel %vm4085_vm7, %v1805_v46, %v1808_v25  ;;  %v1810_v11 = vsel %vm4093_vm8, %v1804_v37, %v1809_v1  ;;  %s4853_s4 = sld [smem:[#allocation8 + $0x15]] }
 0x248   : > { %1449 = vrot.lane.b32.xlu1 %v4264_v9, %s6377_s19  ;;  %v2171_v6 = vrot.slane %v2747_v60, 1  ;;  %v2175_v31 = vrot.slane %v2747_v60, 7  ;;  %v4309_v13 = vmax.f32 %v4200_v22, %v1811_v27  ;;  %v4312_v4 = vmax.f32 %v4181_v56, %v1810_v11  ;;  %s4855_s26 = sld [smem:[#allocation8 + $0x18]] }
 0x249   : > { %1446 = vrot.lane.b32.xlu0 %v4267_v15, %s6377_s19  ;;  %v2749_v8 = vpop.eup %2748  ;;  %v1989_v45 = vsel %vm360_vm2, %v1987_v7, %v1986_v33  ;;  %v1992_v24 = vsel %vm353_vm1, %v1990_v54, %v1991_v40  ;;  %v1988_v30 = vsel %vm360_vm2, %v1986_v33, %v1987_v7  ;;  %v1993_v16 = vsel %vm353_vm1, %v1991_v40, %v1990_v54  ;;  %6402 = sst [smem:[#allocation46_spill]] %s4847_s2 }
 0x24a   : > { %v2170_v34 = vrot.slane %v2749_v8, 1  ;;  %v2174_v23 = vrot.slane %v2749_v8, 7  ;;  %v1995_v41 = vsel %vm4085_vm7, %v1989_v45, %v1992_v24  ;;  %v1994_v63 = vsel %vm4093_vm8, %v1988_v30, %v1993_v16  ;;  %s4871_s2 = sld [smem:[#allocation8 + $0x1e]] }
 0x24b   : > { %v4330_v29 = vmax.f32 %v2743_v59, %v1995_v41  ;;  %v4332_v50 = vmax.f32 %v2745_v21, %v1994_v63  ;;  %s4887_s23 = sld [smem:[#allocation8 + $0x2a]] }
 0x24c   : > { %1633 = vrot.lane.b32.xlu1 %v4287_v20, %s6377_s19  ;;  %v2173_v19 = vsel %vm360_vm2, %v2171_v6, %v2170_v34  ;;  %v2176_v56 = vsel %vm353_vm1, %v2174_v23, %v2175_v31  ;;  %v2172_v22 = vsel %vm360_vm2, %v2170_v34, %v2171_v6  ;;  %v2177_v47 = vsel %vm353_vm1, %v2175_v31, %v2174_v23  ;;  %6403 = sst [smem:[#allocation48_spill]] %s4851_s22 }
 0x24d   : > { %1630 = vrot.lane.b32.xlu0 %v4290_v52, %s6377_s19  ;;  %v2179_v51 = vsel %vm4085_vm7, %v2173_v19, %v2176_v56  ;;  %v2178_v35 = vsel %vm4093_vm8, %v2172_v22, %v2177_v47  ;;  %6404 = sst [smem:[#allocation51_spill]] %s4853_s4 }
 0x24e   : > { %v4342_v10 = vmax.f32 %v2747_v60, %v2179_v51  ;;  %v4344_v48 = vmax.f32 %v2749_v8, %v2178_v35  ;;  %6405 = sst [smem:[#allocation52_spill]] %s4855_s26 }
 0x24f   : > { %s4865_s22 = sld [smem:[#allocation8 + $0x17]] }
 0x250   : > { %1817 = vrot.lane.b32.xlu1 %v4309_v13, %s6377_s19  ;;  %s4867_s4 = sld [smem:[#allocation8 + $0x1a]] }
 0x251   : > { %1814 = vrot.lane.b32.xlu0 %v4312_v4, %s6377_s19  ;;  %s4869_s26 = sld [smem:[#allocation8 + $0x1b]] }
 0x252   : > { %6410 = sst [smem:[#allocation57_spill]] %s4871_s2 }
 0x253   : > { %s4885_s2 = sld [smem:[#allocation8 + $0x27]] }
 0x254   : > { %2001 = vrot.lane.b32.xlu1 %v4330_v29, %s6377_s19  ;;  %6417 = sst [smem:[#allocation66_spill]] %s4887_s23 }
 0x255   : > { %1998 = vrot.lane.b32.xlu0 %v4332_v50, %s6377_s19  ;;  %6407 = sst [smem:[#allocation54_spill]] %s4865_s22 }
 0x256   : > { %6408 = sst [smem:[#allocation55_spill]] %s4867_s4 }
 0x257   : > { %6409 = sst [smem:[#allocation56_spill]] %s4869_s26 }
 0x258   : > { %2185 = vrot.lane.b32.xlu1 %v4342_v10, %s6377_s19  ;;  %s4879_s22 = sld [smem:[#allocation8 + $0x20]] }
 0x259   : > { %2182 = vrot.lane.b32.xlu0 %v4344_v48, %s6377_s19  ;;  %s4881_s4 = sld [smem:[#allocation8 + $0x23]] }
 0x25a   : > { %s4883_s26 = sld [smem:[#allocation8 + $0x24]] }
 0x25b   : > { %6416 = sst [smem:[#allocation65_spill]] %s4885_s2 }
 0x25c   : > { %s4898_s2 = sld [smem:[#allocation8 + $0x29]] }
 0x25d   : > { %s5212_s12 = sld [smem:[#allocation8 + $0x50]] }
 0x25e   : > { %6413 = sst [smem:[#allocation61_spill]] %s4879_s22 }
 0x25f   : > { %6414 = sst [smem:[#allocation62_spill]] %s4881_s4 }
 0x260   : > { %6415 = sst [smem:[#allocation64_spill]] %s4883_s26 }
 0x261   : > { %s5242_s23 = sld [smem:[#allocation8 + $0x56]] }
 0x262   : > { %6419 = sst [smem:[#allocation70_spill]] %s4898_s2 }
 0x263   : > { %s6525_s26 = sld [smem:[#allocation36_spill]] }
 0x2a6   : > { %v530_v32 = vpop.permute.xlu1 %529 }
 0x2a7   : > { %v527_v59 = vpop.permute.xlu0 %526  ;;  %v531_v53 = vsel %vm365_vm4, %v530_v32, %v4124_v12 }
 0x2a8   : > { %v528_v2 = vsel %vm365_vm4, %v527_v59, %v4126_v28  ;;  %534 = vrot.lane.b32.xlu1 %v531_v53, %s6377_s19 }
 0x2a9   : > { %532 = vrot.lane.b32.xlu0 %v528_v2, %s6377_s19 }
 0x2aa   : > { %v714_v42 = vpop.permute.xlu1 %713 }
 0x2ab   : > { %v711_v43 = vpop.permute.xlu0 %710  ;;  %v715_v5 = vsel %vm365_vm4, %v714_v42, %v4154_v61 }
 0x2ac   : > { %v712_v55 = vsel %vm365_vm4, %v711_v43, %v4156_v36  ;;  %718 = vrot.lane.b32.xlu1 %v715_v5, %s6377_s19 }
 0x2ad   : > { %716 = vrot.lane.b32.xlu0 %v712_v55, %s6377_s19 }
 0x2ae   : > { %v898_v57 = vpop.permute.xlu1 %897 }
 0x2af   : > { %v895_v21 = vpop.permute.xlu0 %894  ;;  %v899_v49 = vsel %vm365_vm4, %v898_v57, %v4189_v44 }
 0x2b0   : > { %v896_v60 = vsel %vm365_vm4, %v895_v21, %v4192_v58  ;;  %902 = vrot.lane.b32.xlu1 %v899_v49, %s6377_s19 }
 0x2b1   : > { %900 = vrot.lane.b32.xlu0 %v896_v60, %s6377_s19 }
 0x2b2   : > { %v1082_v3 = vpop.permute.xlu1 %1081 }
 0x2b3   : > { %v1079_v17 = vpop.permute.xlu0 %1078  ;;  %v1083_v46 = vsel %vm365_vm4, %v1082_v3, %v4214_v38 }
 0x2b4   : > { %v1080_v7 = vsel %vm365_vm4, %v1079_v17, %v4217_v26  ;;  %1086 = vrot.lane.b32.xlu1 %v1083_v46, %s6377_s19 }
 0x2b5   : > { %1084 = vrot.lane.b32.xlu0 %v1080_v7, %s6377_s19 }
 0x2b6   : > { %v1266_v25 = vpop.permute.xlu1 %1265 }
 0x2b7   : > { %v1263_v37 = vpop.permute.xlu0 %1262  ;;  %v1267_v1 = vsel %vm365_vm4, %v1266_v25, %v4240_v14 }
 0x2b8   : > { %v1264_v40 = vsel %vm365_vm4, %v1263_v37, %v4242_v18  ;;  %1270 = vrot.lane.b32.xlu1 %v1267_v1, %s6377_s19 }
 0x2b9   : > { %1268 = vrot.lane.b32.xlu0 %v1264_v40, %s6377_s19 }
 0x2ba   : > { %v1450_v33 = vpop.permute.xlu1 %1449 }
 0x2bb   : > { %v1447_v8 = vpop.permute.xlu0 %1446  ;;  %v1451_v54 = vsel %vm365_vm4, %v1450_v33, %v4264_v9 }
 0x2bc   : > { %v1448_v27 = vsel %vm365_vm4, %v1447_v8, %v4267_v15  ;;  %1454 = vrot.lane.b32.xlu1 %v1451_v54, %s6377_s19 }
 0x2bd   : > { %1452 = vrot.lane.b32.xlu0 %v1448_v27, %s6377_s19 }
 0x2be   : > { %v1634_v11 = vpop.permute.xlu1 %1633 }
 0x2bf   : > { %v1631_v45 = vpop.permute.xlu0 %1630  ;;  %v1635_v6 = vsel %vm365_vm4, %v1634_v11, %v4287_v20 }
 0x2c0   : > { %v1632_v24 = vsel %vm365_vm4, %v1631_v45, %v4290_v52  ;;  %1638 = vrot.lane.b32.xlu1 %v1635_v6, %s6377_s19 }
 0x2c1   : > { %1636 = vrot.lane.b32.xlu0 %v1632_v24, %s6377_s19 }
 0x2c2   : > { %v1818_v30 = vpop.permute.xlu1 %1817 }
 0x2c3   : > { %v1815_v16 = vpop.permute.xlu0 %1814  ;;  %v1819_v31 = vsel %vm365_vm4, %v1818_v30, %v4309_v13 }
 0x2c4   : > { %v1816_v34 = vsel %vm365_vm4, %v1815_v16, %v4312_v4  ;;  %1822 = vrot.lane.b32.xlu1 %v1819_v31, %s6377_s19 }
 0x2c5   : > { %1820 = vrot.lane.b32.xlu0 %v1816_v34, %s6377_s19 }
 0x2c6   : > { %v2002_v23 = vpop.permute.xlu1 %2001 }
 0x2c7   : > { %v1999_v41 = vpop.permute.xlu0 %1998  ;;  %v2003_v63 = vsel %vm365_vm4, %v2002_v23, %v4330_v29 }
 0x2c8   : > { %v2000_v19 = vsel %vm365_vm4, %v1999_v41, %v4332_v50  ;;  %2006 = vrot.lane.b32.xlu1 %v2003_v63, %s6377_s19 }
 0x2c9   : > { %2004 = vrot.lane.b32.xlu0 %v2000_v19, %s6377_s19 }
 0x2ca   : > { %v2186_v56 = vpop.permute.xlu1 %2185 }
 0x2cb   : > { %v2183_v22 = vpop.permute.xlu0 %2182  ;;  %v2187_v47 = vsel %vm365_vm4, %v2186_v56, %v4342_v10 }
 0x2cc   : > { %v2184_v51 = vsel %vm365_vm4, %v2183_v22, %v4344_v48  ;;  %2190 = vrot.lane.b32.xlu1 %v2187_v47, %s6377_s19 }
 0x2cd   : > { %2188 = vrot.lane.b32.xlu0 %v2184_v51, %s6377_s19  ;;  %v6380_v51 = vld [vmem:[#allocation76_spill] sm:$0xff] }
 0x31a   : > { %v535_v35 = vpop.permute.xlu1 %534 }
 0x31b   : > { %v533_v32 = vpop.permute.xlu0 %532  ;;  %v537_v59 = vsel %vm365_vm4, %v535_v35, %v4124_v12  ;;  %v342_v35 = vand.u32 1, %v6380_v51 }
 0x31c   : > { %v536_v53 = vsel %vm365_vm4, %v533_v32, %v4126_v28  ;;  %542 = vrot.lane.b32.xlu1 %v537_v59, %s6378_s8 }
 0x31d   : > { %540 = vrot.lane.b32.xlu0 %v536_v53, %s6378_s8  ;;  %vm4491_vm9 = vcmp.eq.s32.totalorder %v342_v35, 0 }
 0x31e   : > { %v719_v2 = vpop.permute.xlu1 %718 }
 0x31f   : > { %v717_v42 = vpop.permute.xlu0 %716  ;;  %v721_v43 = vsel %vm365_vm4, %v719_v2, %v4154_v61 }
 0x320   : > { %548 = vrot.lane.b32.xlu1 %v537_v59, %s6379_s11  ;;  %v720_v5 = vsel %vm365_vm4, %v717_v42, %v4156_v36 }
 0x321   : > { %546 = vrot.lane.b32.xlu0 %v536_v53, %s6379_s11 }
 0x322   : > { %v903_v55 = vpop.permute.xlu1 %902 }
 0x323   : > { %v901_v57 = vpop.permute.xlu0 %900  ;;  %v905_v21 = vsel %vm365_vm4, %v903_v55, %v4189_v44 }
 0x324   : > { %726 = vrot.lane.b32.xlu1 %v721_v43, %s6378_s8  ;;  %v904_v49 = vsel %vm365_vm4, %v901_v57, %v4192_v58 }
 0x325   : > { %724 = vrot.lane.b32.xlu0 %v720_v5, %s6378_s8 }
 0x326   : > { %v1087_v60 = vpop.permute.xlu1 %1086 }
 0x327   : > { %v1085_v3 = vpop.permute.xlu0 %1084  ;;  %v1089_v17 = vsel %vm365_vm4, %v1087_v60, %v4214_v38 }
 0x328   : > { %732 = vrot.lane.b32.xlu1 %v721_v43, %s6379_s11  ;;  %v1088_v46 = vsel %vm365_vm4, %v1085_v3, %v4217_v26 }
 0x329   : > { %730 = vrot.lane.b32.xlu0 %v720_v5, %s6379_s11 }
 0x32a   : > { %v1271_v7 = vpop.permute.xlu1 %1270 }
 0x32b   : > { %v1269_v25 = vpop.permute.xlu0 %1268  ;;  %v1273_v37 = vsel %vm365_vm4, %v1271_v7, %v4240_v14 }
 0x32c   : > { %910 = vrot.lane.b32.xlu1 %v905_v21, %s6378_s8  ;;  %v1272_v1 = vsel %vm365_vm4, %v1269_v25, %v4242_v18 }
 0x32d   : > { %908 = vrot.lane.b32.xlu0 %v904_v49, %s6378_s8 }
 0x32e   : > { %v1455_v40 = vpop.permute.xlu1 %1454 }
 0x32f   : > { %v1453_v33 = vpop.permute.xlu0 %1452  ;;  %v1457_v8 = vsel %vm365_vm4, %v1455_v40, %v4264_v9 }
 0x330   : > { %916 = vrot.lane.b32.xlu1 %v905_v21, %s6379_s11  ;;  %v1456_v54 = vsel %vm365_vm4, %v1453_v33, %v4267_v15 }
 0x331   : > { %914 = vrot.lane.b32.xlu0 %v904_v49, %s6379_s11 }
 0x332   : > { %v1639_v27 = vpop.permute.xlu1 %1638 }
 0x333   : > { %v1637_v11 = vpop.permute.xlu0 %1636  ;;  %v1641_v45 = vsel %vm365_vm4, %v1639_v27, %v4287_v20 }
 0x334   : > { %1094 = vrot.lane.b32.xlu1 %v1089_v17, %s6378_s8  ;;  %v1640_v6 = vsel %vm365_vm4, %v1637_v11, %v4290_v52 }
 0x335   : > { %1092 = vrot.lane.b32.xlu0 %v1088_v46, %s6378_s8 }
 0x336   : > { %v1823_v24 = vpop.permute.xlu1 %1822 }
 0x337   : > { %v1821_v30 = vpop.permute.xlu0 %1820  ;;  %v1825_v16 = vsel %vm365_vm4, %v1823_v24, %v4309_v13 }
 0x338   : > { %1100 = vrot.lane.b32.xlu1 %v1089_v17, %s6379_s11  ;;  %v1824_v31 = vsel %vm365_vm4, %v1821_v30, %v4312_v4 }
 0x339   : > { %1098 = vrot.lane.b32.xlu0 %v1088_v46, %s6379_s11 }
 0x33a   : > { %v2007_v34 = vpop.permute.xlu1 %2006 }
 0x33b   : > { %v2005_v23 = vpop.permute.xlu0 %2004  ;;  %v2009_v41 = vsel %vm365_vm4, %v2007_v34, %v4330_v29 }
 0x33c   : > { %1278 = vrot.lane.b32.xlu1 %v1273_v37, %s6378_s8  ;;  %v2008_v63 = vsel %vm365_vm4, %v2005_v23, %v4332_v50 }
 0x33d   : > { %1276 = vrot.lane.b32.xlu0 %v1272_v1, %s6378_s8 }
 0x33e   : > { %v2191_v19 = vpop.permute.xlu1 %2190 }
 0x33f   : > { %v2189_v56 = vpop.permute.xlu0 %2188  ;;  %v2193_v22 = vsel %vm365_vm4, %v2191_v19, %v4342_v10 }
 0x340   : > { %1284 = vrot.lane.b32.xlu1 %v1273_v37, %s6379_s11  ;;  %v2192_v47 = vsel %vm365_vm4, %v2189_v56, %v4344_v48 }
 0x341   : > { %1282 = vrot.lane.b32.xlu0 %v1272_v1, %s6379_s11 }
 0x344   : > { %1462 = vrot.lane.b32.xlu1 %v1457_v8, %s6378_s8 }
 0x345   : > { %1460 = vrot.lane.b32.xlu0 %v1456_v54, %s6378_s8 }
 0x348   : > { %1468 = vrot.lane.b32.xlu1 %v1457_v8, %s6379_s11 }
 0x349   : > { %1466 = vrot.lane.b32.xlu0 %v1456_v54, %s6379_s11 }
 0x34c   : > { %1646 = vrot.lane.b32.xlu1 %v1641_v45, %s6378_s8 }
 0x34d   : > { %1644 = vrot.lane.b32.xlu0 %v1640_v6, %s6378_s8 }
 0x350   : > { %1652 = vrot.lane.b32.xlu1 %v1641_v45, %s6379_s11 }
 0x351   : > { %1650 = vrot.lane.b32.xlu0 %v1640_v6, %s6379_s11 }
 0x354   : > { %1830 = vrot.lane.b32.xlu1 %v1825_v16, %s6378_s8 }
 0x355   : > { %1828 = vrot.lane.b32.xlu0 %v1824_v31, %s6378_s8 }
 0x358   : > { %1836 = vrot.lane.b32.xlu1 %v1825_v16, %s6379_s11 }
 0x359   : > { %1834 = vrot.lane.b32.xlu0 %v1824_v31, %s6379_s11 }
 0x35c   : > { %2014 = vrot.lane.b32.xlu1 %v2009_v41, %s6378_s8 }
 0x35d   : > { %2012 = vrot.lane.b32.xlu0 %v2008_v63, %s6378_s8 }
 0x360   : > { %2020 = vrot.lane.b32.xlu1 %v2009_v41, %s6379_s11 }
 0x361   : > { %2018 = vrot.lane.b32.xlu0 %v2008_v63, %s6379_s11 }
 0x364   : > { %2198 = vrot.lane.b32.xlu1 %v2193_v22, %s6378_s8 }
 0x365   : > { %2196 = vrot.lane.b32.xlu0 %v2192_v47, %s6378_s8 }
 0x368   : > { %2204 = vrot.lane.b32.xlu1 %v2193_v22, %s6379_s11 }
 0x369   : > { %2202 = vrot.lane.b32.xlu0 %v2192_v47, %s6379_s11 }
 0x38e   : > { %v543_v32 = vpop.permute.xlu1 %542 }
 0x38f   : > { %v541_v59 = vpop.permute.xlu0 %540 }
 0x392   : > { %v549_v2 = vpop.permute.xlu1 %548 }
 0x393   : > { %v547_v42 = vpop.permute.xlu0 %546  ;;  %v553_v43 = vsel %vm4491_vm9, %v543_v32, %v549_v2 }
 0x394   : > { %v552_v5 = vsel %vm4491_vm9, %v541_v59, %v547_v42  ;;  %v4500_v55 = vmax.f32 %v4124_v12, %v553_v43 }
 0x395   : > { %v4503_v57 = vmax.f32 %v4126_v28, %v552_v5 }
 0x396   : > { %559 = vrot.lane.b32.xlu1 %v4500_v55, %s6377_s19  ;;  %v727_v21 = vpop.permute.xlu1 %726 }
 0x397   : > { %556 = vrot.lane.b32.xlu0 %v4503_v57, %s6377_s19  ;;  %v725_v49 = vpop.permute.xlu0 %724 }
 0x39a   : > { %v733_v60 = vpop.permute.xlu1 %732 }
 0x39b   : > { %v731_v3 = vpop.permute.xlu0 %730  ;;  %v737_v17 = vsel %vm4491_vm9, %v727_v21, %v733_v60 }
 0x39c   : > { %v736_v12 = vsel %vm4491_vm9, %v725_v49, %v731_v3  ;;  %v4514_v46 = vmax.f32 %v4154_v61, %v737_v17 }
 0x39d   : > { %v4517_v28 = vmax.f32 %v4156_v36, %v736_v12 }
 0x39e   : > { %743 = vrot.lane.b32.xlu1 %v4514_v46, %s6377_s19  ;;  %v911_v7 = vpop.permute.xlu1 %910 }
 0x39f   : > { %740 = vrot.lane.b32.xlu0 %v4517_v28, %s6377_s19  ;;  %v909_v25 = vpop.permute.xlu0 %908 }
 0x3a2   : > { %v917_v37 = vpop.permute.xlu1 %916 }
 0x3a3   : > { %v915_v1 = vpop.permute.xlu0 %914  ;;  %v921_v40 = vsel %vm4491_vm9, %v911_v7, %v917_v37 }
 0x3a4   : > { %v920_v61 = vsel %vm4491_vm9, %v909_v25, %v915_v1  ;;  %v4528_v33 = vmax.f32 %v4189_v44, %v921_v40 }
 0x3a5   : > { %v4531_v36 = vmax.f32 %v4192_v58, %v920_v61 }
 0x3a6   : > { %927 = vrot.lane.b32.xlu1 %v4528_v33, %s6377_s19  ;;  %v1095_v8 = vpop.permute.xlu1 %1094 }
 0x3a7   : > { %924 = vrot.lane.b32.xlu0 %v4531_v36, %s6377_s19  ;;  %v1093_v54 = vpop.permute.xlu0 %1092 }
 0x3aa   : > { %v1101_v27 = vpop.permute.xlu1 %1100 }
 0x3ab   : > { %v1099_v11 = vpop.permute.xlu0 %1098  ;;  %v1105_v45 = vsel %vm4491_vm9, %v1095_v8, %v1101_v27 }
 0x3ac   : > { %v1104_v44 = vsel %vm4491_vm9, %v1093_v54, %v1099_v11  ;;  %v4542_v6 = vmax.f32 %v4214_v38, %v1105_v45 }
 0x3ad   : > { %v4545_v58 = vmax.f32 %v4217_v26, %v1104_v44 }
 0x3ae   : > { %1111 = vrot.lane.b32.xlu1 %v4542_v6, %s6377_s19  ;;  %v1279_v24 = vpop.permute.xlu1 %1278 }
 0x3af   : > { %1108 = vrot.lane.b32.xlu0 %v4545_v58, %s6377_s19  ;;  %v1277_v30 = vpop.permute.xlu0 %1276 }
 0x3b2   : > { %v1285_v16 = vpop.permute.xlu1 %1284 }
 0x3b3   : > { %v1283_v31 = vpop.permute.xlu0 %1282  ;;  %v1289_v34 = vsel %vm4491_vm9, %v1279_v24, %v1285_v16 }
 0x3b4   : > { %v1288_v38 = vsel %vm4491_vm9, %v1277_v30, %v1283_v31  ;;  %v4556_v23 = vmax.f32 %v4240_v14, %v1289_v34 }
 0x3b5   : > { %v4559_v26 = vmax.f32 %v4242_v18, %v1288_v38 }
 0x3b6   : > { %1295 = vrot.lane.b32.xlu1 %v4556_v23, %s6377_s19  ;;  %v1463_v41 = vpop.permute.xlu1 %1462 }
 0x3b7   : > { %1292 = vrot.lane.b32.xlu0 %v4559_v26, %s6377_s19  ;;  %v1461_v63 = vpop.permute.xlu0 %1460 }
 0x3ba   : > { %v1469_v19 = vpop.permute.xlu1 %1468 }
 0x3bb   : > { %v1467_v56 = vpop.permute.xlu0 %1466  ;;  %v1473_v22 = vsel %vm4491_vm9, %v1463_v41, %v1469_v19 }
 0x3bc   : > { %v1472_v14 = vsel %vm4491_vm9, %v1461_v63, %v1467_v56  ;;  %v4570_v47 = vmax.f32 %v4264_v9, %v1473_v22 }
 0x3bd   : > { %v4573_v18 = vmax.f32 %v4267_v15, %v1472_v14 }
 0x3be   : > { %1479 = vrot.lane.b32.xlu1 %v4570_v47, %s6377_s19  ;;  %v1647_v51 = vpop.permute.xlu1 %1646 }
 0x3bf   : > { %1476 = vrot.lane.b32.xlu0 %v4573_v18, %s6377_s19  ;;  %v1645_v35 = vpop.permute.xlu0 %1644 }
 0x3c2   : > { %v1653_v32 = vpop.permute.xlu1 %1652 }
 0x3c3   : > { %v1651_v59 = vpop.permute.xlu0 %1650  ;;  %v1657_v2 = vsel %vm4491_vm9, %v1647_v51, %v1653_v32 }
 0x3c4   : > { %v1656_v9 = vsel %vm4491_vm9, %v1645_v35, %v1651_v59  ;;  %v4584_v42 = vmax.f32 %v4287_v20, %v1657_v2 }
 0x3c5   : > { %v4587_v15 = vmax.f32 %v4290_v52, %v1656_v9 }
 0x3c6   : > { %1663 = vrot.lane.b32.xlu1 %v4584_v42, %s6377_s19  ;;  %v1831_v43 = vpop.permute.xlu1 %1830 }
 0x3c7   : > { %1660 = vrot.lane.b32.xlu0 %v4587_v15, %s6377_s19  ;;  %v1829_v5 = vpop.permute.xlu0 %1828 }
 0x3ca   : > { %v1837_v21 = vpop.permute.xlu1 %1836 }
 0x3cb   : > { %v1835_v49 = vpop.permute.xlu0 %1834  ;;  %v1841_v60 = vsel %vm4491_vm9, %v1831_v43, %v1837_v21 }
 0x3cc   : > { %v1840_v20 = vsel %vm4491_vm9, %v1829_v5, %v1835_v49  ;;  %v4598_v3 = vmax.f32 %v4309_v13, %v1841_v60 }
 0x3cd   : > { %v4601_v52 = vmax.f32 %v4312_v4, %v1840_v20 }
 0x3ce   : > { %1847 = vrot.lane.b32.xlu1 %v4598_v3, %s6377_s19  ;;  %v2015_v17 = vpop.permute.xlu1 %2014 }
 0x3cf   : > { %1844 = vrot.lane.b32.xlu0 %v4601_v52, %s6377_s19  ;;  %v2013_v12 = vpop.permute.xlu0 %2012 }
 0x3d2   : > { %v2021_v7 = vpop.permute.xlu1 %2020 }
 0x3d3   : > { %v2019_v25 = vpop.permute.xlu0 %2018  ;;  %v2025_v37 = vsel %vm4491_vm9, %v2015_v17, %v2021_v7 }
 0x3d4   : > { %v2024_v13 = vsel %vm4491_vm9, %v2013_v12, %v2019_v25  ;;  %v4612_v1 = vmax.f32 %v4330_v29, %v2025_v37 }
 0x3d5   : > { %v4615_v4 = vmax.f32 %v4332_v50, %v2024_v13 }
 0x3d6   : > { %2031 = vrot.lane.b32.xlu1 %v4612_v1, %s6377_s19  ;;  %v2199_v40 = vpop.permute.xlu1 %2198 }
 0x3d7   : > { %2028 = vrot.lane.b32.xlu0 %v4615_v4, %s6377_s19  ;;  %v2197_v61 = vpop.permute.xlu0 %2196 }
 0x3da   : > { %v2205_v8 = vpop.permute.xlu1 %2204 }
 0x3db   : > { %v2203_v54 = vpop.permute.xlu0 %2202  ;;  %v2209_v27 = vsel %vm4491_vm9, %v2199_v40, %v2205_v8 }
 0x3dc   : > { %v2208_v29 = vsel %vm4491_vm9, %v2197_v61, %v2203_v54  ;;  %v4626_v11 = vmax.f32 %v4342_v10, %v2209_v27 }
 0x3dd   : > { %v4629_v50 = vmax.f32 %v4344_v48, %v2208_v29 }
 0x3de   : > { %2215 = vrot.lane.b32.xlu1 %v4626_v11, %s6377_s19 }
 0x3df   : > { %2212 = vrot.lane.b32.xlu0 %v4629_v50, %s6377_s19 }
 0x408   : > { %v560_v45 = vpop.permute.xlu1 %559 }
 0x409   : > { %v557_v44 = vpop.permute.xlu0 %556  ;;  %v561_v24 = vsel %vm365_vm4, %v560_v45, %v4500_v55 }
 0x40a   : > { %v558_v53 = vsel %vm365_vm4, %v557_v44, %v4503_v57  ;;  %564 = vrot.lane.b32.xlu1 %v561_v24, %s6377_s19 }
 0x40b   : > { %562 = vrot.lane.b32.xlu0 %v558_v53, %s6377_s19 }
 0x410   : > { %v744_v10 = vpop.permute.xlu1 %743 }
 0x411   : > { %v741_v48 = vpop.permute.xlu0 %740  ;;  %v745_v30 = vsel %vm365_vm4, %v744_v10, %v4514_v46 }
 0x412   : > { %v742_v16 = vsel %vm365_vm4, %v741_v48, %v4517_v28  ;;  %748 = vrot.lane.b32.xlu1 %v745_v30, %s6377_s19 }
 0x413   : > { %746 = vrot.lane.b32.xlu0 %v742_v16, %s6377_s19 }
 0x418   : > { %v928_v31 = vpop.permute.xlu1 %927 }
 0x419   : > { %v925_v34 = vpop.permute.xlu0 %924  ;;  %v929_v38 = vsel %vm365_vm4, %v928_v31, %v4528_v33 }
 0x41a   : > { %v926_v41 = vsel %vm365_vm4, %v925_v34, %v4531_v36  ;;  %932 = vrot.lane.b32.xlu1 %v929_v38, %s6377_s19 }
 0x41b   : > { %930 = vrot.lane.b32.xlu0 %v926_v41, %s6377_s19 }
 0x420   : > { %v1112_v63 = vpop.permute.xlu1 %1111 }
 0x421   : > { %v1109_v19 = vpop.permute.xlu0 %1108  ;;  %v1113_v56 = vsel %vm365_vm4, %v1112_v63, %v4542_v6 }
 0x422   : > { %v1110_v22 = vsel %vm365_vm4, %v1109_v19, %v4545_v58  ;;  %1116 = vrot.lane.b32.xlu1 %v1113_v56, %s6377_s19 }
 0x423   : > { %1114 = vrot.lane.b32.xlu0 %v1110_v22, %s6377_s19 }
 0x428   : > { %v1296_v14 = vpop.permute.xlu1 %1295 }
 0x429   : > { %v1293_v51 = vpop.permute.xlu0 %1292  ;;  %v1297_v35 = vsel %vm365_vm4, %v1296_v14, %v4556_v23 }
 0x42a   : > { %v1294_v32 = vsel %vm365_vm4, %v1293_v51, %v4559_v26  ;;  %1300 = vrot.lane.b32.xlu1 %v1297_v35, %s6377_s19 }
 0x42b   : > { %1298 = vrot.lane.b32.xlu0 %v1294_v32, %s6377_s19 }
 0x430   : > { %v1480_v59 = vpop.permute.xlu1 %1479 }
 0x431   : > { %v1477_v2 = vpop.permute.xlu0 %1476  ;;  %v1481_v9 = vsel %vm365_vm4, %v1480_v59, %v4570_v47 }
 0x432   : > { %v1478_v43 = vsel %vm365_vm4, %v1477_v2, %v4573_v18  ;;  %1484 = vrot.lane.b32.xlu1 %v1481_v9, %s6377_s19 }
 0x433   : > { %1482 = vrot.lane.b32.xlu0 %v1478_v43, %s6377_s19 }
 0x438   : > { %v1664_v5 = vpop.permute.xlu1 %1663 }
 0x439   : > { %v1661_v21 = vpop.permute.xlu0 %1660  ;;  %v1665_v49 = vsel %vm365_vm4, %v1664_v5, %v4584_v42 }
 0x43a   : > { %v1662_v60 = vsel %vm365_vm4, %v1661_v21, %v4587_v15  ;;  %1668 = vrot.lane.b32.xlu1 %v1665_v49, %s6377_s19 }
 0x43b   : > { %1666 = vrot.lane.b32.xlu0 %v1662_v60, %s6377_s19 }
 0x440   : > { %v1848_v20 = vpop.permute.xlu1 %1847 }
 0x441   : > { %v1845_v17 = vpop.permute.xlu0 %1844  ;;  %v1849_v12 = vsel %vm365_vm4, %v1848_v20, %v4598_v3 }
 0x442   : > { %v1846_v7 = vsel %vm365_vm4, %v1845_v17, %v4601_v52  ;;  %1852 = vrot.lane.b32.xlu1 %v1849_v12, %s6377_s19 }
 0x443   : > { %1850 = vrot.lane.b32.xlu0 %v1846_v7, %s6377_s19 }
 0x448   : > { %v2032_v25 = vpop.permute.xlu1 %2031 }
 0x449   : > { %v2029_v37 = vpop.permute.xlu0 %2028  ;;  %v2033_v13 = vsel %vm365_vm4, %v2032_v25, %v4612_v1 }
 0x44a   : > { %v2030_v40 = vsel %vm365_vm4, %v2029_v37, %v4615_v4  ;;  %2036 = vrot.lane.b32.xlu1 %v2033_v13, %s6377_s19 }
 0x44b   : > { %2034 = vrot.lane.b32.xlu0 %v2030_v40, %s6377_s19 }
 0x450   : > { %v2216_v61 = vpop.permute.xlu1 %2215 }
 0x451   : > { %v2213_v8 = vpop.permute.xlu0 %2212  ;;  %v2217_v54 = vsel %vm365_vm4, %v2216_v61, %v4626_v11 }
 0x452   : > { %v2214_v27 = vsel %vm365_vm4, %v2213_v8, %v4629_v50  ;;  %2220 = vrot.lane.b32.xlu1 %v2217_v54, %s6377_s19 }
 0x453   : > { %2218 = vrot.lane.b32.xlu0 %v2214_v27, %s6377_s19  ;;  %s4807_s19 = sld [smem:[#allocation8 + $0x55]]  ;;  %v591_v27 = vstv %s4725_s9 }
 0x454   : > { %s6420_s9 = sld [smem:[#allocation60_spill]] }
 0x459   : > { %6389 = sst [smem:[#allocation31_spill]] %s4807_s19 }
 0x45a   : > { %s4827_s19 = sld [smem:[#allocation8 + $0xc]] }
 0x460   : > { %6395 = sst [smem:[#allocation37_spill]] %s4827_s19 }
 0x461   : > { %s4845_s19 = sld [smem:[#allocation8 + $0xe]] }
 0x467   : > { %6401 = sst [smem:[#allocation44_spill]] %s4845_s19 }
 0x468   : > { %s4861_s19 = sld [smem:[#allocation8 + $0x14]] }
 0x46e   : > { %6406 = sst [smem:[#allocation53_spill]] %s4861_s19 }
 0x46f   : > { %s4875_s19 = sld [smem:[#allocation8 + $0x21]] }
 0x475   : > { %6411 = sst [smem:[#allocation58_spill]] %s4875_s19 }
 0x476   : > { %s5230_s19 = sld [smem:[#allocation8 + $0x57]] }
 0x47c   : > { %v565_v29 = vpop.permute.xlu1 %564 }
 0x47d   : > { %v563_v45 = vpop.permute.xlu0 %562  ;;  %v567_v44 = vsel %vm365_vm4, %v565_v29, %v4500_v55  ;;  %v609_v29 = vstv %s4727_s3  ;;  %s4904_s3 = sld [smem:[#allocation8 + $0x2c]] }
 0x47e   : > { %v566_v24 = vsel %vm365_vm4, %v563_v45, %v4503_v57  ;;  %572 = vrot.lane.b32.xlu1 %v567_v44, %s6379_s11  ;;  %v627_v45 = vstv %s4731_s30  ;;  %s6422_s30 = sld [smem:[#allocation26_spill]] }
 0x47f   : > { %570 = vrot.lane.b32.xlu0 %v566_v24, %s6379_s11 }
 0x483   : > { %6421 = sst [smem:[#allocation71_spill]] %s4904_s3 }
 0x484   : > { %v749_v53 = vpop.permute.xlu1 %748  ;;  %s4918_s3 = sld [smem:[#allocation8 + $0x33]] }
 0x485   : > { %v747_v10 = vpop.permute.xlu0 %746  ;;  %v751_v48 = vsel %vm365_vm4, %v749_v53, %v4514_v46  ;;  %v811_v53 = vstv %s4741_s28  ;;  %s6425_s28 = sld [smem:[#allocation29_spill]] }
 0x486   : > { %v750_v30 = vsel %vm365_vm4, %v747_v10, %v4517_v28  ;;  %756 = vrot.lane.b32.xlu1 %v751_v48, %s6379_s11  ;;  %v959_v10 = vstv %s4745_s24  ;;  %s4910_s24 = sld [smem:[#allocation8 + $0x2d]] }
 0x487   : > { %754 = vrot.lane.b32.xlu0 %v750_v30, %s6379_s11 }
 0x48a   : > { %580 = vrot.lane.b32.xlu1 %v567_v44, %s6378_s8  ;;  %v775_v44 = vstv %s4733_s16  ;;  %s6423_s16 = sld [smem:[#allocation27_spill]] }
 0x48b   : > { %578 = vrot.lane.b32.xlu0 %v566_v24, %s6378_s8  ;;  %v793_v24 = vstv %s4735_s6  ;;  %s6424_s6 = sld [smem:[#allocation28_spill]] }
 0x48c   : > { %v933_v16 = vpop.permute.xlu1 %932  ;;  %6426 = sst [smem:[#allocation73_spill]] %s4910_s24 }
 0x48d   : > { %v931_v31 = vpop.permute.xlu0 %930  ;;  %v935_v34 = vsel %vm365_vm4, %v933_v16, %v4528_v33  ;;  %v1143_v16 = vstv %s4751_s7  ;;  %s6429_s7 = sld [smem:[#allocation31_spill]] }
 0x48e   : > { %764 = vrot.lane.b32.xlu1 %v751_v48, %s6378_s8  ;;  %v934_v38 = vsel %vm365_vm4, %v931_v31, %v4531_v36  ;;  %v977_v48 = vstv %s4747_s0  ;;  %v1161_v31 = vstv %s4755_s13  ;;  %s4913_s0 = sld [smem:[#allocation8 + $0x30]] }
 0x48f   : > { %762 = vrot.lane.b32.xlu0 %v750_v30, %s6378_s8  ;;  %v995_v30 = vstv %s4749_s17  ;;  %s6428_s17 = sld [smem:[#allocation30_spill]] }
 0x490   : > { %s6430_s13 = sld [smem:[#allocation32_spill]] }
 0x491   : > { %6431 = sst [smem:[#allocation75_spill]] %s4918_s3 }
 0x492   : > { %940 = vrot.lane.b32.xlu1 %v935_v34, %s6379_s11  ;;  %6519 = sst [smem:[#allocation27_spill]] %s5242_s23 }
 0x493   : > { %938 = vrot.lane.b32.xlu0 %v934_v38, %s6379_s11  ;;  %s6542_s23 = sld [smem:[#allocation41_spill]] }
 0x494   : > { %v1117_v41 = vpop.permute.xlu1 %1116  ;;  %6427 = sst [smem:[#allocation74_spill]] %s4913_s0 }
 0x495   : > { %v1115_v63 = vpop.permute.xlu0 %1114  ;;  %v1119_v19 = vsel %vm365_vm4, %v1117_v41, %v4542_v6  ;;  %v1345_v41 = vstv %s4765_s21  ;;  %s4950_s21 = sld [smem:[#allocation8 + $0x35]] }
 0x496   : > { %948 = vrot.lane.b32.xlu1 %v935_v34, %s6378_s8  ;;  %v1118_v56 = vsel %vm365_vm4, %v1115_v63, %v4545_v58  ;;  %v1179_v34 = vstv %s4757_s15  ;;  %v1363_v63 = vstv %s4769_s25  ;;  %s4924_s15 = sld [smem:[#allocation8 + $0x2f]] }
 0x497   : > { %946 = vrot.lane.b32.xlu0 %v934_v38, %s6378_s8  ;;  %v1327_v38 = vstv %s4759_s1  ;;  %s4933_s1 = sld [smem:[#allocation8 + $0x32]] }
 0x498   : > { %s4964_s25 = sld [smem:[#allocation8 + $0x36]] }
 0x49a   : > { %1124 = vrot.lane.b32.xlu1 %v1119_v19, %s6379_s11 }
 0x49b   : > { %1122 = vrot.lane.b32.xlu0 %v1118_v56, %s6379_s11  ;;  %6434 = sst [smem:[#allocation47_spill]] %s4950_s21 }
 0x49c   : > { %v1301_v22 = vpop.permute.xlu1 %1300  ;;  %6432 = sst [smem:[#allocation77_spill]] %s4924_s15 }
 0x49d   : > { %v1299_v14 = vpop.permute.xlu0 %1298  ;;  %v1303_v51 = vsel %vm365_vm4, %v1301_v22, %v4556_v23  ;;  %v1547_v22 = vstv %s4775_s14  ;;  %6433 = sst [smem:[#allocation78_spill]] %s4933_s1 }
 0x49e   : > { %1132 = vrot.lane.b32.xlu1 %v1119_v19, %s6378_s8  ;;  %v1302_v35 = vsel %vm365_vm4, %v1299_v14, %v4559_v26  ;;  %v1511_v19 = vstv %s4771_s10  ;;  %v1695_v14 = vstv %s4779_s29  ;;  %6435 = sst [smem:[#allocation50_spill]] %s4964_s25 }
 0x49f   : > { %1130 = vrot.lane.b32.xlu0 %v1118_v56, %s6378_s8  ;;  %v1529_v56 = vstv %s4773_s5  ;;  %s4978_s10 = sld [smem:[#allocation8 + $0x39]] }
 0x4a0   : > { %s4992_s5 = sld [smem:[#allocation8 + $0x3c]] }
 0x4a1   : > { %s5006_s14 = sld [smem:[#allocation8 + $0x38]] }
 0x4a2   : > { %1308 = vrot.lane.b32.xlu1 %v1303_v51, %s6379_s11  ;;  %s5104_s29 = sld [smem:[#allocation8 + $0x41]] }
 0x4a3   : > { %1306 = vrot.lane.b32.xlu0 %v1302_v35, %s6379_s11  ;;  %s5218_s25 = sld [smem:[#allocation8 + $0x51]] }
 0x4a4   : > { %v1485_v32 = vpop.permute.xlu1 %1484  ;;  %s6504_s21 = sld [smem:[#allocation77_spill]] }
 0x4a5   : > { %v1483_v59 = vpop.permute.xlu0 %1482  ;;  %v1487_v2 = vsel %vm365_vm4, %v1485_v32, %v4570_v47  ;;  %v1879_v32 = vstv %s4789_s27  ;;  %6436 = sst [smem:[#allocation63_spill]] %s4978_s10 }
 0x4a6   : > { %1316 = vrot.lane.b32.xlu1 %v1303_v51, %s6378_s8  ;;  %v1486_v9 = vsel %vm365_vm4, %v1483_v59, %v4573_v18  ;;  %v1713_v51 = vstv %s4781_s20  ;;  %v1897_v59 = vstv %s6420_s9  ;;  %6437 = sst [smem:[#allocation69_spill]] %s4992_s5 }
 0x4a7   : > { %1314 = vrot.lane.b32.xlu0 %v1302_v35, %s6378_s8  ;;  %v1731_v35 = vstv %s4783_s18  ;;  %6438 = sst [smem:[#allocation92_spill]] %s5006_s14 }
 0x4a8   : > { %s5020_s20 = sld [smem:[#allocation8 + $0x3b]] }
 0x4a9   : > { %s5034_s14 = sld [smem:[#allocation8 + $0x3e]] }
 0x4aa   : > { %1492 = vrot.lane.b32.xlu1 %v1487_v2, %s6379_s11  ;;  %6456 = sst [smem:[#allocation95_spill]] %s5104_s29 }
 0x4ab   : > { %1490 = vrot.lane.b32.xlu0 %v1486_v9, %s6379_s11  ;;  %s6463_s27 = sld [smem:[#allocation34_spill]] }
 0x4ac   : > { %v1669_v43 = vpop.permute.xlu1 %1668  ;;  %s5128_s29 = sld [smem:[#allocation8 + $0x47]] }
 0x4ad   : > { %v1667_v5 = vpop.permute.xlu0 %1666  ;;  %v1671_v21 = vsel %vm365_vm4, %v1669_v43, %v4584_v42  ;;  %v2081_v43 = vstv %s6424_s6  ;;  %s6465_s9 = sld [smem:[#allocation35_spill]] }
 0x4ae   : > { %1500 = vrot.lane.b32.xlu1 %v1487_v2, %s6378_s8  ;;  %v1670_v49 = vsel %vm365_vm4, %v1667_v5, %v4587_v15  ;;  %v1915_v2 = vstv %s6422_s30  ;;  %v2099_v5 = vstv %s6425_s28  ;;  %6439 = sst [smem:[#allocation79_spill]] %s5020_s20 }
 0x4af   : > { %1498 = vrot.lane.b32.xlu0 %v1486_v9, %s6378_s8  ;;  %v2063_v9 = vstv %s6423_s16  ;;  %6440 = sst [smem:[#allocation67_spill]] %s5034_s14 }
 0x4b0   : > { %s5048_s20 = sld [smem:[#allocation8 + $0x3f]] }
 0x4b1   : > { %s5064_s14 = sld [smem:[#allocation8 + $0x42]] }
 0x4b2   : > { %1676 = vrot.lane.b32.xlu1 %v1671_v21, %s6379_s11  ;;  %6464 = sst [smem:[#allocation49_spill]] %s5128_s29 }
 0x4b3   : > { %1674 = vrot.lane.b32.xlu0 %v1670_v49, %s6379_s11  ;;  %s6472_s29 = sld [smem:[#allocation38_spill]] }
 0x4b4   : > { %v1853_v60 = vpop.permute.xlu1 %1852  ;;  %s5173_s28 = sld [smem:[#allocation8 + $0x4b]] }
 0x4b5   : > { %v1851_v20 = vpop.permute.xlu0 %1850  ;;  %v1855_v17 = vsel %vm365_vm4, %v1853_v60, %v4598_v3  ;;  %v5119_v60 = vmul.f32 %v1915_v2, %v4601_v52  ;;  %s6501_s30 = sld [smem:[#allocation65_spill]] }
 0x4b6   : > { %1684 = vrot.lane.b32.xlu1 %v1671_v21, %s6378_s8  ;;  %v1854_v12 = vsel %vm365_vm4, %v1851_v20, %v4601_v52  ;;  %v4931_v21 = vmul.f32 %v591_v27, %v4500_v55  ;;  %6441 = sst [smem:[#allocation81_spill]] %s5048_s20  ;;  %v5062_v20 = vmul.f32 %v1695_v14, %v4584_v42 }
 0x4b7   : > { %1682 = vrot.lane.b32.xlu0 %v1670_v49, %s6378_s8  ;;  %6446 = sst [smem:[#allocation72_spill]] %s5064_s14  ;;  %6460 = vst [vmem:[#allocation120_spill] sm:$0xff] %v5119_v60  ;;  %v5155_v49 = vmul.f32 %v2099_v5, %v4615_v4  ;;  %v6528_v60 = vstv %s6463_s27 }
 0x4b8   : > { %6445 = vst [vmem:[#allocation85_spill] sm:$0xff] %v5062_v20  ;;  %s5082_s20 = sld [smem:[#allocation8 + $0x45]] }
 0x4b9   : > { %s5150_s14 = sld [smem:[#allocation8 + $0x48]]  ;;  %6475 = vst [vmem:[#allocation94_spill] sm:$0xff] %v5155_v49 }
 0x4ba   : > { %1860 = vrot.lane.b32.xlu1 %v1855_v17, %s6379_s11  ;;  %6485 = sst [smem:[#allocation60_spill]] %s5173_s28 }
 0x4bb   : > { %1858 = vrot.lane.b32.xlu0 %v1854_v12, %s6379_s11  ;;  %s6505_s18 = sld [smem:[#allocation78_spill]] }
 0x4bc   : > { %v2037_v7 = vpop.permute.xlu1 %2036  ;;  %s5224_s28 = sld [smem:[#allocation8 + $0x54]] }
 0x4bd   : > { %v2035_v25 = vpop.permute.xlu0 %2034  ;;  %v2039_v37 = vsel %vm365_vm4, %v2037_v7, %v4612_v1  ;;  %v4945_v7 = vmul.f32 %v591_v27, %v4503_v57  ;;  %v4981_v27 = vmul.f32 %v977_v48, %v4528_v33  ;;  %s6507_s6 = sld [smem:[#allocation50_spill]] }
 0x4be   : > { %1868 = vrot.lane.b32.xlu1 %v1855_v17, %s6378_s8  ;;  %v2038_v13 = vsel %vm365_vm4, %v2035_v25, %v4615_v4  ;;  %v4939_v17 = vmul.f32 %v609_v29, %v4500_v55  ;;  %v4948_v25 = vmul.f32 %v609_v29, %v4503_v57  ;;  %v4987_v29 = vmul.f32 %v959_v10, %v4531_v36  ;;  %6451 = sst [smem:[#allocation45_spill]] %s5082_s20 }
 0x4bf   : > { %1866 = vrot.lane.b32.xlu0 %v1854_v12, %s6378_s8  ;;  %v4942_v12 = vmul.f32 %v627_v45, %v4500_v55  ;;  %v4962_v55 = vmul.f32 %v811_v53, %v4514_v46  ;;  %s5121_s20 = sld [smem:[#allocation8 + $0x44]] }
 0x4c0   : > { %6473 = sst [smem:[#allocation43_spill]] %s5150_s14 }
 0x4c1   : > { %s6508_s15 = sld [smem:[#allocation63_spill]] }
 0x4c2   : > { %2044 = vrot.lane.b32.xlu1 %v2039_v37, %s6379_s11  ;;  %s6510_s3 = sld [smem:[#allocation92_spill]] }
 0x4c3   : > { %2042 = vrot.lane.b32.xlu0 %v2038_v13, %s6379_s11  ;;  %s6511_s16 = sld [smem:[#allocation79_spill]] }
 0x4c4   : > { %v2221_v40 = vpop.permute.xlu1 %2220  ;;  %s6512_s22 = sld [smem:[#allocation67_spill]] }
 0x4c5   : > { %v2219_v61 = vpop.permute.xlu0 %2218  ;;  %v2223_v8 = vsel %vm365_vm4, %v2221_v40, %v4626_v11  ;;  %v4959_v40 = vmul.f32 %v793_v24, %v4514_v46  ;;  %6461 = sst [smem:[#allocation80_spill]] %s5121_s20 }
 0x4c6   : > { %2052 = vrot.lane.b32.xlu1 %v2039_v37, %s6378_s8  ;;  %v2222_v54 = vsel %vm365_vm4, %v2219_v61, %v4629_v50  ;;  %v4953_v37 = vmul.f32 %v627_v45, %v4503_v57  ;;  %v4967_v61 = vmul.f32 %v775_v44, %v4517_v28  ;;  %v4973_v57 = vmul.f32 %v811_v53, %v4517_v28  ;;  %s5206_s20 = sld [smem:[#allocation8 + $0x4d]] }
 0x4c7   : > { %2050 = vrot.lane.b32.xlu0 %v2038_v13, %s6378_s8  ;;  %v4956_v13 = vmul.f32 %v775_v44, %v4514_v46  ;;  %v4984_v46 = vmul.f32 %v995_v30, %v4528_v33  ;;  %v4990_v45 = vmul.f32 %v977_v48, %v4531_v36  ;;  %v4998_v44 = vmul.f32 %v1143_v16, %v4542_v6  ;;  %s6513_s4 = sld [smem:[#allocation81_spill]] }
 0x4c8   : > { %v5009_v53 = vmul.f32 %v1143_v16, %v4545_v58  ;;  %v5018_v48 = vmul.f32 %v1327_v38, %v4556_v23  ;;  %v5029_v16 = vmul.f32 %v1327_v38, %v4559_v26  ;;  %v5046_v38 = vmul.f32 %v1547_v22, %v4570_v47  ;;  %s6516_s5 = sld [smem:[#allocation45_spill]] }
 0x4c9   : > { %s6518_s2 = sld [smem:[#allocation80_spill]] }
 0x4ca   : > { %2228 = vrot.lane.b32.xlu1 %v2223_v8, %s6379_s11  ;;  %s6520_s10 = sld [smem:[#allocation49_spill]] }
 0x4cb   : > { %2226 = vrot.lane.b32.xlu0 %v2222_v54, %s6379_s11  ;;  %s4877_s11 = sld [smem:[#allocation8 + $0x1d]] }
 0x4cc   : > { %s6521_s24 = sld [smem:[#allocation43_spill]] }
 0x4cd   : > { %s6522_s0 = sld [smem:[#allocation60_spill]] }
 0x4ce   : > { %2236 = vrot.lane.b32.xlu1 %v2223_v8, %s6378_s8  ;;  %v4970_v8 = vmul.f32 %v793_v24, %v4517_v28  ;;  %v4995_v28 = vmul.f32 %v995_v30, %v4531_v36  ;;  %v5001_v24 = vmul.f32 %v1161_v31, %v4542_v6  ;;  %v5015_v36 = vmul.f32 %v1179_v34, %v4545_v58  ;;  %s5248_s14 = sld [smem:[#allocation8 + $0x59]] }
 0x4cf   : > { %2234 = vrot.lane.b32.xlu0 %v2222_v54, %s6378_s8  ;;  %s4892_s8 = sld [smem:[#allocation8 + $0x26]]  ;;  %v4976_v54 = vmul.f32 %v959_v10, %v4528_v33  ;;  %v5004_v33 = vmul.f32 %v1179_v34, %v4542_v6  ;;  %v5012_v10 = vmul.f32 %v1161_v31, %v4545_v58  ;;  %v5023_v6 = vmul.f32 %v1345_v41, %v4556_v23 }
 0x4d0   : > { %v5026_v30 = vmul.f32 %v1363_v63, %v4556_v23  ;;  %v5032_v58 = vmul.f32 %v1345_v41, %v4559_v26  ;;  %v5037_v31 = vmul.f32 %v1363_v63, %v4559_v26  ;;  %v5040_v34 = vmul.f32 %v1511_v19, %v4570_v47  ;;  %s6524_s1 = sld [smem:[#allocation33_spill]] }
 0x4d1   : > { %6412 = sst [smem:[#allocation59_spill]] %s4877_s11  ;;  %v5043_v23 = vmul.f32 %v1529_v56, %v4570_v47  ;;  %v5051_v41 = vmul.f32 %v1511_v19, %v4573_v18  ;;  %v5054_v26 = vmul.f32 %v1529_v56, %v4573_v18  ;;  %v5057_v63 = vmul.f32 %v1547_v22, %v4573_v18 }
 0x4d2   : > { %v5067_v47 = vmul.f32 %v1713_v51, %v4584_v42  ;;  %v5072_v19 = vmul.f32 %v1731_v35, %v4584_v42  ;;  %v5077_v18 = vmul.f32 %v1695_v14, %v4587_v15  ;;  %v5080_v56 = vmul.f32 %v1713_v51, %v4587_v15  ;;  %s5236_s11 = sld [smem:[#allocation8 + $0x53]] }
 0x4d3   : > { %6442 = vst [vmem:[#allocation82_spill] sm:$0xff] %v5051_v41  ;;  %6443 = vst [vmem:[#allocation83_spill] sm:$0xff] %v5054_v26  ;;  %v5087_v22 = vmul.f32 %v1731_v35, %v4587_v15  ;;  %v5092_v42 = vmul.f32 %v1879_v32, %v4598_v3  ;;  %v5097_v14 = vmul.f32 %v1897_v59, %v4598_v3  ;;  %s6537_s27 = sld [smem:[#allocation42_spill]] }
 0x4d4   : > { %6444 = vst [vmem:[#allocation125_spill] sm:$0xff] %v5057_v63  ;;  %6447 = vst [vmem:[#allocation88_spill] sm:$0xff] %v5067_v47  ;;  %v5102_v51 = vmul.f32 %v1915_v2, %v4598_v3  ;;  %v5109_v15 = vmul.f32 %v1879_v32, %v4601_v52  ;;  %v5114_v35 = vmul.f32 %v1897_v59, %v4601_v52  ;;  %6523 = sst [smem:[#allocation28_spill]] %s5248_s14 }
 0x4d5   : > { %6418 = sst [smem:[#allocation68_spill]] %s4892_s8  ;;  %6448 = vst [vmem:[#allocation90_spill] sm:$0xff] %v5072_v19  ;;  %6449 = vst [vmem:[#allocation126_spill] sm:$0xff] %v5077_v18  ;;  %v5126_v3 = vmul.f32 %v2063_v9, %v4612_v1  ;;  %v5133_v32 = vmul.f32 %v2081_v43, %v4612_v1  ;;  %v5138_v52 = vmul.f32 %v2099_v5, %v4612_v1  ;;  %v6476_v1 = vstv %s6428_s17 }
 0x4d6   : > { %6450 = vst [vmem:[#allocation127_spill] sm:$0xff] %v5080_v56  ;;  %6452 = vst [vmem:[#allocation128_spill] sm:$0xff] %v5087_v22  ;;  %v5143_v59 = vmul.f32 %v2063_v9, %v4615_v4  ;;  %v5148_v2 = vmul.f32 %v2081_v43, %v4615_v4  ;;  %v5160_v39 = vmul.f32 %v6476_v1, %v4626_v11  ;;  %v6479_v9 = vstv %s6429_s7  ;;  %s5194_s17 = sld [smem:[#allocation8 + $0x4e]] }
 0x4d7   : > { %6453 = vst [vmem:[#allocation93_spill] sm:$0xff] %v5092_v42  ;;  %6454 = vst [vmem:[#allocation96_spill] sm:$0xff] %v5097_v14  ;;  %v6481_v43 = vstv %s6430_s13  ;;  %v6486_v4 = vmov %v6476_v1  ;;  %v6489_v1 = vmov %v6479_v9  ;;  %s5200_s13 = sld [smem:[#allocation8 + $0x4a]]  ;;  %v6535_v18 = vstv %s6472_s29 }
 0x4d8   : > { %6455 = vst [vmem:[#allocation98_spill] sm:$0xff] %v5102_v51  ;;  %6458 = vst [vmem:[#allocation101_spill] sm:$0xff] %v5109_v15  ;;  %v5178_v5 = vmul.f32 %v6486_v4, %v4629_v50  ;;  %s6509_s7 = sld [smem:[#allocation69_spill]]  ;;  %v6531_v15 = vmov %v6528_v60 }
 0x4d9   : > { %6459 = vst [vmem:[#allocation129_spill] sm:$0xff] %v5114_v35  ;;  %6462 = vst [vmem:[#allocation84_spill] sm:$0xff] %v5126_v3  ;;  %6515 = sst [smem:[#allocation26_spill]] %s5236_s11 }
 0x4da   : > { %6466 = vst [vmem:[#allocation86_spill] sm:$0xff] %v5133_v32  ;;  %6468 = vst [vmem:[#allocation87_spill] sm:$0xff] %v5138_v52  ;;  %s6526_s8 = sld [smem:[#allocation37_spill]] }
 0x4db   : > { %6470 = vst [vmem:[#allocation89_spill] sm:$0xff] %v5143_v59  ;;  %6471 = vst [vmem:[#allocation91_spill] sm:$0xff] %v5148_v2  ;;  %v5165_v59 = vmul.f32 %v6479_v9, %v4626_v11  ;;  %v5170_v2 = vmul.f32 %v6481_v43, %v4626_v11  ;;  %v6492_v9 = vmov %v6481_v43  ;;  %s6540_s11 = sld [smem:[#allocation46_spill]] }
 0x4dc   : > { %6478 = vst [vmem:[#allocation97_spill] sm:$0xff] %v5160_v39  ;;  %6488 = vst [vmem:[#allocation100_spill] sm:$0xff] %v5178_v5  ;;  %v5183_v39 = vmul.f32 %v6489_v1, %v4629_v50  ;;  %v6527_v5 = vstv %s6524_s1  ;;  %s6536_s1 = sld [smem:[#allocation39_spill]] }
 0x4dd   : > { %6480 = vst [vmem:[#allocation103_spill] sm:$0xff] %v5165_v59  ;;  %6482 = vst [vmem:[#allocation99_spill] sm:$0xff] %v5170_v2  ;;  %v5188_v59 = vmul.f32 %v6492_v9, %v4629_v50  ;;  %v6529_v9 = vstv %s6465_s9  ;;  %v6530_v32 = vmov %v6527_v5  ;;  %s6538_s9 = sld [smem:[#allocation44_spill]] }
 0x4de   : > { %6491 = vst [vmem:[#allocation102_spill] sm:$0xff] %v5183_v39  ;;  %s6541_s14 = sld [smem:[#allocation40_spill]] }
 0x4df   : > { %6493 = vst [vmem:[#allocation104_spill] sm:$0xff] %v5188_v59 }
 0x4f0   : > { %v573_v39 = vpop.permute.xlu1 %572 }
 0x4f1   : > { %v571_v50 = vpop.permute.xlu0 %570  ;;  %v577_v4 = vsel %vm3495_vm5, 0.0, %v573_v39 }
 0x4f2   : > { %v576_v1 = vsel %vm3495_vm5, 0.0, %v571_v50  ;;  %v589_v3 = vmul.f32 %v6527_v5, %v577_v4  ;;  %v607_v35 = vmul.f32 %v6528_v60, %v577_v4  ;;  %v625_v11 = vmul.f32 %v6529_v9, %v577_v4 }
 0x4f3   : > { %v588_v49 = vmul.f32 %v6530_v32, %v576_v1  ;;  %v606_v51 = vmul.f32 %v6531_v15, %v576_v1  ;;  %v6533_v50 = vstv %s6525_s26 }
 0x4f4   : > { %v631_v42 = vadd.f32 %v4942_v12, %v625_v11  ;;  %v6543_v12 = vstv %s6526_s8  ;;  %v6545_v11 = vstv %s6536_s1  ;;  %s6571_s1 = sld [smem:[#allocation56_spill]] }
 0x4f5   : > { %v612_v60 = vadd.f32 %v4948_v25, %v606_v51 }
 0x4f8   : > { %v757_v59 = vpop.permute.xlu1 %756 }
 0x4f9   : > { %v755_v2 = vpop.permute.xlu0 %754  ;;  %v761_v39 = vsel %vm3495_vm5, 0.0, %v757_v59  ;;  %v6532_v59 = vmov %v6529_v9  ;;  %v6534_v9 = vstv %s6526_s8  ;;  %s6558_s8 = sld [smem:[#allocation51_spill]] }
 0x4fa   : > { %v624_v14 = vmul.f32 %v6532_v59, %v576_v1  ;;  %v773_v22 = vmul.f32 %v6533_v50, %v761_v39  ;;  %v760_v5 = vsel %vm3495_vm5, 0.0, %v755_v2  ;;  %v791_v32 = vmul.f32 %v6534_v9, %v761_v39 }
 0x4fb   : > { %v809_v15 = vmul.f32 %v6535_v18, %v761_v39  ;;  %v595_v59 = vadd.f32 %v4931_v21, %v589_v3  ;;  %v613_v50 = vadd.f32 %v4939_v17, %v607_v35  ;;  %v594_v2 = vadd.f32 %v4945_v7, %v588_v49 }
 0x4fc   : > { %v581_v43 = vpop.permute.xlu1 %580  ;;  %v630_v4 = vadd.f32 %v4953_v37, %v624_v14  ;;  %v6539_v9 = vstv %s6525_s26  ;;  %v779_v17 = vadd.f32 %v4956_v13, %v773_v22  ;;  %v790_v35 = vmul.f32 %v6543_v12, %v760_v5  ;;  %s6555_s26 = sld [smem:[#allocation48_spill]] }
 0x4fd   : > { %v579_v56 = vpop.permute.xlu0 %578  ;;  %v772_v18 = vmul.f32 %v6539_v9, %v760_v5  ;;  %v585_v21 = vsel %vm3594_vm6, 0.0, %v581_v43  ;;  %v6544_v49 = vstv %s6472_s29  ;;  %v797_v51 = vadd.f32 %v4959_v40, %v791_v32  ;;  %s6564_s29 = sld [smem:[#allocation55_spill]] }
 0x4fe   : > { %v808_v7 = vmul.f32 %v6544_v49, %v760_v5  ;;  %v584_v25 = vsel %vm3594_vm6, 0.0, %v579_v56  ;;  %v815_v3 = vadd.f32 %v4962_v55, %v809_v15  ;;  %v599_v43 = vmul.f32 %v6545_v11, %v585_v21 }
 0x4ff   : > { %v6546_v39 = vstv %s6537_s27  ;;  %v6547_v5 = vstv %s6538_s9  ;;  %v6548_v12 = vstv %s6540_s11  ;;  %v6549_v1 = vstv %s6541_s14  ;;  %s6562_s14 = sld [smem:[#allocation54_spill]] }
 0x500   : > { %v765_v37 = vpop.permute.xlu1 %764  ;;  %v617_v40 = vmul.f32 %v6549_v1, %v585_v21  ;;  %v6550_v32 = vstv %s6542_s23  ;;  %v6551_v15 = vmov %v6545_v11  ;;  %v796_v47 = vadd.f32 %v4970_v8, %v790_v35  ;;  %s6559_s23 = sld [smem:[#allocation52_spill]] }
 0x501   : > { %v763_v14 = vpop.permute.xlu0 %762  ;;  %v769_v13 = vsel %vm3594_vm6, 0.0, %v765_v37  ;;  %v635_v55 = vmul.f32 %v6550_v32, %v585_v21  ;;  %v598_v19 = vmul.f32 %v6551_v15, %v584_v25  ;;  %v6552_v37 = vmov %v6549_v1  ;;  %s6575_s27 = sld [smem:[#allocation57_spill]] }
 0x502   : > { %v768_v22 = vsel %vm3594_vm6, 0.0, %v763_v14  ;;  %v783_v56 = vmul.f32 %v6546_v39, %v769_v13  ;;  %v801_v9 = vmul.f32 %v6547_v5, %v769_v13  ;;  %v819_v49 = vmul.f32 %v6548_v12, %v769_v13 }
 0x503   : > { %v616_v52 = vmul.f32 %v6552_v37, %v584_v25  ;;  %v778_v14 = vadd.f32 %v4967_v61, %v772_v18  ;;  %v6553_v11 = vmov %v6550_v32  ;;  %v6554_v63 = vmov %v6546_v39 }
 0x504   : > { %v634_v20 = vmul.f32 %v6553_v11, %v584_v25  ;;  %v782_v39 = vmul.f32 %v6554_v63, %v768_v22  ;;  %v941_v26 = vpop.permute.xlu1 %940  ;;  %v814_v13 = vadd.f32 %v4973_v57, %v808_v7  ;;  %v6556_v1 = vstv %s6538_s9  ;;  %s6577_s9 = sld [smem:[#allocation58_spill]] }
 0x505   : > { %v939_v5 = vpop.permute.xlu0 %938  ;;  %v800_v12 = vmul.f32 %v6556_v1, %v768_v22  ;;  %v6557_v21 = vstv %s6540_s11  ;;  %v945_v15 = vsel %vm3495_vm5, 0.0, %v941_v26  ;;  %v601_v37 = vadd.f32 %v599_v43, %v595_v59  ;;  %s6561_s11 = sld [smem:[#allocation53_spill]] }
 0x506   : > { %v818_v32 = vmul.f32 %v6557_v21, %v768_v22  ;;  %v785_v61 = vadd.f32 %v783_v56, %v779_v17  ;;  %v803_v8 = vadd.f32 %v801_v9, %v797_v51  ;;  %v821_v18 = vadd.f32 %v819_v49, %v815_v3 }
 0x507   : > { %v619_v35 = vadd.f32 %v617_v40, %v613_v50  ;;  %v637_v25 = vadd.f32 %v635_v55, %v631_v42  ;;  %v600_v63 = vadd.f32 %v598_v19, %v594_v2  ;;  %v618_v11 = vadd.f32 %v616_v52, %v612_v60 }
 0x508   : > { %v636_v41 = vadd.f32 %v634_v20, %v630_v4  ;;  %v784_v57 = vadd.f32 %v782_v39, %v778_v14  ;;  %v6560_v7 = vstv %s6555_s26  ;;  %v944_v26 = vsel %vm3495_vm5, 0.0, %v939_v5  ;;  %v949_v59 = vpop.permute.xlu1 %948  ;;  %s6579_s26 = sld [smem:[#allocation59_spill]] }
 0x509   : > { %v957_v22 = vmul.f32 %v6560_v7, %v945_v15  ;;  %v947_v17 = vpop.permute.xlu0 %946  ;;  %v802_v51 = vadd.f32 %v800_v12, %v796_v47  ;;  %v820_v50 = vadd.f32 %v818_v32, %v814_v13  ;;  %v6563_v42 = vstv %s6558_s8  ;;  %s6580_s8 = sld [smem:[#allocation61_spill]] }
 0x50a   : > { %v975_v19 = vmul.f32 %v6563_v42, %v945_v15  ;;  %v953_v52 = vsel %vm3594_vm6, 0.0, %v949_v59  ;;  %v787_v20 = vadd.f32 %v785_v61, %v601_v37  ;;  %v805_v60 = vadd.f32 %v803_v8, %v619_v35 }
 0x50b   : > { %v823_v4 = vadd.f32 %v821_v18, %v637_v25  ;;  %v952_v2 = vsel %vm3594_vm6, 0.0, %v947_v17  ;;  %v6565_v3 = vstv %s6559_s23  ;;  %v6566_v56 = vmov %v6560_v7  ;;  %s6581_s23 = sld [smem:[#allocation62_spill]] }
 0x50c   : > { %v993_v43 = vmul.f32 %v6565_v3, %v945_v15  ;;  %v956_v47 = vmul.f32 %v6566_v56, %v944_v26  ;;  %v6567_v9 = vmov %v6563_v42  ;;  %v6568_v40 = vstv %s6561_s11  ;;  %v1125_v21 = vpop.permute.xlu1 %1124  ;;  %s6590_s11 = sld [smem:[#allocation64_spill]] }
 0x50d   : > { %v974_v49 = vmul.f32 %v6567_v9, %v944_v26  ;;  %v967_v55 = vmul.f32 %v6568_v40, %v953_v52  ;;  %v786_v14 = vadd.f32 %v784_v57, %v600_v63  ;;  %v963_v39 = vadd.f32 %v4976_v54, %v957_v22  ;;  %v1123_v32 = vpop.permute.xlu0 %1122 }
 0x50e   : > { %v6569_v5 = vmov %v6565_v3  ;;  %v6570_v1 = vstv %s6562_s14  ;;  %v804_v37 = vadd.f32 %v802_v51, %v618_v11  ;;  %v981_v15 = vadd.f32 %v4981_v27, %v975_v19  ;;  %s6595_s14 = sld [smem:[#allocation66_spill]] }
 0x50f   : > { %v992_v13 = vmul.f32 %v6569_v5, %v944_v26  ;;  %v985_v12 = vmul.f32 %v6570_v1, %v953_v52  ;;  %v6572_v61 = vstv %s6564_s29  ;;  %v6573_v18 = vmov %v6568_v40  ;;  %s6597_s29 = sld [smem:[#allocation68_spill]] }
 0x510   : > { %v1003_v8 = vmul.f32 %v6572_v61, %v953_v52  ;;  %v966_v35 = vmul.f32 %v6573_v18, %v952_v2  ;;  %v969_v25 = vadd.f32 %v967_v55, %v963_v39  ;;  %v6574_v7 = vmov %v6570_v1 }
 0x511   : > { %v984_v63 = vmul.f32 %v6574_v7, %v952_v2  ;;  %v6576_v57 = vmov %v6572_v61  ;;  %v1129_v22 = vsel %vm3495_vm5, 0.0, %v1125_v21  ;;  %v822_v26 = vadd.f32 %v820_v50, %v636_v41  ;;  %v1131_v41 = vpop.permute.xlu0 %1130 }
 0x512   : > { %v1002_v54 = vmul.f32 %v6576_v57, %v952_v2  ;;  %v999_v59 = vadd.f32 %v4984_v46, %v993_v43  ;;  %v962_v11 = vadd.f32 %v4987_v29, %v956_v47  ;;  %v980_v27 = vadd.f32 %v4990_v45, %v974_v49  ;;  %v1133_v2 = vpop.permute.xlu1 %1132 }
 0x513   : > { %v998_v17 = vadd.f32 %v4995_v28, %v992_v13  ;;  %v987_v51 = vadd.f32 %v985_v12, %v981_v15  ;;  %v6578_v42 = vstv %s6571_s1  ;;  %v1128_v52 = vsel %vm3495_vm5, 0.0, %v1123_v32  ;;  %s6598_s1 = sld [smem:[#allocation70_spill]] }
 0x514   : > { %v1141_v19 = vmul.f32 %v6578_v42, %v1129_v22  ;;  %v1005_v46 = vadd.f32 %v1003_v8, %v999_v59  ;;  %v968_v29 = vadd.f32 %v966_v35, %v962_v11  ;;  %v6582_v50 = vstv %s6575_s27  ;;  %s6599_s27 = sld [smem:[#allocation71_spill]] }
 0x515   : > { %v1159_v3 = vmul.f32 %v6582_v50, %v1129_v22  ;;  %v6583_v45 = vstv %s6577_s9  ;;  %v971_v56 = vadd.f32 %v969_v25, %v787_v20  ;;  %v986_v28 = vadd.f32 %v984_v63, %v980_v27  ;;  %v1307_v35 = vpop.permute.xlu0 %1306  ;;  %s6603_s9 = sld [smem:[#allocation73_spill]] }
 0x516   : > { %v1177_v43 = vmul.f32 %v6583_v45, %v1129_v22  ;;  %v1004_v47 = vadd.f32 %v1002_v54, %v998_v17  ;;  %v1137_v9 = vsel %vm3594_vm6, 0.0, %v1133_v2  ;;  %v6584_v49 = vmov %v6578_v42  ;;  %v1309_v18 = vpop.permute.xlu1 %1308 }
 0x517   : > { %v1140_v40 = vmul.f32 %v6584_v49, %v1128_v52  ;;  %v6585_v55 = vmov %v6582_v50  ;;  %v6586_v5 = vmov %v6583_v45  ;;  %v1136_v1 = vsel %vm3594_vm6, 0.0, %v1131_v41 }
 0x518   : > { %v1158_v39 = vmul.f32 %v6585_v55, %v1128_v52  ;;  %v1176_v13 = vmul.f32 %v6586_v5, %v1128_v52  ;;  %v1147_v12 = vadd.f32 %v4998_v44, %v1141_v19  ;;  %v6587_v20 = vstv %s6579_s26  ;;  %s6609_s26 = sld [smem:[#allocation74_spill]] }
 0x519   : > { %v1151_v21 = vmul.f32 %v6587_v20, %v1137_v9  ;;  %v6588_v32 = vstv %s6580_s8  ;;  %v6589_v61 = vstv %s6581_s23  ;;  %v989_v25 = vadd.f32 %v987_v51, %v805_v60  ;;  %s6615_s8 = sld [smem:[#allocation47_spill]] }
 0x51a   : > { %v1169_v15 = vmul.f32 %v6588_v32, %v1137_v9  ;;  %v1187_v8 = vmul.f32 %v6589_v61, %v1137_v9  ;;  %v1165_v7 = vadd.f32 %v5001_v24, %v1159_v3  ;;  %v1183_v63 = vadd.f32 %v5004_v33, %v1177_v43  ;;  %v1317_v50 = vpop.permute.xlu1 %1316  ;;  %v1315_v3 = vpop.permute.xlu0 %1314 }
 0x51b   : > { %v1313_v57 = vsel %vm3495_vm5, 0.0, %v1309_v18  ;;  %v1153_v54 = vadd.f32 %v1151_v21, %v1147_v12  ;;  %v6591_v22 = vmov %v6587_v20  ;;  %v6592_v59 = vmov %v6588_v32 }
 0x51c   : > { %v1150_v44 = vmul.f32 %v6591_v22, %v1136_v1  ;;  %v1168_v11 = vmul.f32 %v6592_v59, %v1136_v1  ;;  %v6593_v27 = vmov %v6589_v61  ;;  %v1007_v42 = vadd.f32 %v1005_v46, %v823_v4 }
 0x51d   : > { %v1186_v17 = vmul.f32 %v6593_v27, %v1136_v1  ;;  %v970_v19 = vadd.f32 %v968_v29, %v786_v14  ;;  %v1171_v52 = vadd.f32 %v1169_v15, %v1165_v7  ;;  %v1189_v2 = vadd.f32 %v1187_v8, %v1183_v63 }
 0x51e   : > { %v1146_v60 = vadd.f32 %v5009_v53, %v1140_v40  ;;  %v1164_v24 = vadd.f32 %v5012_v10, %v1158_v39  ;;  %v1182_v33 = vadd.f32 %v5015_v36, %v1176_v13  ;;  %v6594_v51 = vstv %s6590_s11  ;;  %v1493_v13 = vpop.permute.xlu1 %1492  ;;  %v1491_v1 = vpop.permute.xlu0 %1490 }
 0x51f   : > { %v1325_v41 = vmul.f32 %v6594_v51, %v1313_v57  ;;  %v988_v45 = vadd.f32 %v986_v28, %v804_v37  ;;  %v1006_v43 = vadd.f32 %v1004_v47, %v822_v26  ;;  %v6596_v9 = vstv %s6501_s30  ;;  %s6612_s30 = sld [smem:[#allocation75_spill]] }
 0x520   : > { %v1343_v4 = vmul.f32 %v6596_v9, %v1313_v57  ;;  %v1312_v14 = vsel %vm3495_vm5, 0.0, %v1307_v35  ;;  %v1155_v53 = vadd.f32 %v1153_v54, %v971_v56  ;;  %v1152_v10 = vadd.f32 %v1150_v44, %v1146_v60 }
 0x521   : > { %v1170_v36 = vadd.f32 %v1168_v11, %v1164_v24  ;;  %v1188_v46 = vadd.f32 %v1186_v17, %v1182_v33  ;;  %v1173_v29 = vadd.f32 %v1171_v52, %v989_v25  ;;  %v1191_v49 = vadd.f32 %v1189_v2, %v1007_v42 }
 0x522   : > { %v1321_v37 = vsel %vm3594_vm6, 0.0, %v1317_v50  ;;  %v1320_v26 = vsel %vm3594_vm6, 0.0, %v1315_v3  ;;  %v1331_v28 = vadd.f32 %v5018_v48, %v1325_v41  ;;  %v6600_v47 = vstv %s6595_s14  ;;  %v1501_v2 = vpop.permute.xlu1 %1500  ;;  %v1499_v60 = vpop.permute.xlu0 %1498 }
 0x523   : > { %v1361_v56 = vmul.f32 %v6600_v47, %v1313_v57  ;;  %v6601_v40 = vmov %v6594_v51  ;;  %v6602_v39 = vmov %v6596_v9  ;;  %v1349_v12 = vadd.f32 %v5023_v6, %v1343_v4 }
 0x524   : > { %v1324_v55 = vmul.f32 %v6601_v40, %v1312_v14  ;;  %v1342_v5 = vmul.f32 %v6602_v39, %v1312_v14  ;;  %v6604_v20 = vmov %v6600_v47  ;;  %v6605_v32 = vstv %s6597_s29 }
 0x525   : > { %v1360_v21 = vmul.f32 %v6604_v20, %v1312_v14  ;;  %v1335_v15 = vmul.f32 %v6605_v32, %v1321_v37  ;;  %v6606_v61 = vstv %s6598_s1  ;;  %v6607_v18 = vstv %s6599_s27 }
 0x526   : > { %v1353_v8 = vmul.f32 %v6606_v61, %v1321_v37  ;;  %v1371_v48 = vmul.f32 %v6607_v18, %v1321_v37  ;;  %v6608_v35 = vmov %v6605_v32  ;;  %v6610_v7 = vmov %v6606_v61  ;;  %v1677_v37 = vpop.permute.xlu1 %1676 }
 0x527   : > { %v1334_v25 = vmul.f32 %v6608_v35, %v1320_v26  ;;  %v1352_v63 = vmul.f32 %v6610_v7, %v1320_v26  ;;  %v1497_v57 = vsel %vm3495_vm5, 0.0, %v1493_v13  ;;  %v1154_v54 = vadd.f32 %v1152_v10, %v970_v19 }
 0x528   : > { %v1337_v22 = vadd.f32 %v1335_v15, %v1331_v28  ;;  %v1355_v44 = vadd.f32 %v1353_v8, %v1349_v12  ;;  %v6611_v6 = vmov %v6607_v18  ;;  %v1367_v11 = vadd.f32 %v5026_v30, %v1361_v56  ;;  %v6626_v8 = vld [vmem:[#allocation82_spill] sm:$0xff] }
 0x529   : > { %v1370_v59 = vmul.f32 %v6611_v6, %v1320_v26  ;;  %v1330_v27 = vadd.f32 %v5029_v16, %v1324_v55  ;;  %v1348_v17 = vadd.f32 %v5032_v58, %v1342_v5  ;;  %v6613_v42 = vstv %s6603_s9 }
 0x52a   : > { %v1509_v52 = vmul.f32 %v6613_v42, %v1497_v57  ;;  %v1172_v24 = vadd.f32 %v1170_v36, %v988_v45  ;;  %v1366_v33 = vadd.f32 %v5037_v31, %v1360_v21  ;;  %v6614_v19 = vstv %s6609_s26  ;;  %v1685_v7 = vpop.permute.xlu1 %1684 }
 0x52b   : > { %v1527_v51 = vmul.f32 %v6614_v19, %v1497_v57  ;;  %v1496_v41 = vsel %vm3495_vm5, 0.0, %v1491_v1  ;;  %v1190_v50 = vadd.f32 %v1188_v46, %v1006_v43  ;;  %v1373_v30 = vadd.f32 %v1371_v48, %v1367_v11 }
 0x52c   : > { %v1336_v16 = vadd.f32 %v1334_v25, %v1330_v27  ;;  %v1354_v58 = vadd.f32 %v1352_v63, %v1348_v17  ;;  %v1339_v3 = vadd.f32 %v1337_v22, %v1155_v53  ;;  %v1357_v9 = vadd.f32 %v1355_v44, %v1173_v29  ;;  %v1675_v53 = vpop.permute.xlu0 %1674  ;;  %v6628_v44 = vld [vmem:[#allocation125_spill] sm:$0xff] }
 0x52d   : > { %v1372_v45 = vadd.f32 %v1370_v59, %v1366_v33  ;;  %v6616_v4 = vstv %s6612_s30  ;;  %v1515_v14 = vadd.f32 %v5040_v34, %v1509_v52  ;;  %v6617_v10 = vmov %v6613_v42 }
 0x52e   : > { %v1545_v31 = vmul.f32 %v6616_v4, %v1497_v57  ;;  %v1508_v43 = vmul.f32 %v6617_v10, %v1496_v41  ;;  %v1505_v36 = vsel %vm3594_vm6, 0.0, %v1501_v2  ;;  %v1504_v46 = vsel %vm3594_vm6, 0.0, %v1499_v60 }
 0x52f   : > { %v1533_v29 = vadd.f32 %v5043_v23, %v1527_v51  ;;  %v6618_v28 = vmov %v6614_v19  ;;  %v6619_v56 = vmov %v6616_v4  ;;  %v6620_v34 = vstv %s6504_s21  ;;  %s6634_s21 = sld [smem:[#allocation72_spill]] }
 0x530   : > { %v1551_v26 = vadd.f32 %v5046_v38, %v1545_v31  ;;  %v1526_v47 = vmul.f32 %v6618_v28, %v1496_v41  ;;  %v1544_v40 = vmul.f32 %v6619_v56, %v1496_v41  ;;  %v1519_v55 = vmul.f32 %v6620_v34, %v1505_v36  ;;  %v1683_v63 = vpop.permute.xlu0 %1682 }
 0x531   : > { %v6621_v39 = vstv %s6505_s18  ;;  %v6622_v13 = vstv %s6615_s8  ;;  %v6623_v12 = vmov %v6620_v34  ;;  %v1375_v21 = vadd.f32 %v1373_v30, %v1191_v49  ;;  %v6627_v49 = vld [vmem:[#allocation83_spill] sm:$0xff] }
 0x532   : > { %v1537_v5 = vmul.f32 %v6621_v39, %v1505_v36  ;;  %v1555_v1 = vmul.f32 %v6622_v13, %v1505_v36  ;;  %v1518_v20 = vmul.f32 %v6623_v12, %v1504_v46  ;;  %v6624_v32 = vmov %v6621_v39 }
 0x533   : > { %v1536_v15 = vmul.f32 %v6624_v32, %v1504_v46  ;;  %v6625_v61 = vmov %v6622_v13  ;;  %v1681_v38 = vsel %vm3495_vm5, 0.0, %v1677_v37  ;;  %v1514_v18 = vadd.f32 %v6626_v8, %v1508_v43  ;;  %v6635_v43 = vld [vmem:[#allocation85_spill] sm:$0xff] }
 0x534   : > { %v1554_v23 = vmul.f32 %v6625_v61, %v1504_v46  ;;  %v1521_v48 = vadd.f32 %v1519_v55, %v1515_v14  ;;  %v1539_v35 = vadd.f32 %v1537_v5, %v1533_v29  ;;  %v1557_v25 = vadd.f32 %v1555_v1, %v1551_v26  ;;  %v1859_v31 = vpop.permute.xlu0 %1858  ;;  %v6636_v46 = vld [vmem:[#allocation88_spill] sm:$0xff] }
 0x535   : > { %v1338_v57 = vadd.f32 %v1336_v16, %v1154_v54  ;;  %v1532_v22 = vadd.f32 %v6627_v49, %v1526_v47  ;;  %v1550_v6 = vadd.f32 %v6628_v44, %v1544_v40  ;;  %v1680_v59 = vsel %vm3495_vm5, 0.0, %v1675_v53 }
 0x536   : > { %v1356_v11 = vadd.f32 %v1354_v58, %v1172_v24  ;;  %v1520_v27 = vadd.f32 %v1518_v20, %v1514_v18  ;;  %v6629_v17 = vstv %s6507_s6  ;;  %v6630_v52 = vstv %s6508_s15  ;;  %v1861_v58 = vpop.permute.xlu1 %1860  ;;  %v6647_v18 = vld [vmem:[#allocation126_spill] sm:$0xff]  ;;  %s6711_s15 = sld [smem:[#allocation20_spill]] }
 0x537   : > { %v1693_v42 = vmul.f32 %v6629_v17, %v1681_v38  ;;  %v1711_v2 = vmul.f32 %v6630_v52, %v1681_v38  ;;  %v1374_v60 = vadd.f32 %v1372_v45, %v1190_v50  ;;  %v1523_v33 = vadd.f32 %v1521_v48, %v1339_v3  ;;  %s6712_s6 = sld [smem:[#allocation134_spill]] }
 0x538   : > { %v1538_v19 = vadd.f32 %v1536_v15, %v1532_v22  ;;  %v1556_v54 = vadd.f32 %v1554_v23, %v1550_v6  ;;  %v1541_v51 = vadd.f32 %v1539_v35, %v1357_v9  ;;  %v1559_v41 = vadd.f32 %v1557_v25, %v1375_v21  ;;  %v1867_v23 = vpop.permute.xlu0 %1866  ;;  %v6648_v35 = vld [vmem:[#allocation127_spill] sm:$0xff] }
 0x539   : > { %v6631_v30 = vstv %s6509_s7  ;;  %v6632_v4 = vmov %v6629_v17  ;;  %v6633_v50 = vmov %v6630_v52  ;;  %v1689_v45 = vsel %vm3594_vm6, 0.0, %v1685_v7  ;;  %v6651_v52 = vld [vmem:[#allocation93_spill] sm:$0xff] }
 0x53a   : > { %v1729_v16 = vmul.f32 %v6631_v30, %v1681_v38  ;;  %v1692_v24 = vmul.f32 %v6632_v4, %v1680_v59  ;;  %v1710_v3 = vmul.f32 %v6633_v50, %v1680_v59  ;;  %v1688_v9 = vsel %vm3594_vm6, 0.0, %v1683_v63  ;;  %v1869_v61 = vpop.permute.xlu1 %1868  ;;  %v6646_v38 = vld [vmem:[#allocation90_spill] sm:$0xff] }
 0x53b   : > { %v1865_v14 = vsel %vm3495_vm5, 0.0, %v1861_v58  ;;  %v1522_v10 = vadd.f32 %v1520_v27, %v1338_v57  ;;  %v1699_v36 = vadd.f32 %v6635_v43, %v1693_v42  ;;  %v1717_v37 = vadd.f32 %v6636_v46, %v1711_v2  ;;  %v6649_v57 = vld [vmem:[#allocation128_spill] sm:$0xff] }
 0x53c   : > { %v6637_v53 = vmov %v6631_v30  ;;  %v6638_v26 = vstv %s6510_s3  ;;  %v6639_v47 = vstv %s6511_s16  ;;  %v6640_v40 = vstv %s6512_s22  ;;  %s6650_s22 = sld [smem:[#allocation95_spill]]  ;;  %v6652_v30 = vld [vmem:[#allocation96_spill] sm:$0xff]  ;;  %p6713_p2 = scmp.ne.s32.totalorder %s6711_s15, 0 }
 0x53d   : > { %v1728_v29 = vmul.f32 %v6637_v53, %v1680_v59  ;;  %v1703_v28 = vmul.f32 %v6638_v26, %v1689_v45  ;;  %v1721_v56 = vmul.f32 %v6639_v47, %v1689_v45  ;;  %v1739_v34 = vmul.f32 %v6640_v40, %v1689_v45  ;;  %s6706_s3 = sld [smem:[#allocation14_spill]] }
 0x53e   : > { %v6641_v55 = vmov %v6638_v26  ;;  %v6642_v5 = vmov %v6639_v47  ;;  %v6643_v1 = vmov %v6640_v40  ;;  %v6644_v20 = vstv %s6513_s4  ;;  %v2045_v4 = vpop.permute.xlu1 %2044  ;;  %s6688_s4 = sld [smem:[#allocation27_spill]] }
 0x53f   : > { %v1702_v39 = vmul.f32 %v6641_v55, %v1688_v9  ;;  %v1720_v13 = vmul.f32 %v6642_v5, %v1688_v9  ;;  %v1738_v12 = vmul.f32 %v6643_v1, %v1688_v9  ;;  %v1877_v21 = vmul.f32 %v6644_v20, %v1865_v14  ;;  %v6663_v1 = vld [vmem:[#allocation101_spill] sm:$0xff] }
 0x540   : > { %v6645_v32 = vstv %s6634_s21  ;;  %v1735_v8 = vadd.f32 %v6646_v38, %v1729_v16  ;;  %v1698_v48 = vadd.f32 %v6647_v18, %v1692_v24  ;;  %v1716_v25 = vadd.f32 %v6648_v35, %v1710_v3  ;;  %v2043_v24 = vpop.permute.xlu0 %2042 }
 0x541   : > { %v1895_v15 = vmul.f32 %v6645_v32, %v1865_v14  ;;  %v1705_v7 = vadd.f32 %v1703_v28, %v1699_v36  ;;  %v1540_v63 = vadd.f32 %v1538_v19, %v1356_v11  ;;  %v1734_v49 = vadd.f32 %v6649_v57, %v1728_v29 }
 0x542   : > { %v1723_v22 = vadd.f32 %v1721_v56, %v1717_v37  ;;  %v1864_v44 = vsel %vm3495_vm5, 0.0, %v1859_v31  ;;  %v1558_v6 = vadd.f32 %v1556_v54, %v1374_v60  ;;  %v1741_v59 = vadd.f32 %v1739_v34, %v1735_v8  ;;  %v6658_v37 = vld [vmem:[#allocation98_spill] sm:$0xff]  ;;  %v2053_v5 = vpop.permute.xlu1 %2052 }
 0x543   : > { %v1704_v27 = vadd.f32 %v1702_v39, %v1698_v48  ;;  %v1722_v17 = vadd.f32 %v1720_v13, %v1716_v25  ;;  %v1740_v42 = vadd.f32 %v1738_v12, %v1734_v49  ;;  %v1883_v2 = vadd.f32 %v6651_v52, %v1877_v21  ;;  %v6666_v48 = vld [vmem:[#allocation120_spill] sm:$0xff] }
 0x544   : > { %v1901_v11 = vadd.f32 %v6652_v30, %v1895_v15  ;;  %v6653_v19 = vstv %s6516_s5  ;;  %v1707_v58 = vadd.f32 %v1705_v7, %v1523_v33  ;;  %v6654_v60 = vmov %v6644_v20  ;;  %v2051_v13 = vpop.permute.xlu0 %2050 }
 0x545   : > { %v1913_v16 = vmul.f32 %v6653_v19, %v1865_v14  ;;  %v1876_v54 = vmul.f32 %v6654_v60, %v1864_v44  ;;  %v1873_v31 = vsel %vm3594_vm6, 0.0, %v1869_v61  ;;  %v1872_v50 = vsel %vm3594_vm6, 0.0, %v1867_v23  ;;  %v6665_v23 = vld [vmem:[#allocation129_spill] sm:$0xff]  ;;  %v6673_v60 = vld [vmem:[#allocation84_spill] sm:$0xff] }
 0x546   : > { %v1725_v3 = vadd.f32 %v1723_v22, %v1541_v51  ;;  %v6655_v45 = vmov %v6645_v32  ;;  %v6656_v43 = vstv %s6650_s22  ;;  %v6657_v46 = vstv %s6518_s2  ;;  %s6687_s2 = sld [smem:[#allocation26_spill]] }
 0x547   : > { %v1894_v9 = vmul.f32 %v6655_v45, %v1864_v44  ;;  %v1887_v36 = vmul.f32 %v6656_v43, %v1873_v31  ;;  %v1905_v14 = vmul.f32 %v6657_v46, %v1873_v31  ;;  %v1919_v53 = vadd.f32 %v6658_v37, %v1913_v16 }
 0x548   : > { %v6659_v29 = vmov %v6653_v19  ;;  %v6660_v26 = vstv %s6520_s10  ;;  %v6661_v47 = vmov %v6656_v43  ;;  %v1743_v40 = vadd.f32 %v1741_v59, %v1559_v41  ;;  %v2227_v30 = vpop.permute.xlu0 %2226 }
 0x549   : > { %v1912_v33 = vmul.f32 %v6659_v29, %v1864_v44  ;;  %v1923_v28 = vmul.f32 %v6660_v26, %v1873_v31  ;;  %v1886_v56 = vmul.f32 %v6661_v47, %v1872_v50  ;;  %v1889_v34 = vadd.f32 %v1887_v36, %v1883_v2  ;;  %v2229_v2 = vpop.permute.xlu1 %2228  ;;  %v6674_v31 = vld [vmem:[#allocation87_spill] sm:$0xff] }
 0x54a   : > { %v1907_v55 = vadd.f32 %v1905_v14, %v1901_v11  ;;  %v6662_v51 = vmov %v6657_v46  ;;  %v1882_v12 = vadd.f32 %v6663_v1, %v1876_v54  ;;  %v6664_v21 = vmov %v6660_v26 }
 0x54b   : > { %v1904_v39 = vmul.f32 %v6662_v51, %v1872_v50  ;;  %v1925_v20 = vadd.f32 %v1923_v28, %v1919_v53  ;;  %v1922_v32 = vmul.f32 %v6664_v21, %v1872_v50  ;;  %v2049_v15 = vsel %vm3495_vm5, 0.0, %v2045_v4  ;;  %v6681_v28 = vld [vmem:[#allocation86_spill] sm:$0xff]  ;;  %v6683_v51 = vld [vmem:[#allocation91_spill] sm:$0xff] }
 0x54c   : > { %v1706_v61 = vadd.f32 %v1704_v27, %v1522_v10  ;;  %v5573_v41 = vadd.f32 %v1722_v17, %v1540_v63  ;;  %v1900_v38 = vadd.f32 %v6665_v23, %v1894_v9  ;;  %v2048_v8 = vsel %vm3495_vm5, 0.0, %v2043_v24 }
 0x54d   : > { %v1742_v18 = vadd.f32 %v1740_v42, %v1558_v6  ;;  %v1918_v35 = vadd.f32 %v6666_v48, %v1912_v33  ;;  %v1888_v25 = vadd.f32 %v1886_v56, %v1882_v12  ;;  %v6667_v7 = vstv %s6521_s24  ;;  %v6682_v56 = vld [vmem:[#allocation89_spill] sm:$0xff]  ;;  %v2235_v48 = vpop.permute.xlu0 %2234  ;;  %s6709_s24 = sld [smem:[#allocation17_spill]] }
 0x54e   : > { %v2061_v57 = vmul.f32 %v6667_v7, %v2049_v15  ;;  %v1891_v49 = vadd.f32 %v1889_v34, %v1707_v58  ;;  %v5581_v22 = vadd.f32 %v1907_v55, %v1725_v3  ;;  %v5583_v10 = vadd.f32 %v1904_v39, %v1900_v38 }
 0x54f   : > { %v6668_v63 = vstv %s5194_s17  ;;  %v1927_v59 = vadd.f32 %v1925_v20, %v1743_v40  ;;  %v1924_v27 = vadd.f32 %v1922_v32, %v1918_v35  ;;  %v6669_v6 = vstv %s6522_s0  ;;  %s255_s0 = sand.u32 1, %s6706_s3  }
 0x550   : > { %v2097_v44 = vmul.f32 %v6668_v63, %v2049_v15  ;;  %v2079_v17 = vmul.f32 %v6669_v6, %v2049_v15  ;;  %v6670_v42 = vmov %v6667_v7  ;;  %v6671_v11 = vmov %v6669_v6  ;;  %s5682_s17 = scalar_lea.sflag [#allocation4], %s255_s0 }
 0x551   : > { %v2060_v52 = vmul.f32 %v6670_v42, %v2048_v8  ;;  %v2078_v19 = vmul.f32 %v6671_v11, %v2048_v8  ;;  %v6672_v16 = vmov %v6668_v63  ;;  %v2057_v24 = vsel %vm3594_vm6, 0.0, %v2053_v5  ;;  %v6684_v5 = vld [vmem:[#allocation94_spill] sm:$0xff]  ;;  %v6694_v11 = vld [vmem:[#allocation97_spill] sm:$0xff] }
 0x552   : > { %v2096_v4 = vmul.f32 %v6672_v16, %v2048_v8  ;;  %v2056_v58 = vsel %vm3594_vm6, 0.0, %v2051_v13  ;;  %v2067_v54 = vadd.f32 %v6673_v60, %v2061_v57  ;;  %v2103_v50 = vadd.f32 %v6674_v31, %v2097_v44  ;;  %v2237_v8 = vpop.permute.xlu1 %2236  ;;  %v6698_v60 = vld [vmem:[#allocation99_spill] sm:$0xff]  ;;  %v6699_v31 = vld [vmem:[#allocation100_spill] sm:$0xff] }
 0x553   : > { %v6675_v3 = vstv %s5200_s13  ;;  %v6676_v9 = vstv %s5206_s20  ;;  %v6677_v36 = vstv %s5212_s12  ;;  %v2085_v47 = vadd.f32 %v6681_v28, %v2079_v17  ;;  %s6689_s12 = sld [smem:[#allocation28_spill]]  ;;  %s2634_s10 = sshll.u32 %s6709_s24, 8 }
 0x554   : > { %v2071_v45 = vmul.f32 %v6675_v3, %v2057_v24  ;;  %v2089_v43 = vmul.f32 %v6676_v9, %v2057_v24  ;;  %v2107_v46 = vmul.f32 %v6677_v36, %v2057_v24  ;;  %v6678_v14 = vmov %v6675_v3  ;;  %s2875_s13 = smov [#allocation9]  }
 0x555   : > { %v2070_v37 = vmul.f32 %v6678_v14, %v2056_v58  ;;  %v6679_v53 = vmov %v6676_v9  ;;  %v6680_v33 = vmov %v6677_v36  ;;  %v2066_v40 = vadd.f32 %v6682_v56, %v2060_v52  ;;  %v6702_v36 = vld [vmem:[#allocation104_spill] sm:$0xff]  ;;  %s2803_s23 = sshll.u32 %s2875_s13, 4  ;;  %s2804_s23 = int_to_ptr.vmem [resolvable:$false] %s2803_s23 }
 0x556   : > { %v2088_v29 = vmul.f32 %v6679_v53, %v2056_v58  ;;  %v2106_v26 = vmul.f32 %v6680_v33, %v2056_v58  ;;  %v2073_v34 = vadd.f32 %v2071_v45, %v2067_v54  ;;  %v2233_v55 = vsel %vm3495_vm5, 0.0, %v2229_v2  ;;  %s2805_s11 = scalar_lea.vmem %s2804_s23, 512 }
 0x557   : > { %v2084_v39 = vadd.f32 %v6683_v51, %v2078_v19  ;;  %v2102_v13 = vadd.f32 %v6684_v5, %v2096_v4  ;;  %v2109_v1 = vadd.f32 %v2107_v46, %v2103_v50  ;;  %v2232_v12 = vsel %vm3495_vm5, 0.0, %v2227_v30 }
 0x558   : > { %v1890_v20 = vadd.f32 %v1888_v25, %v1706_v61  ;;  %v1926_v21 = vadd.f32 %v1924_v27, %v1742_v18  ;;  %v6685_v32 = vstv %s5218_s25  ;;  %v6686_v23 = vstv %s5224_s28  ;;  %s2438_s25 = sshll.u32 %s255_s0, 4  ;;  %s5678_s28 = scalar_lea.hbm %s6712_s6, %s2634_s10 }
 0x559   : > { %v2245_v15 = vmul.f32 %v6685_v32, %v2233_v55  ;;  %v2263_v38 = vmul.f32 %v6686_v23, %v2233_v55  ;;  %v2091_v35 = vadd.f32 %v2089_v43, %v2085_v47  ;;  %v2072_v7 = vadd.f32 %v2070_v37, %v2066_v40  ;;  %s257_s5 = scalar_lea.vmem [#allocation9], %s2438_s25 }
 0x55a   : > { %v2090_v57 = vadd.f32 %v2088_v29, %v2084_v39  ;;  %v2108_v63 = vadd.f32 %v2106_v26, %v2102_v13  ;;  %v2075_v62 = vadd.f32 %v2073_v34, %v1891_v49  ;;  %v2111_v44 = vadd.f32 %v2109_v1, %v1927_v59  ;;  %v6695_v49 = vld [vmem:[#allocation103_spill] sm:$0xff]  ;;  %v6705_v26 = vld [vmem:[#allocation102_spill] sm:$0xff]  ;;  %s2335_s20 = sshll.u32 %s257_s5, 4  ;;  %s5680_s20 = int_to_ptr.vmem [resolvable:$true] %s2335_s20 }
 0x55b   : > { %v6690_v6 = vstv %s5230_s19  ;;  %v6691_v61 = vmov %v6685_v32  ;;  %v6692_v25 = vmov %v6686_v23  ;;  %v2241_v2 = vsel %vm3594_vm6, 0.0, %v2237_v8  ;;  %s5655_s19 = sld [smem:[#allocation2]]  ;;  %s2799_s7 = scalar_lea.vmem %s5680_s20, 256 }
 0x55c   : > { %v2281_v17 = vmul.f32 %v6690_v6, %v2233_v55  ;;  %v2244_v18 = vmul.f32 %v6691_v61, %v2232_v12  ;;  %v2262_v27 = vmul.f32 %v6692_v25, %v2232_v12  ;;  %v6693_v42 = vmov %v6690_v6  ;;  %p2800_p12 = scmp.ne.s32.totalorder %s5680_s20, %s2799_s7  ;;  %p2806_p9 = scmp.lt.s32.totalorder %s5680_s20, %s2804_s23 }
 0x55d   : > { %v2280_v52 = vmul.f32 %v6693_v42, %v2232_v12  ;;  %v2240_v30 = vsel %vm3594_vm6, 0.0, %v2235_v48  ;;  %v2251_v19 = vadd.f32 %v6694_v11, %v2245_v15  ;;  %v2269_v59 = vadd.f32 %v6695_v49, %v2263_v38  ;;  %p2807_p7 = scmp.lt.s32.totalorder %s2805_s11, %s2799_s7 }
 0x55e   : > { %v6696_v16 = vstv %s6687_s2  ;;  %v6697_v24 = vstv %s6688_s4  ;;  %v2287_v54 = vadd.f32 %v6698_v60, %v2281_v17  ;;  %v2250_v50 = vadd.f32 %v6699_v31, %v2244_v18  ;;  %p2801_p3 = pnand %p2800_p12, %p6713_p2 }
 0x55f   : > { %v2255_v4 = vmul.f32 %v6696_v16, %v2241_v2  ;;  %v2273_v58 = vmul.f32 %v6697_v24, %v2241_v2  ;;  %v6700_v3 = vstv %s6689_s12  ;;  %v6701_v9 = vmov %v6696_v16  ;;  %p2808_p5 = por %p2807_p7, %p2806_p9 }
 0x560   : > { %v2291_v45 = vmul.f32 %v6700_v3, %v2241_v2  ;;  %v2254_v43 = vmul.f32 %v6701_v9, %v2240_v30  ;;  %v2286_v46 = vadd.f32 %v6702_v36, %v2280_v52  ;;  %v6703_v14 = vmov %v6697_v24  ;;  %p2802_p4 = pneg %p2801_p3 }
 0x561   : > { %v2257_v0 = vadd.f32 %v2255_v4, %v2251_v19  ;;  %v2272_v37 = vmul.f32 %v6703_v14, %v2240_v30  ;;  %v6704_v53 = vmov %v6700_v3  ;;  %v2074_v33 = vadd.f32 %v2072_v7, %v1890_v20 }
 0x562   : > { %v2290_v29 = vmul.f32 %v6704_v53, %v2240_v30  ;;  %v2268_v28 = vadd.f32 %v6705_v26, %v2262_v27  ;;  %v2293_v47 = vadd.f32 %v2291_v45, %v2287_v54  ;;  %v2256_v56 = vadd.f32 %v2254_v43, %v2250_v50  ;;  %p2809_p6 = pnand %p2808_p5, %p2802_p4 }
 0x563   : > { %v2110_v40 = vadd.f32 %v2108_v63, %v1926_v21  ;;  %v2259_v34 = vadd.f32 %v2257_v0, %v2075_v62  ;;  %v2275_v55 = vadd.f32 %v2273_v58, %v2269_v59  ;;  %v1908_v39 = vadd.f32 %v5583_v10, %v5573_v41 }
 0x564   : > { %v2292_v51 = vadd.f32 %v2290_v29, %v2286_v46  ;;  %v2295_v5 = vadd.f32 %v2293_v47, %v2111_v44  ;;  %v2258_v13 = vadd.f32 %v2256_v56, %v2074_v33  ;;  %v2274_v1 = vadd.f32 %v2272_v37, %v2268_v28 }
 0x565   : > { %v2093_v12 = vadd.f32 %v2091_v35, %v5581_v22  ;;  %v2297_v20 = vrot.slane %v2259_v34, 7  ;;  %v2092_v15 = vadd.f32 %v2090_v57, %v1908_v39  ;;  %v2313_v57 = vstv %s5655_s19 }
 0x566   : > { %v2294_v32 = vadd.f32 %v2292_v51, %v2110_v40  ;;  %v2305_v23 = vrot.slane %v2295_v5, 1  ;;  %v2296_v38 = vrot.slane %v2258_v13, 7 }
 0x567   : > { %v2277_v8 = vadd.f32 %v2275_v55, %v2093_v12  ;;  %v2276_v21 = vadd.f32 %v2274_v1, %v2092_v15 }
 0x568   : > { %v2304_v48 = vrot.slane %v2294_v32, 1  ;;  %v2298_v63 = vsel %vm353_vm1, %v2296_v38, %v2297_v20  ;;  %v2299_v41 = vsel %vm353_vm1, %v2297_v20, %v2296_v38 }
 0x569   : > { %v2300_v62 = vsel %vm3031_vm0, 0.0, %v2299_v41  ;;  %v2303_v22 = vadd.f32 %v2298_v63, %v2277_v8 }
 0x56a   : > { %v2307_v35 = vsel %vm360_vm2, %v2305_v23, %v2304_v48  ;;  %v2302_v44 = vadd.f32 %v2300_v62, %v2276_v21  ;;  %v2306_v61 = vsel %vm360_vm2, %v2304_v48, %v2305_v23 }
 0x56b   : > { %v2309_v17 = vsel %vm3052_vm3, 0.0, %v2307_v35 }
 0x56c   : > { %v2311_v18 = vadd.f32 %v2309_v17, %v2303_v22  ;;  %v2310_v25 = vadd.f32 %v2306_v61, %v2302_v44 }
 0x56e   : > { %v2315_v27 = vadd.f32 %v2313_v57, %v2311_v18  ;;  %v2314_v42 = vadd.f32 %v2313_v57, %v2310_v25 }
 0x570   : > { %2750 = vtanh.f32 %v2315_v27 }
 0x571   : > { %2752 = vtanh.f32 %v2314_v42 }
 0x57d   : > { %v2751_v52 = vpop.eup %2750 }
 0x57e   : > { %v2753_v2 = vpop.eup %2752  ;;  %2320 = vst.msk [vmem:[%s257_s5 + $0x8] sm:$0xff] %vm2318_vm10, %v2751_v52 }
 0x57f   : > { %2319 = vst.msk [vmem:[%s257_s5] sm:$0xff] %vm2318_vm10, %v2753_v2 }
 0x580   : > { %2812 = shalt.err (!%p2809_p6)
}
 0x581   : > { %s2813_s14 = scalar_lea.hbm %s5678_s28, 256  ;;  %s2817_s27 = scalar_lea.hbm %s6712_s6, 512 }
 0x582   : > { %p2814_p10 = scmp.ne.s32.totalorder %s5678_s28, %s2813_s14  ;;  %p2818_p11 = scmp.lt.s32.totalorder %s5678_s28, %s6712_s6 }
 0x583   : > { %p2819_p13 = scmp.lt.s32.totalorder %s2817_s27, %s2813_s14 }
 0x584   : > { %p2815_p8 = pnand %p2814_p10, %p6713_p2 }
 0x585   : > { %p2820_p1 = por %p2819_p13, %p2818_p11 }
 0x586   : > { %p2816_p0 = pneg %p2815_p8 }
 0x588   : > { %p2821_p12 = pnand %p2820_p1, %p2816_p0 }
 0x58a   : > { %2824 = shalt.err (!%p2821_p12)
}
 0x58b   : > { %s2876_s30 = smov 128   ;;  %s2877_s8 = smov 8  }
 0x58c   : > { %2647 = dma.vmem_to_hbm [thread:$0]  (%p6713_p2), %s5680_s20, 256, %s5678_s28, %s5682_s17, %s2876_s30, %s2876_s30, %s2877_s8  }
 0x58d PF: > { %s6714_s21 = sld [smem:[#allocation16_spill]] }
 0x58e   : > { %s6715_s22 = sld [smem:[#allocation13_spill]] }
 0x58f   : > { %s6716_s2 = sld [smem:[#allocation21_spill]] }
 0x593   : > { %p2669_p3 = scmp.ge.s32.totalorder %s6714_s21, 2 }
 0x594   : > { %s2350_s4 = sand.u32 1, %s6715_s22  }
 0x595   : > { %p6717_p4 = scmp.ne.s32.totalorder %s6716_s2, 0  ;;  %s2351_s12 = scalar_lea.sflag [#allocation4], %s2350_s4 }
 0x597   : > { %p2660_p9 = pnand %p2669_p3, %p6717_p4 }
 0x599   : > { %p2661_p7 = pneg %p2660_p9 }
 0x59b   : > { %2850 = dma.done.wait (%p2661_p7), %s2351_s12, 256  }
 0x59c   : > { %2852 = vsyncadd (%p2661_p7), %s2351_s12, 4294967040  ;;  %s6718_s23 = sld [smem:[#allocation18_spill]] }
 0x59d   : > { %s6719_s20 = sld [smem:[#allocation14_spill]] }
 0x59e   : > { %s6720_s21 = sld [smem:[#allocation15_spill]] }
 0x59f   : > { %s6721_s22 = sld [smem:[#allocation19_spill]] }
 0x5a2   : > { %p18_p5 = scmp.ge.s32.totalorder %s6718_s23, 4  }
 0x5a4   :  { %20 = sbr.rel (!%p18_p5) target bundleno = 12 (0xc), region = 88 }
 0x5a9   :  { %2356 = vsyncpa [#allocation4], 1 }
 0x5aa   :  { %2358 = vsyncpa [#allocation4 + $0x1], 1 }
 0x5ab   :  { %2359 = vsyncpa [#allocation5], 1 }
 0x5ac   :  { %2361 = vsyncpa [#allocation5 + $0x1], 1 }
 0x5ad   :  { %2362 = vsyncpa [#allocation7], 1 }

</bundles_post_ra>
